<compile_context>
chip_gen: v6e
topology: v6e:2x2x1
jax: 0.10.0
libtpu: 0.0.40
codegen_flags: <defaults>
</compile_context>

<pallas_src>
import jax
import jax.numpy as jnp
from jax.experimental import pallas as pl
from jax.experimental.pallas import tpu as pltpu

CHANNELS = 3
HEIGHT = 32
WIDTH = 32
IN_FEATURES = CHANNELS * HEIGHT * WIDTH   # 3072
HIDDEN = 512
OUT_FEATURES = 1


def _round_up(n, m):
    return ((n + m - 1) // m) * m


def _hw_budget():
    """(vmem_limit_bytes, max_tile_rows) chosen per TPU generation.

    v5e / v6e have 128 MiB VMEM per TensorCore -> big tiles, high limit.
    Anything else (incl. v7x with 64 MiB) gets the conservative v7x-safe budget.
    """
    try:
        kind = jax.devices()[0].device_kind.lower()
    except Exception:
        kind = ""
    if any(t in kind for t in ("v5 lite", "v5e", "v5lite", "v6", "trillium")):
        return 100 << 20, 2048
    return 48 << 20, 1024


def _discriminator_kernel(x_ref, w1_ref, b1_ref, w2_ref, b2_ref, o_ref):
    # x_ref:  (TB, 3072) f32      w1_ref: (3072, 512) bf16 (VMEM-resident)
    # b1_ref: (1, 512)   f32      w2_ref: (1, 512)    f32 (transposed row)
    # b2_ref: (1,)       f32 in SMEM
    # o_ref:  (TB, 1)    f32
    #
    # Cast x to bf16 on the VPU (hidden under the MXU / DMA), then Linear 1 on
    # the MXU with f32 accumulation, bias + ReLU on the VPU.
    x_bf16 = x_ref[...].astype(jnp.bfloat16)
    h = jnp.dot(x_bf16, w1_ref[...], preferred_element_type=jnp.float32)
    h = jnp.maximum(h + b1_ref[...], 0.0)
    # Linear 2 as VPU multiply + cross-lane (XLU) reduction: (TB,512)*(1,512)->(TB,1)
    logits = jnp.sum(h * w2_ref[...], axis=-1, keepdims=True) + b2_ref[0]
    # Numerically stable sigmoid on the EUP: 0.5 * (1 + tanh(0.5 * x)).
    o_ref[...] = 0.5 * (jnp.tanh(0.5 * logits) + 1.0)


def discriminator_forward(x_nchw, w1, b1, w2, b2, *, max_tile=None, vmem_limit_bytes=None):
    """x_nchw: (B, 3, 32, 32) float32 -> (B, 1) float32 probabilities.

    `w1` should ideally be pre-cast to bfloat16 once by the caller (outside the
    per-call path); an in-wrapper cast is only a fallback.
    """
    B = x_nchw.shape[0]
    # Flatten exactly like torch.nn.Flatten(1) on an NCHW tensor (no copy).
    x_flat = x_nchw.reshape(B, IN_FEATURES)

    auto_vmem, auto_tile = _hw_budget()
    if max_tile is None:
        max_tile = auto_tile
    if vmem_limit_bytes is None:
        vmem_limit_bytes = auto_vmem

    # Batch tile: multiple of 8 (f32 sublane rule), capped at max_tile.
    tb = min(max_tile, _round_up(B, 8))
    # If there is enough work, use >= 2 grid steps so the "parallel" batch axis
    # can land on both v7x TensorCores (neutral on v5e / v6e).
    if B >= 16 and pl.cdiv(B, tb) < 2:
        tb = _round_up(pl.cdiv(B, 2), 8)

    grid = (pl.cdiv(B, tb),)

    # Weights: w1 bf16 (pre-cast preferred), small operands stay f32.
    w1_bf16 = w1 if w1.dtype == jnp.bfloat16 else w1.astype(jnp.bfloat16)
    b1_f32 = b1.reshape(1, HIDDEN).astype(jnp.float32)
    w2_row = w2.reshape(1, HIDDEN).astype(jnp.float32)        # transposed (1, 512)
    b2_f32 = b2.reshape(OUT_FEATURES).astype(jnp.float32)     # (1,) scalar for SMEM

    out = pl.pallas_call(
        _discriminator_kernel,
        out_shape=jax.ShapeDtypeStruct((B, OUT_FEATURES), jnp.float32),
        grid=grid,
        in_specs=[
            pl.BlockSpec((tb, IN_FEATURES), lambda i: (i, 0)),       # x: f32, batch-tiled
            pl.BlockSpec((IN_FEATURES, HIDDEN), lambda i: (0, 0)),   # w1: bf16, resident
            pl.BlockSpec((1, HIDDEN), lambda i: (0, 0)),             # b1: resident
            pl.BlockSpec((1, HIDDEN), lambda i: (0, 0)),             # w2 row: resident
            pl.BlockSpec(memory_space=pltpu.MemorySpace.SMEM),       # b2: scalar in SMEM
        ],
        out_specs=pl.BlockSpec((tb, OUT_FEATURES), lambda i: (i, 0)),
        compiler_params=pltpu.CompilerParams(
            dimension_semantics=("parallel",),
            vmem_limit_bytes=vmem_limit_bytes,
        ),
    )(x_flat, w1_bf16, b1_f32, w2_row, b2_f32)

    return out


def init_params(key):
    """Deterministic parameter init (shapes match the torch module; stored as [in, out])."""
    k1, k2, k3, k4 = jax.random.split(key, 4)
    lim1 = 1.0 / jnp.sqrt(jnp.float32(IN_FEATURES))
    lim2 = 1.0 / jnp.sqrt(jnp.float32(HIDDEN))
    w1 = jax.random.uniform(k1, (IN_FEATURES, HIDDEN), jnp.float32, -lim1, lim1)
    b1 = jax.random.uniform(k2, (1, HIDDEN), jnp.float32, -lim1, lim1)
    w2 = jax.random.uniform(k3, (HIDDEN, OUT_FEATURES), jnp.float32, -lim2, lim2)
    b2 = jax.random.uniform(k4, (1, OUT_FEATURES), jnp.float32, -lim2, lim2)
    return w1, b1, w2, b2


def reference_forward(x_nchw, w1, b1, w2, b2):
    # Reference with the same bf16 MXU inputs, so the comparison isolates kernel
    # correctness (the bf16 matmul precision is an intentional tolerance choice).
    x_flat = x_nchw.reshape(x_nchw.shape[0], IN_FEATURES)
    h = jnp.dot(
        x_flat.astype(jnp.bfloat16),
        w1.astype(jnp.bfloat16),
        preferred_element_type=jnp.float32,
    )
    h = jnp.maximum(h + b1.reshape(1, HIDDEN), 0.0)
    logits = h @ w2.reshape(HIDDEN, OUT_FEATURES) + b2.reshape(1, OUT_FEATURES)
    return jax.nn.sigmoid(logits)


if __name__ == "__main__":
    key = jax.random.PRNGKey(0)
    kx, kp = jax.random.split(key)

    B = 8
    x = jax.random.normal(kx, (B, CHANNELS, HEIGHT, WIDTH), jnp.float32)
    w1, b1, w2, b2 = init_params(kp)

    # One-time weight cast, outside the per-call path (perf review item).
    w1_bf16 = w1.astype(jnp.bfloat16)

    out = discriminator_forward(x, w1_bf16, b1, w2, b2)
    out = jax.block_until_ready(out)

    ref = reference_forward(x, w1, b1, w2, b2)
    assert out.shape == (B, OUT_FEATURES), out.shape
    assert jnp.allclose(out, ref, atol=1e-2, rtol=1e-2), (
        float(jnp.max(jnp.abs(out - ref)))
    )
    print("KERNEL_OK")
</pallas_src>

<mosaic_0001>
module attributes {stable_mosaic.version = 11 : i64} {
  func.func @_discriminator_kernel(%arg0: i32, %arg1: memref<8x3072xf32, #tpu.memory_space<vmem>>, %arg2: memref<3072x512xbf16, #tpu.memory_space<vmem>>, %arg3: memref<1x512xf32, #tpu.memory_space<vmem>>, %arg4: memref<1x512xf32, #tpu.memory_space<vmem>>, %arg5: memref<1xf32, #tpu.memory_space<smem>>, %arg6: memref<8x1xf32, #tpu.memory_space<vmem>>) attributes {dimension_semantics = [#tpu.dimension_semantics<parallel>], iteration_bounds = array<i64: 1>, scalar_prefetch = 0 : i64, scratch_operands = 0 : i64, tpu.core_type = #tpu.core_type<tc>, window_params = [{transform_indices = @transform_0, window_bounds = array<i64: 8, 3072>}, {pipeline_mode = #tpu.pipeline_mode<synchronous>, transform_indices = @transform_1, window_bounds = array<i64: 3072, 512>}, {pipeline_mode = #tpu.pipeline_mode<synchronous>, transform_indices = @transform_2, window_bounds = array<i64: 1, 512>}, {pipeline_mode = #tpu.pipeline_mode<synchronous>, transform_indices = @transform_3, window_bounds = array<i64: 1, 512>}, {transform_indices = @transform_4, window_bounds = array<i64: 1>}, {transform_indices = @transform_5, window_bounds = array<i64: 8, 1>}]} {
    %c0 = arith.constant 0 : index
    %c0_0 = arith.constant 0 : index
    %0 = vector.load %arg1[%c0, %c0_0] : memref<8x3072xf32, #tpu.memory_space<vmem>>, vector<8x3072xf32>
    %1 = arith.truncf %0 : vector<8x3072xf32> to vector<8x3072xbf16>
    %c0_1 = arith.constant 0 : index
    %c0_2 = arith.constant 0 : index
    %2 = vector.load %arg2[%c0_1, %c0_2] : memref<3072x512xbf16, #tpu.memory_space<vmem>>, vector<3072x512xbf16>
    %cst = arith.constant dense<0.000000e+00> : vector<8x512xf32>
    %3 = tpu.matmul %1, %2, %cst {dimension_numbers = #tpu.dot_dimension_numbers<[1], [0], [0], [1], [0, 0, 1, 1], [], []>} : vector<8x3072xbf16>, vector<3072x512xbf16>, vector<8x512xf32> -> vector<8x512xf32>
    %c0_3 = arith.constant 0 : index
    %c0_4 = arith.constant 0 : index
    %4 = vector.load %arg3[%c0_3, %c0_4] : memref<1x512xf32, #tpu.memory_space<vmem>>, vector<1x512xf32>
    %5 = vector.broadcast %4 : vector<1x512xf32> to vector<8x512xf32>
    %6 = arith.addf %3, %5 : vector<8x512xf32>
    %cst_5 = arith.constant 0.000000e+00 : f32
    %7 = vector.broadcast %cst_5 : f32 to vector<8x512xf32>
    %8 = arith.maximumf %6, %7 : vector<8x512xf32>
    %c0_6 = arith.constant 0 : index
    %c0_7 = arith.constant 0 : index
    %9 = vector.load %arg4[%c0_6, %c0_7] : memref<1x512xf32, #tpu.memory_space<vmem>>, vector<1x512xf32>
    %10 = vector.broadcast %9 : vector<1x512xf32> to vector<8x512xf32>
    %11 = arith.mulf %8, %10 : vector<8x512xf32>
    %cst_8 = arith.constant dense<0.000000e+00> : vector<8xf32>
    %12 = vector.multi_reduction <add>, %11, %cst_8 [1] : vector<8x512xf32> to vector<8xf32>
    %13 = vector.shape_cast %12 : vector<8xf32> to vector<8x1xf32>
    %c0_9 = arith.constant 0 : index
    %14 = memref.load %arg5[%c0_9] : memref<1xf32, #tpu.memory_space<smem>>
    %15 = vector.broadcast %14 : f32 to vector<8x1xf32>
    %16 = arith.addf %13, %15 : vector<8x1xf32>
    %cst_10 = arith.constant 5.000000e-01 : f32
    %17 = vector.broadcast %cst_10 : f32 to vector<8x1xf32>
    %18 = arith.mulf %17, %16 : vector<8x1xf32>
    %19 = math.tanh %18 : vector<8x1xf32>
    %cst_11 = arith.constant 1.000000e+00 : f32
    %20 = vector.broadcast %cst_11 : f32 to vector<8x1xf32>
    %21 = arith.addf %19, %20 : vector<8x1xf32>
    %cst_12 = arith.constant 5.000000e-01 : f32
    %22 = vector.broadcast %cst_12 : f32 to vector<8x1xf32>
    %23 = arith.mulf %22, %21 : vector<8x1xf32>
    %c0_13 = arith.constant 0 : index
    %c0_14 = arith.constant 0 : index
    %24 = vector.load %arg6[%c0_13, %c0_14] : memref<8x1xf32, #tpu.memory_space<vmem>>, vector<8x1xf32>
    tpu.vector_store %arg6[%c0_13, %c0_14], %23 {strides = array<i32>} : memref<8x1xf32, #tpu.memory_space<vmem>>, vector<8x1xf32>,
    return
  }
  func.func @transform_0(%arg0: i32) -> (i32, i32) {
    %c0_i32 = arith.constant 0 : i32
    %c0_i32_0 = arith.constant 0 : i32
    return %arg0, %c0_i32 : i32, i32
  }
  func.func @transform_1(%arg0: i32) -> (i32, i32) {
    %c0_i32 = arith.constant 0 : i32
    %c0_i32_0 = arith.constant 0 : i32
    %c0_i32_1 = arith.constant 0 : i32
    return %c0_i32, %c0_i32_0 : i32, i32
  }
  func.func @transform_2(%arg0: i32) -> (i32, i32) {
    %c0_i32 = arith.constant 0 : i32
    %c0_i32_0 = arith.constant 0 : i32
    %c0_i32_1 = arith.constant 0 : i32
    return %c0_i32, %c0_i32_0 : i32, i32
  }
  func.func @transform_3(%arg0: i32) -> (i32, i32) {
    %c0_i32 = arith.constant 0 : i32
    %c0_i32_0 = arith.constant 0 : i32
    %c0_i32_1 = arith.constant 0 : i32
    return %c0_i32, %c0_i32_0 : i32, i32
  }
  func.func @transform_4(%arg0: i32) -> i32 {
    %c0_i32 = arith.constant 0 : i32
    %c0_i32_0 = arith.constant 0 : i32
    return %c0_i32 : i32
  }
  func.func @transform_5(%arg0: i32) -> (i32, i32) {
    %c0_i32 = arith.constant 0 : i32
    %c0_i32_0 = arith.constant 0 : i32
    return %arg0, %c0_i32 : i32, i32
  }
}

</mosaic_0001>

<bundles_post_ra>
// kernel: tpu_custom_call.1
= control target key start
LH: loop header
LB: loop body
LE: loop exit
PB: predicated region body
PF: predicated region fallthrough
CT: control target
= control target key end

     0   :  { %11 = vsyncpa [#allocation4], 0  ;;  %s8021_s0 = inlined_call_operand.hbm [shape: f32[8,3072], index: 0, kind: input, shape index: {}]   ;;  %s8022_s1 = inlined_call_operand.hbm [shape: bf16[3072,512], index: 1, kind: input, shape index: {}]   ;;  %s8023_s2 = inlined_call_operand.hbm [shape: f32[1,512], index: 2, kind: input, shape index: {}]   ;;  %s8024_s3 = inlined_call_operand.hbm [shape: f32[1,512], index: 3, kind: input, shape index: {}]   ;;  %s8025_s4 = inlined_call_operand.<no memory space> [shape: f32[1], index: 4, kind: input, shape index: {}]   ;;  %s8026_s5 = inlined_call_operand.vmem [shape: f32[8,1], index: 5, kind: output, shape index: {}]  }
   0x1   :  { %12 = vsyncpa [#allocation6], 0 }
   0x2   :  { %13 = vsyncpa [#allocation9], 0  ;;  %s7798_s18 = smov [#allocation5]  }
   0x3   :  { %s29_s19 = sshll.u32 %s7798_s18, 4  ;;  %s30_s19 = int_to_ptr.vmem [resolvable:$true] %s29_s19 }
   0x4   :  { %s7720_s20 = scalar_lea.vmem %s30_s19, 98304  ;;  %p7725_p1 = scmp.lt.s32.totalorder %s30_s19, %s30_s19 }
   0x5   :  { %p7721_p0 = scmp.ne.s32.totalorder %s30_s19, %s7720_s20  ;;  %p7726_p2 = scmp.lt.s32.totalorder %s7720_s20, %s7720_s20 }
   0x7   :  { %p7727_p3 = por %p7726_p2, %p7725_p1 }
   0x9   :  { %p7728_p4 = pnand %p7727_p3, %p7721_p0 }
   0xb   :  { %7731 = shalt.err (!%p7728_p4)
}
   0xc   :  { %s7799_s21 = smov 256   ;;  %s7800_s22 = smov 16  }
   0xd   :  { %35 = dma.hbm_to_vmem [thread:$0]  %s8022_s1, 98304, %s30_s19, [#allocation6], %s7799_s21, %s7799_s21, %s7800_s22  }
   0xe   :  { %s7801_s25 = smov [#allocation3]   ;;  %s7802_s27 = smov [#allocation7]  }
   0xf   :  { %s20_s26 = sshll.u32 %s7801_s25, 4  ;;  %s42_s28 = sshll.u32 %s7802_s27, 4  ;;  %s21_s26 = int_to_ptr.vmem [resolvable:$true] %s20_s26  ;;  %s43_s28 = int_to_ptr.vmem [resolvable:$true] %s42_s28 }
  0x10   :  { %s7740_s29 = scalar_lea.vmem %s21_s26, 3072  ;;  %p7745_p6 = scmp.lt.s32.totalorder %s21_s26, %s21_s26 }
  0x11   :  { %p7741_p5 = scmp.ne.s32.totalorder %s21_s26, %s7740_s29  ;;  %p7746_p7 = scmp.lt.s32.totalorder %s7740_s29, %s7740_s29 }
  0x13   :  { %p7747_p8 = por %p7746_p7, %p7745_p6 }
  0x15   :  { %p7748_p9 = pnand %p7747_p8, %p7741_p5 }
  0x17   :  { %7751 = shalt.err (!%p7748_p9)
}
  0x18   :  { %23 = dma.hbm_to_vmem [thread:$0]  %s8021_s0, 3072, %s21_s26, [#allocation4]  }
  0x19   :  { %s7760_s7 = scalar_lea.vmem %s43_s28, 64  ;;  %p7765_p11 = scmp.lt.s32.totalorder %s43_s28, %s43_s28 }
  0x1a   :  { %p7761_p10 = scmp.ne.s32.totalorder %s43_s28, %s7760_s7  ;;  %p7766_p12 = scmp.lt.s32.totalorder %s7760_s7, %s7760_s7 }
  0x1c   :  { %p7767_p13 = por %p7766_p12, %p7765_p11 }
  0x1e   :  { %p7768_p0 = pnand %p7767_p13, %p7761_p10 }
  0x20   :  { %7771 = shalt.err (!%p7768_p0)
}
  0x21   :  { %45 = dma.hbm_to_vmem [thread:$0]  %s8023_s2, 64, %s43_s28, [#allocation6]  }
  0x22   :  { %s7803_s9 = smov [#allocation8]  }
  0x23   :  { %s52_s10 = sshll.u32 %s7803_s9, 4  ;;  %s53_s10 = int_to_ptr.vmem [resolvable:$true] %s52_s10 }
  0x24   :  { %s7780_s11 = scalar_lea.vmem %s53_s10, 64  ;;  %p7785_p2 = scmp.lt.s32.totalorder %s53_s10, %s53_s10 }
  0x25   :  { %p7781_p1 = scmp.ne.s32.totalorder %s53_s10, %s7780_s11  ;;  %p7786_p3 = scmp.lt.s32.totalorder %s7780_s11, %s7780_s11 }
  0x27   :  { %p7787_p4 = por %p7786_p3, %p7785_p2 }
  0x29   :  { %p7788_p5 = pnand %p7787_p4, %p7781_p1 }
  0x2b   :  { %7791 = shalt.err (!%p7788_p5)
}
  0x2c   :  { %55 = dma.hbm_to_vmem [thread:$0]  %s8024_s3, 64, %s53_s10, [#allocation9]  }
  0x2d   :  { %7792 = dma.done.wait [#allocation4], 3072  }
  0x2e   :  { %7793 = vsyncadd [#allocation4], 4294964224 }
  0x2f   :  { %7794 = dma.done.wait [#allocation6], 98368  }
  0x30   :  { %7795 = vsyncadd [#allocation6], 4294868928 }
  0x31   :  { %7796 = dma.done.wait [#allocation9], 64  }
  0x32   :  { %7797 = vsyncadd [#allocation9], 4294967232  ;;  %v6557_v0 = vld [vmem:[#allocation5 + $0xe4] ss:$16 sps:$4 sm:$0xff]   ;;  %v6561_v2 = vld [vmem:[#allocation5 + $0xe0] ss:$16 sps:$4 sm:$0xff]  }
  0x33   :  { %v6559_v1 = vld [vmem:[#allocation5 + $0x2e4] ss:$16 sps:$4 sm:$0xff]   ;;  %4748 = vmatprep.subr.bf16.mxu0 %v6557_v0  ;;  %v6562_v3 = vld [vmem:[#allocation5 + $0x2e0] ss:$16 sps:$4 sm:$0xff]   ;;  %v71_v46 = vld [vmem:[#allocation3 + $0x8] sm:$0xff]  ;;  %vm5774_vm0 = vcmask 7168  }
  0x34   :  { %4789 = vmatprep.subr.bf16.mxu1 %v6559_v1  ;;  %v6563_v4 = vld [vmem:[#allocation5 + $0xc4] ss:$16 sps:$4 sm:$0xff]   ;;  %4749 = vmatpush1.bf16.msra.mxu0 %v6561_v2  ;;  %v6567_v6 = vld [vmem:[#allocation5 + $0xc0] ss:$16 sps:$4 sm:$0xff]   ;;  %v7846_v49 = vpack.c.bf16 %v71_v46, %v71_v46  ;;  %v73_v50 = vld [vmem:[#allocation3 + $0x18] sm:$0xff] }
  0x35   :  { %4790 = vmatpush1.bf16.msra.mxu1 %v6562_v3  ;;  %v6565_v5 = vld [vmem:[#allocation5 + $0x2c4] ss:$16 sps:$4 sm:$0xff]   ;;  %4750 = vmatprep.subr.bf16.mxu0 %v6563_v4  ;;  %v6568_v7 = vld [vmem:[#allocation5 + $0x2c0] ss:$16 sps:$4 sm:$0xff]   ;;  %v7848_v52 = vpack.c.bf16 %v73_v50, %v73_v50 }
  0x36   :  { %4791 = vmatprep.subr.bf16.mxu1 %v6565_v5  ;;  %v6569_v8 = vld [vmem:[#allocation5 + $0xa4] ss:$16 sps:$4 sm:$0xff]   ;;  %v6573_v10 = vld [vmem:[#allocation5 + $0xa0] ss:$16 sps:$4 sm:$0xff]   ;;  %4780 = vmatprep.mubr.bf16.mxu0 %v7846_v49 }
  0x37   :  { %v6571_v9 = vld [vmem:[#allocation5 + $0x2a4] ss:$16 sps:$4 sm:$0xff]   ;;  %v6574_v11 = vld [vmem:[#allocation5 + $0x2a0] ss:$16 sps:$4 sm:$0xff]   ;;  %4821 = vmatprep.mubr.bf16.mxu1 %v7848_v52 }
  0x38   :  { %4751 = vmatpush1.bf16.msra.mxu0 %v6567_v6  ;;  %v6575_v12 = vld [vmem:[#allocation5 + $0x84] ss:$16 sps:$4 sm:$0xff]   ;;  %v6579_v14 = vld [vmem:[#allocation5 + $0x80] ss:$16 sps:$4 sm:$0xff]  }
  0x39   :  { %4792 = vmatpush1.bf16.msra.mxu1 %v6568_v7  ;;  %4752 = vmatprep.subr.bf16.mxu0 %v6569_v8  ;;  %v6577_v13 = vld [vmem:[#allocation5 + $0x284] ss:$16 sps:$4 sm:$0xff]   ;;  %v6580_v15 = vld [vmem:[#allocation5 + $0x280] ss:$16 sps:$4 sm:$0xff]  }
  0x3a   :  { %4793 = vmatprep.subr.bf16.mxu1 %v6571_v9  ;;  %v6581_v16 = vld [vmem:[#allocation5 + $0x64] ss:$16 sps:$4 sm:$0xff]   ;;  %v6585_v18 = vld [vmem:[#allocation5 + $0x60] ss:$16 sps:$4 sm:$0xff]  }
  0x3b   :  { %v6583_v17 = vld [vmem:[#allocation5 + $0x264] ss:$16 sps:$4 sm:$0xff]   ;;  %v6586_v19 = vld [vmem:[#allocation5 + $0x260] ss:$16 sps:$4 sm:$0xff]  }
  0x3c   :  { %4753 = vmatpush1.bf16.msra.mxu0 %v6573_v10  ;;  %v6587_v20 = vld [vmem:[#allocation5 + $0x44] ss:$16 sps:$4 sm:$0xff]   ;;  %v6591_v22 = vld [vmem:[#allocation5 + $0x40] ss:$16 sps:$4 sm:$0xff]  }
  0x3d   :  { %4794 = vmatpush1.bf16.msra.mxu1 %v6574_v11  ;;  %4754 = vmatprep.subr.bf16.mxu0 %v6575_v12  ;;  %v6589_v21 = vld [vmem:[#allocation5 + $0x244] ss:$16 sps:$4 sm:$0xff]   ;;  %v6592_v23 = vld [vmem:[#allocation5 + $0x240] ss:$16 sps:$4 sm:$0xff]  }
  0x3e   :  { %4795 = vmatprep.subr.bf16.mxu1 %v6577_v13  ;;  %v6593_v24 = vld [vmem:[#allocation5 + $0x24] ss:$16 sps:$4 sm:$0xff]   ;;  %v6597_v26 = vld [vmem:[#allocation5 + $0x20] ss:$16 sps:$4 sm:$0xff]  }
  0x3f   :  { %v6595_v25 = vld [vmem:[#allocation5 + $0x224] ss:$16 sps:$4 sm:$0xff]   ;;  %v6598_v27 = vld [vmem:[#allocation5 + $0x220] ss:$16 sps:$4 sm:$0xff]  }
  0x40   :  { %4755 = vmatpush1.bf16.msra.mxu0 %v6579_v14  ;;  %v6599_v28 = vld [vmem:[#allocation5 + $0x4] ss:$16 sps:$4 sm:$0xff]   ;;  %v6603_v30 = vld [vmem:[#allocation5] ss:$16 sps:$4 sm:$0xff]  }
  0x41   :  { %4796 = vmatpush1.bf16.msra.mxu1 %v6580_v15  ;;  %4756 = vmatprep.subr.bf16.mxu0 %v6581_v16  ;;  %v6601_v29 = vld [vmem:[#allocation5 + $0x204] ss:$16 sps:$4 sm:$0xff]   ;;  %v6604_v31 = vld [vmem:[#allocation5 + $0x200] ss:$16 sps:$4 sm:$0xff]  }
  0x42   :  { %4797 = vmatprep.subr.bf16.mxu1 %v6583_v17  ;;  %v6605_v32 = vld [vmem:[#allocation5 + $0x1e4] ss:$16 sps:$4 sm:$0xff]   ;;  %v6609_v34 = vld [vmem:[#allocation5 + $0x1e0] ss:$16 sps:$4 sm:$0xff]  }
  0x43   :  { %v6607_v33 = vld [vmem:[#allocation5 + $0x3e4] ss:$16 sps:$4 sm:$0xff]   ;;  %v6610_v35 = vld [vmem:[#allocation5 + $0x3e0] ss:$16 sps:$4 sm:$0xff]  }
  0x44   :  { %4757 = vmatpush1.bf16.msra.mxu0 %v6585_v18  ;;  %v6611_v36 = vld [vmem:[#allocation5 + $0x1c4] ss:$16 sps:$4 sm:$0xff]   ;;  %v6615_v38 = vld [vmem:[#allocation5 + $0x1c0] ss:$16 sps:$4 sm:$0xff]  }
  0x45   :  { %4798 = vmatpush1.bf16.msra.mxu1 %v6586_v19  ;;  %4758 = vmatprep.subr.bf16.mxu0 %v6587_v20  ;;  %v6613_v37 = vld [vmem:[#allocation5 + $0x3c4] ss:$16 sps:$4 sm:$0xff]   ;;  %v6616_v39 = vld [vmem:[#allocation5 + $0x3c0] ss:$16 sps:$4 sm:$0xff]  }
  0x46   :  { %4799 = vmatprep.subr.bf16.mxu1 %v6589_v21  ;;  %v6617_v40 = vld [vmem:[#allocation5 + $0x1a4] ss:$16 sps:$4 sm:$0xff]   ;;  %v6621_v42 = vld [vmem:[#allocation5 + $0x1a0] ss:$16 sps:$4 sm:$0xff]  }
  0x47   :  { %v6619_v41 = vld [vmem:[#allocation5 + $0x3a4] ss:$16 sps:$4 sm:$0xff]   ;;  %v6622_v43 = vld [vmem:[#allocation5 + $0x3a0] ss:$16 sps:$4 sm:$0xff]  }
  0x48   :  { %4759 = vmatpush1.bf16.msra.mxu0 %v6591_v22  ;;  %v6623_v44 = vld [vmem:[#allocation5 + $0x184] ss:$16 sps:$4 sm:$0xff]   ;;  %v6627_v47 = vld [vmem:[#allocation5 + $0x180] ss:$16 sps:$4 sm:$0xff]  }
  0x49   :  { %4800 = vmatpush1.bf16.msra.mxu1 %v6592_v23  ;;  %4760 = vmatprep.subr.bf16.mxu0 %v6593_v24  ;;  %v6625_v45 = vld [vmem:[#allocation5 + $0x384] ss:$16 sps:$4 sm:$0xff]   ;;  %v6628_v48 = vld [vmem:[#allocation5 + $0x380] ss:$16 sps:$4 sm:$0xff]  }
  0x4a   :  { %4801 = vmatprep.subr.bf16.mxu1 %v6595_v25  ;;  %v6629_v51 = vld [vmem:[#allocation5 + $0x164] ss:$16 sps:$4 sm:$0xff]   ;;  %v6633_v54 = vld [vmem:[#allocation5 + $0x160] ss:$16 sps:$4 sm:$0xff]  }
  0x4b   :  { %v6631_v53 = vld [vmem:[#allocation5 + $0x364] ss:$16 sps:$4 sm:$0xff]   ;;  %v6634_v55 = vld [vmem:[#allocation5 + $0x360] ss:$16 sps:$4 sm:$0xff]  }
  0x4c   :  { %4761 = vmatpush1.bf16.msra.mxu0 %v6597_v26  ;;  %v6635_v56 = vld [vmem:[#allocation5 + $0x144] ss:$16 sps:$4 sm:$0xff]   ;;  %v6639_v58 = vld [vmem:[#allocation5 + $0x140] ss:$16 sps:$4 sm:$0xff]  }
  0x4d   :  { %4802 = vmatpush1.bf16.msra.mxu1 %v6598_v27  ;;  %4762 = vmatprep.subr.bf16.mxu0 %v6599_v28  ;;  %v6637_v57 = vld [vmem:[#allocation5 + $0x344] ss:$16 sps:$4 sm:$0xff]   ;;  %v6640_v59 = vld [vmem:[#allocation5 + $0x340] ss:$16 sps:$4 sm:$0xff]  }
  0x4e   :  { %4803 = vmatprep.subr.bf16.mxu1 %v6601_v29  ;;  %v6641_v60 = vld [vmem:[#allocation5 + $0x124] ss:$16 sps:$4 sm:$0xff]   ;;  %v6645_v62 = vld [vmem:[#allocation5 + $0x120] ss:$16 sps:$4 sm:$0xff]  }
  0x4f   :  { %v6643_v61 = vld [vmem:[#allocation5 + $0x324] ss:$16 sps:$4 sm:$0xff]   ;;  %v6646_v63 = vld [vmem:[#allocation5 + $0x320] ss:$16 sps:$4 sm:$0xff]  }
  0x50   :  { %4763 = vmatpush1.bf16.msra.mxu0 %v6603_v30  ;;  %v6647_v0 = vld [vmem:[#allocation5 + $0x104] ss:$16 sps:$4 sm:$0xff]   ;;  %v6651_v2 = vld [vmem:[#allocation5 + $0x100] ss:$16 sps:$4 sm:$0xff]  }
  0x51   :  { %4804 = vmatpush1.bf16.msra.mxu1 %v6604_v31  ;;  %4764 = vmatprep.subr.bf16.mxu0 %v6605_v32  ;;  %v6649_v1 = vld [vmem:[#allocation5 + $0x304] ss:$16 sps:$4 sm:$0xff]   ;;  %v6652_v3 = vld [vmem:[#allocation5 + $0x300] ss:$16 sps:$4 sm:$0xff]  }
  0x52   :  { %4805 = vmatprep.subr.bf16.mxu1 %v6607_v33  ;;  %v70_v4 = vld [vmem:[#allocation3] sm:$0xff]  ;;  %v72_v5 = vld [vmem:[#allocation3 + $0x10] sm:$0xff] }
  0x53   :  { %v6655_v6 = vld [vmem:[#allocation5 + $0x4e4] ss:$16 sps:$4 sm:$0xff]   ;;  %v7852_v8 = vpack.c.bf16 %v70_v4, %v70_v4  ;;  %v7854_v9 = vpack.c.bf16 %v72_v5, %v72_v5  ;;  %v6653_v10 = vld [vmem:[#allocation5 + $0x4e0] ss:$16 sps:$4 sm:$0xff]  }
  0x54   :  { %4765 = vmatpush2.bf16.msra.mxu0 %v6609_v34  ;;  %v6658_v7 = vld [vmem:[#allocation5 + $0x6e4] ss:$16 sps:$4 sm:$0xff]   ;;  %v6656_v11 = vld [vmem:[#allocation5 + $0x6e0] ss:$16 sps:$4 sm:$0xff]   ;;  %v75_v34 = vld [vmem:[#allocation3 + $0x28] sm:$0xff] }
  0x55   :  { %4806 = vmatpush2.bf16.msra.mxu1 %v6610_v35  ;;  %4766 = vmatprep.subr.bf16.mxu0 %v6611_v36  ;;  %v6661_v12 = vld [vmem:[#allocation5 + $0x4c4] ss:$16 sps:$4 sm:$0xff]   ;;  %v6659_v14 = vld [vmem:[#allocation5 + $0x4c0] ss:$16 sps:$4 sm:$0xff]  }
  0x56   :  { %4807 = vmatprep.subr.bf16.mxu1 %v6613_v37  ;;  %v6664_v13 = vld [vmem:[#allocation5 + $0x6c4] ss:$16 sps:$4 sm:$0xff]   ;;  %v6662_v15 = vld [vmem:[#allocation5 + $0x6c0] ss:$16 sps:$4 sm:$0xff]   ;;  %v7858_v37 = vpack.c.bf16 %v75_v34, %v75_v34 }
  0x57   :  { %v6667_v16 = vld [vmem:[#allocation5 + $0x4a4] ss:$16 sps:$4 sm:$0xff]   ;;  %v6665_v18 = vld [vmem:[#allocation5 + $0x4a0] ss:$16 sps:$4 sm:$0xff]  }
  0x58   :  { %4767 = vmatpush2.bf16.msra.mxu0 %v6615_v38  ;;  %v6670_v17 = vld [vmem:[#allocation5 + $0x6a4] ss:$16 sps:$4 sm:$0xff]   ;;  %v6668_v19 = vld [vmem:[#allocation5 + $0x6a0] ss:$16 sps:$4 sm:$0xff]   ;;  %v77_v38 = vld [vmem:[#allocation3 + $0x38] sm:$0xff] }
  0x59   :  { %4808 = vmatpush2.bf16.msra.mxu1 %v6616_v39  ;;  %4768 = vmatprep.subr.bf16.mxu0 %v6617_v40  ;;  %v6673_v20 = vld [vmem:[#allocation5 + $0x484] ss:$16 sps:$4 sm:$0xff]   ;;  %v6671_v22 = vld [vmem:[#allocation5 + $0x480] ss:$16 sps:$4 sm:$0xff]   ;;  %v7860_v40 = vpack.c.bf16 %v77_v38, %v77_v38 }
  0x5a   :  { %4809 = vmatprep.subr.bf16.mxu1 %v6619_v41  ;;  %v6676_v21 = vld [vmem:[#allocation5 + $0x684] ss:$16 sps:$4 sm:$0xff]   ;;  %v6674_v23 = vld [vmem:[#allocation5 + $0x680] ss:$16 sps:$4 sm:$0xff]  }
  0x5b   :  { %v6679_v24 = vld [vmem:[#allocation5 + $0x464] ss:$16 sps:$4 sm:$0xff]   ;;  %v6677_v26 = vld [vmem:[#allocation5 + $0x460] ss:$16 sps:$4 sm:$0xff]  }
  0x5c   :  { %4769 = vmatpush2.bf16.msra.mxu0 %v6621_v42  ;;  %v6682_v25 = vld [vmem:[#allocation5 + $0x664] ss:$16 sps:$4 sm:$0xff]   ;;  %v6680_v27 = vld [vmem:[#allocation5 + $0x660] ss:$16 sps:$4 sm:$0xff]  }
  0x5d   :  { %4810 = vmatpush2.bf16.msra.mxu1 %v6622_v43  ;;  %4770 = vmatprep.subr.bf16.mxu0 %v6623_v44  ;;  %v6685_v28 = vld [vmem:[#allocation5 + $0x444] ss:$16 sps:$4 sm:$0xff]   ;;  %v6683_v30 = vld [vmem:[#allocation5 + $0x440] ss:$16 sps:$4 sm:$0xff]  }
  0x5e   :  { %4811 = vmatprep.subr.bf16.mxu1 %v6625_v45  ;;  %v6688_v29 = vld [vmem:[#allocation5 + $0x644] ss:$16 sps:$4 sm:$0xff]   ;;  %v6686_v31 = vld [vmem:[#allocation5 + $0x640] ss:$16 sps:$4 sm:$0xff]  }
  0x5f   :  { %v6691_v32 = vld [vmem:[#allocation5 + $0x424] ss:$16 sps:$4 sm:$0xff]   ;;  %v6689_v35 = vld [vmem:[#allocation5 + $0x420] ss:$16 sps:$4 sm:$0xff]  }
  0x60   :  { %4771 = vmatpush2.bf16.msra.mxu0 %v6627_v47  ;;  %v6694_v33 = vld [vmem:[#allocation5 + $0x624] ss:$16 sps:$4 sm:$0xff]   ;;  %v6692_v36 = vld [vmem:[#allocation5 + $0x620] ss:$16 sps:$4 sm:$0xff]  }
  0x61   :  { %4812 = vmatpush2.bf16.msra.mxu1 %v6628_v48  ;;  %4772 = vmatprep.subr.bf16.mxu0 %v6629_v51  ;;  %v6697_v39 = vld [vmem:[#allocation5 + $0x404] ss:$16 sps:$4 sm:$0xff]   ;;  %v6695_v42 = vld [vmem:[#allocation5 + $0x400] ss:$16 sps:$4 sm:$0xff]  }
  0x62   :  { %4813 = vmatprep.subr.bf16.mxu1 %v6631_v53  ;;  %v6700_v41 = vld [vmem:[#allocation5 + $0x604] ss:$16 sps:$4 sm:$0xff]   ;;  %v6698_v43 = vld [vmem:[#allocation5 + $0x600] ss:$16 sps:$4 sm:$0xff]  }
  0x63   :  { %v6703_v44 = vld [vmem:[#allocation5 + $0x5e4] ss:$16 sps:$4 sm:$0xff]   ;;  %v6701_v46 = vld [vmem:[#allocation5 + $0x5e0] ss:$16 sps:$4 sm:$0xff]  }
  0x64   :  { %4773 = vmatpush2.bf16.msra.mxu0 %v6633_v54  ;;  %v6706_v45 = vld [vmem:[#allocation5 + $0x7e4] ss:$16 sps:$4 sm:$0xff]   ;;  %v6704_v47 = vld [vmem:[#allocation5 + $0x7e0] ss:$16 sps:$4 sm:$0xff]  }
  0x65   :  { %4814 = vmatpush2.bf16.msra.mxu1 %v6634_v55  ;;  %4774 = vmatprep.subr.bf16.mxu0 %v6635_v56  ;;  %v6709_v48 = vld [vmem:[#allocation5 + $0x5c4] ss:$16 sps:$4 sm:$0xff]   ;;  %v6707_v51 = vld [vmem:[#allocation5 + $0x5c0] ss:$16 sps:$4 sm:$0xff]  }
  0x66   :  { %4815 = vmatprep.subr.bf16.mxu1 %v6637_v57  ;;  %v6712_v50 = vld [vmem:[#allocation5 + $0x7c4] ss:$16 sps:$4 sm:$0xff]   ;;  %v6710_v53 = vld [vmem:[#allocation5 + $0x7c0] ss:$16 sps:$4 sm:$0xff]  }
  0x67   :  { %v6715_v54 = vld [vmem:[#allocation5 + $0x5a4] ss:$16 sps:$4 sm:$0xff]   ;;  %v6713_v56 = vld [vmem:[#allocation5 + $0x5a0] ss:$16 sps:$4 sm:$0xff]  }
  0x68   :  { %4775 = vmatpush2.bf16.msra.mxu0 %v6639_v58  ;;  %v6718_v55 = vld [vmem:[#allocation5 + $0x7a4] ss:$16 sps:$4 sm:$0xff]   ;;  %v6716_v57 = vld [vmem:[#allocation5 + $0x7a0] ss:$16 sps:$4 sm:$0xff]  }
  0x69   :  { %4816 = vmatpush2.bf16.msra.mxu1 %v6640_v59  ;;  %4776 = vmatprep.subr.bf16.mxu0 %v6641_v60  ;;  %v6721_v58 = vld [vmem:[#allocation5 + $0x584] ss:$16 sps:$4 sm:$0xff]   ;;  %v6719_v60 = vld [vmem:[#allocation5 + $0x580] ss:$16 sps:$4 sm:$0xff]  }
  0x6a   :  { %4817 = vmatprep.subr.bf16.mxu1 %v6643_v61  ;;  %v6724_v59 = vld [vmem:[#allocation5 + $0x784] ss:$16 sps:$4 sm:$0xff]   ;;  %v6722_v61 = vld [vmem:[#allocation5 + $0x780] ss:$16 sps:$4 sm:$0xff]  }
  0x6b   :  { %v6731_v4 = vld [vmem:[#allocation5 + $0x540] ss:$16 sps:$4 sm:$0xff]   ;;  %v6772_v38 = vld [vmem:[#allocation5 + $0xa84] ss:$16 sps:$4 sm:$0xff]  }
  0x6c   :  { %4777 = vmatpush2.bf16.msra.mxu0 %v6645_v62  ;;  %v6727_v62 = vld [vmem:[#allocation5 + $0x564] ss:$16 sps:$4 sm:$0xff]   ;;  %v6734_v5 = vld [vmem:[#allocation5 + $0x740] ss:$16 sps:$4 sm:$0xff]  }
  0x6d   :  { %4818 = vmatpush2.bf16.msra.mxu1 %v6646_v63  ;;  %4778 = vmatprep.subr.bf16.mxu0 %v6647_v0  ;;  %v6730_v63 = vld [vmem:[#allocation5 + $0x764] ss:$16 sps:$4 sm:$0xff]   ;;  %v6725_v0 = vld [vmem:[#allocation5 + $0x560] ss:$16 sps:$4 sm:$0xff]  }
  0x6e   :  { %4819 = vmatprep.subr.bf16.mxu1 %v6649_v1  ;;  %v6728_v1 = vld [vmem:[#allocation5 + $0x760] ss:$16 sps:$4 sm:$0xff]  }
  0x6f   :  { %v6761_v34 = vld [vmem:[#allocation5 + $0x8a0] ss:$16 sps:$4 sm:$0xff]  }
  0x70   :  { %4779 = vmatpush2.bf16.msra.mxu0 %v6651_v2  ;;  %v6733_v2 = vld [vmem:[#allocation5 + $0x544] ss:$16 sps:$4 sm:$0xff]  }
  0x71   :  { %4820 = vmatpush2.bf16.msra.mxu1 %v6652_v3  ;;  %4830 = vmatprep.subr.bf16.mxu0 %v6655_v6  ;;  %v6736_v3 = vld [vmem:[#allocation5 + $0x744] ss:$16 sps:$4 sm:$0xff]  }
  0x72   :  { %4871 = vmatprep.subr.bf16.mxu1 %v6658_v7  ;;  %v6739_v6 = vld [vmem:[#allocation5 + $0x524] ss:$16 sps:$4 sm:$0xff]  }
  0x73   :  { %4781 = vmatmul.mubr.bf16.vlgmr.msra.gmra.mxu0 %v7852_v8  ;;  %v6742_v7 = vld [vmem:[#allocation5 + $0x724] ss:$16 sps:$4 sm:$0xff]  }
  0x74   :  { %4822 = vmatmul.mubr.bf16.vlgmr.msra.gmra.mxu1 %v7854_v9  ;;  %4831 = vmatpush1.bf16.msra.mxu0 %v6653_v10  ;;  %v6737_v10 = vld [vmem:[#allocation5 + $0x520] ss:$16 sps:$4 sm:$0xff]  }
  0x75   :  { %4872 = vmatpush1.bf16.msra.mxu1 %v6656_v11  ;;  %4832 = vmatprep.subr.bf16.mxu0 %v6661_v12  ;;  %v6740_v11 = vld [vmem:[#allocation5 + $0x720] ss:$16 sps:$4 sm:$0xff]   ;;  %v6745_v12 = vld [vmem:[#allocation5 + $0x504] ss:$16 sps:$4 sm:$0xff]  }
  0x76   :  { %4873 = vmatprep.subr.bf16.mxu1 %v6664_v13  ;;  %4862 = vmatprep.mubr.bf16.mxu0 %v7858_v37  ;;  %v6748_v13 = vld [vmem:[#allocation5 + $0x704] ss:$16 sps:$4 sm:$0xff]  }
  0x77   :  { %4903 = vmatprep.mubr.bf16.mxu1 %v7860_v40 }
  0x78   :  { %4833 = vmatpush1.bf16.msra.mxu0 %v6659_v14  ;;  %v6743_v14 = vld [vmem:[#allocation5 + $0x500] ss:$16 sps:$4 sm:$0xff]  }
  0x79   :  { %4874 = vmatpush1.bf16.msra.mxu1 %v6662_v15  ;;  %4834 = vmatprep.subr.bf16.mxu0 %v6667_v16  ;;  %v6746_v15 = vld [vmem:[#allocation5 + $0x700] ss:$16 sps:$4 sm:$0xff]  }
  0x7a   :  { %4875 = vmatprep.subr.bf16.mxu1 %v6670_v17  ;;  %v74_v16 = vld [vmem:[#allocation3 + $0x20] sm:$0xff]  ;;  %v76_v17 = vld [vmem:[#allocation3 + $0x30] sm:$0xff] }
  0x7c   :  { %4835 = vmatpush1.bf16.msra.mxu0 %v6665_v18  ;;  %v6751_v18 = vld [vmem:[#allocation5 + $0x8e4] ss:$16 sps:$4 sm:$0xff]  }
  0x7d   :  { %4876 = vmatpush1.bf16.msra.mxu1 %v6668_v19  ;;  %4836 = vmatprep.subr.bf16.mxu0 %v6673_v20  ;;  %v6754_v19 = vld [vmem:[#allocation5 + $0xae4] ss:$16 sps:$4 sm:$0xff]   ;;  %v7864_v20 = vpack.c.bf16 %v74_v16, %v74_v16  ;;  %v6821_v16 = vld [vmem:[#allocation5 + $0x960] ss:$16 sps:$4 sm:$0xff]  }
  0x7e   :  { %4877 = vmatprep.subr.bf16.mxu1 %v6676_v21  ;;  %v7866_v21 = vpack.c.bf16 %v76_v17, %v76_v17  ;;  %v6824_v17 = vld [vmem:[#allocation5 + $0xb60] ss:$16 sps:$4 sm:$0xff]  }
  0x80   :  { %4837 = vmatpush1.bf16.msra.mxu0 %v6671_v22  ;;  %v6749_v22 = vld [vmem:[#allocation5 + $0x8e0] ss:$16 sps:$4 sm:$0xff]  }
  0x81   :  { %4878 = vmatpush1.bf16.msra.mxu1 %v6674_v23  ;;  %4838 = vmatprep.subr.bf16.mxu0 %v6679_v24  ;;  %v6752_v23 = vld [vmem:[#allocation5 + $0xae0] ss:$16 sps:$4 sm:$0xff]   ;;  %v6757_v24 = vld [vmem:[#allocation5 + $0x8c4] ss:$16 sps:$4 sm:$0xff]  }
  0x82   :  { %4879 = vmatprep.subr.bf16.mxu1 %v6682_v25  ;;  %v6760_v25 = vld [vmem:[#allocation5 + $0xac4] ss:$16 sps:$4 sm:$0xff]  }
  0x84   :  { %4839 = vmatpush1.bf16.msra.mxu0 %v6677_v26  ;;  %v79_v26 = vld [vmem:[#allocation3 + $0x48] sm:$0xff] }
  0x85   :  { %4880 = vmatpush1.bf16.msra.mxu1 %v6680_v27  ;;  %4840 = vmatprep.subr.bf16.mxu0 %v6685_v28  ;;  %v6755_v27 = vld [vmem:[#allocation5 + $0x8c0] ss:$16 sps:$4 sm:$0xff]  }
  0x86   :  { %4881 = vmatprep.subr.bf16.mxu1 %v6688_v29  ;;  %v6758_v28 = vld [vmem:[#allocation5 + $0xac0] ss:$16 sps:$4 sm:$0xff]   ;;  %v7870_v29 = vpack.c.bf16 %v79_v26, %v79_v26 }
  0x87   :  { %v6833_v26 = vld [vmem:[#allocation5 + $0x920] ss:$16 sps:$4 sm:$0xff]  }
  0x88   :  { %4841 = vmatpush1.bf16.msra.mxu0 %v6683_v30  ;;  %v81_v30 = vld [vmem:[#allocation3 + $0x58] sm:$0xff] }
  0x89   :  { %4882 = vmatpush1.bf16.msra.mxu1 %v6686_v31  ;;  %4842 = vmatprep.subr.bf16.mxu0 %v6691_v32  ;;  %v6763_v31 = vld [vmem:[#allocation5 + $0x8a4] ss:$16 sps:$4 sm:$0xff]   ;;  %v7872_v32 = vpack.c.bf16 %v81_v30, %v81_v30 }
  0x8a   :  { %4883 = vmatprep.subr.bf16.mxu1 %v6694_v33  ;;  %v6766_v33 = vld [vmem:[#allocation5 + $0xaa4] ss:$16 sps:$4 sm:$0xff]  }
  0x8b   :  { %v6844_v30 = vld [vmem:[#allocation5 + $0xb04] ss:$16 sps:$4 sm:$0xff]  }
  0x8c   :  { %4843 = vmatpush1.bf16.msra.mxu0 %v6689_v35  ;;  %v6764_v35 = vld [vmem:[#allocation5 + $0xaa0] ss:$16 sps:$4 sm:$0xff]  }
  0x8d   :  { %4884 = vmatpush1.bf16.msra.mxu1 %v6692_v36  ;;  %4844 = vmatprep.subr.bf16.mxu0 %v6697_v39  ;;  %v6769_v36 = vld [vmem:[#allocation5 + $0x884] ss:$16 sps:$4 sm:$0xff]   ;;  %v6767_v39 = vld [vmem:[#allocation5 + $0x880] ss:$16 sps:$4 sm:$0xff]  }
  0x8e   :  { %4885 = vmatprep.subr.bf16.mxu1 %v6700_v41  ;;  %v6770_v41 = vld [vmem:[#allocation5 + $0xa80] ss:$16 sps:$4 sm:$0xff]  }
  0x90   :  { %4845 = vmatpush1.bf16.msra.mxu0 %v6695_v42  ;;  %v6775_v42 = vld [vmem:[#allocation5 + $0x864] ss:$16 sps:$4 sm:$0xff]  }
  0x91   :  { %4886 = vmatpush1.bf16.msra.mxu1 %v6698_v43  ;;  %4846 = vmatprep.subr.bf16.mxu0 %v6703_v44  ;;  %v6778_v43 = vld [vmem:[#allocation5 + $0xa64] ss:$16 sps:$4 sm:$0xff]   ;;  %v6773_v44 = vld [vmem:[#allocation5 + $0x860] ss:$16 sps:$4 sm:$0xff]  }
  0x92   :  { %4887 = vmatprep.subr.bf16.mxu1 %v6706_v45  ;;  %v6776_v45 = vld [vmem:[#allocation5 + $0xa60] ss:$16 sps:$4 sm:$0xff]  }
  0x94   :  { %4847 = vmatpush2.bf16.msra.mxu0 %v6701_v46  ;;  %v6781_v46 = vld [vmem:[#allocation5 + $0x844] ss:$16 sps:$4 sm:$0xff]  }
  0x95   :  { %4888 = vmatpush2.bf16.msra.mxu1 %v6704_v47  ;;  %4848 = vmatprep.subr.bf16.mxu0 %v6709_v48  ;;  %v6784_v47 = vld [vmem:[#allocation5 + $0xa44] ss:$16 sps:$4 sm:$0xff]   ;;  %v6779_v48 = vld [vmem:[#allocation5 + $0x840] ss:$16 sps:$4 sm:$0xff]  }
  0x96   :  { %4889 = vmatprep.subr.bf16.mxu1 %v6712_v50  ;;  %v6782_v50 = vld [vmem:[#allocation5 + $0xa40] ss:$16 sps:$4 sm:$0xff]  }
  0x98   :  { %4849 = vmatpush2.bf16.msra.mxu0 %v6707_v51  ;;  %v6787_v51 = vld [vmem:[#allocation5 + $0x824] ss:$16 sps:$4 sm:$0xff]  }
  0x99   :  { %4890 = vmatpush2.bf16.msra.mxu1 %v6710_v53  ;;  %4850 = vmatprep.subr.bf16.mxu0 %v6715_v54  ;;  %v6790_v53 = vld [vmem:[#allocation5 + $0xa24] ss:$16 sps:$4 sm:$0xff]   ;;  %v6785_v54 = vld [vmem:[#allocation5 + $0x820] ss:$16 sps:$4 sm:$0xff]  }
  0x9a   :  { %4891 = vmatprep.subr.bf16.mxu1 %v6718_v55  ;;  %v6788_v55 = vld [vmem:[#allocation5 + $0xa20] ss:$16 sps:$4 sm:$0xff]  }
  0x9c   :  { %4851 = vmatpush2.bf16.msra.mxu0 %v6713_v56  ;;  %v6793_v56 = vld [vmem:[#allocation5 + $0x804] ss:$16 sps:$4 sm:$0xff]  }
  0x9d   :  { %4892 = vmatpush2.bf16.msra.mxu1 %v6716_v57  ;;  %4852 = vmatprep.subr.bf16.mxu0 %v6721_v58  ;;  %v6796_v57 = vld [vmem:[#allocation5 + $0xa04] ss:$16 sps:$4 sm:$0xff]   ;;  %v6791_v58 = vld [vmem:[#allocation5 + $0x800] ss:$16 sps:$4 sm:$0xff]  }
  0x9e   :  { %4893 = vmatprep.subr.bf16.mxu1 %v6724_v59  ;;  %v6794_v59 = vld [vmem:[#allocation5 + $0xa00] ss:$16 sps:$4 sm:$0xff]  }
  0xa0   :  { %4853 = vmatpush2.bf16.msra.mxu0 %v6719_v60  ;;  %v6799_v60 = vld [vmem:[#allocation5 + $0x9e4] ss:$16 sps:$4 sm:$0xff]  }
  0xa1   :  { %4894 = vmatpush2.bf16.msra.mxu1 %v6722_v61  ;;  %4854 = vmatprep.subr.bf16.mxu0 %v6727_v62  ;;  %v6802_v61 = vld [vmem:[#allocation5 + $0xbe4] ss:$16 sps:$4 sm:$0xff]   ;;  %v6797_v62 = vld [vmem:[#allocation5 + $0x9e0] ss:$16 sps:$4 sm:$0xff]  }
  0xa2   :  { %4895 = vmatprep.subr.bf16.mxu1 %v6730_v63  ;;  %v6800_v63 = vld [vmem:[#allocation5 + $0xbe0] ss:$16 sps:$4 sm:$0xff]  }
  0xa4   :  { %4855 = vmatpush2.bf16.msra.mxu0 %v6725_v0  ;;  %v6805_v0 = vld [vmem:[#allocation5 + $0x9c4] ss:$16 sps:$4 sm:$0xff]  }
  0xa5   :  { %4896 = vmatpush2.bf16.msra.mxu1 %v6728_v1  ;;  %4856 = vmatprep.subr.bf16.mxu0 %v6733_v2  ;;  %v6808_v1 = vld [vmem:[#allocation5 + $0xbc4] ss:$16 sps:$4 sm:$0xff]   ;;  %v6803_v2 = vld [vmem:[#allocation5 + $0x9c0] ss:$16 sps:$4 sm:$0xff]  }
  0xa6   :  { %4897 = vmatprep.subr.bf16.mxu1 %v6736_v3  ;;  %v6806_v3 = vld [vmem:[#allocation5 + $0xbc0] ss:$16 sps:$4 sm:$0xff]  }
  0xa8   :  { %4857 = vmatpush2.bf16.msra.mxu0 %v6731_v4  ;;  %v6811_v4 = vld [vmem:[#allocation5 + $0x9a4] ss:$16 sps:$4 sm:$0xff]  }
  0xa9   :  { %4898 = vmatpush2.bf16.msra.mxu1 %v6734_v5  ;;  %4858 = vmatprep.subr.bf16.mxu0 %v6739_v6  ;;  %v6814_v5 = vld [vmem:[#allocation5 + $0xba4] ss:$16 sps:$4 sm:$0xff]   ;;  %v6809_v6 = vld [vmem:[#allocation5 + $0x9a0] ss:$16 sps:$4 sm:$0xff]  }
  0xaa   :  { %4899 = vmatprep.subr.bf16.mxu1 %v6742_v7  ;;  %v6812_v7 = vld [vmem:[#allocation5 + $0xba0] ss:$16 sps:$4 sm:$0xff]  }
  0xac   :  { %4859 = vmatpush2.bf16.msra.mxu0 %v6737_v10  ;;  %v6817_v10 = vld [vmem:[#allocation5 + $0x984] ss:$16 sps:$4 sm:$0xff]  }
  0xad   :  { %4900 = vmatpush2.bf16.msra.mxu1 %v6740_v11  ;;  %4860 = vmatprep.subr.bf16.mxu0 %v6745_v12  ;;  %v6820_v11 = vld [vmem:[#allocation5 + $0xb84] ss:$16 sps:$4 sm:$0xff]   ;;  %v6815_v12 = vld [vmem:[#allocation5 + $0x980] ss:$16 sps:$4 sm:$0xff]  }
  0xae   :  { %4901 = vmatprep.subr.bf16.mxu1 %v6748_v13  ;;  %v6818_v13 = vld [vmem:[#allocation5 + $0xb80] ss:$16 sps:$4 sm:$0xff]  }
  0xb0   :  { %4861 = vmatpush2.bf16.msra.mxu0 %v6743_v14  ;;  %v6823_v14 = vld [vmem:[#allocation5 + $0x964] ss:$16 sps:$4 sm:$0xff]  }
  0xb1   :  { %4902 = vmatpush2.bf16.msra.mxu1 %v6746_v15  ;;  %4912 = vmatprep.subr.bf16.mxu0 %v6751_v18  ;;  %v6826_v15 = vld [vmem:[#allocation5 + $0xb64] ss:$16 sps:$4 sm:$0xff]  }
  0xb2   :  { %4953 = vmatprep.subr.bf16.mxu1 %v6754_v19  ;;  %v6829_v18 = vld [vmem:[#allocation5 + $0x944] ss:$16 sps:$4 sm:$0xff]  }
  0xb3   :  { %4863 = vmatmul.mubr.bf16.vlgmr.msra.gmra.mxu0 %v7864_v20  ;;  %v6832_v19 = vld [vmem:[#allocation5 + $0xb44] ss:$16 sps:$4 sm:$0xff]  }
  0xb4   :  { %4904 = vmatmul.mubr.bf16.vlgmr.msra.gmra.mxu1 %v7866_v21  ;;  %4913 = vmatpush1.bf16.msra.mxu0 %v6749_v22  ;;  %v6827_v22 = vld [vmem:[#allocation5 + $0x940] ss:$16 sps:$4 sm:$0xff]  }
  0xb5   :  { %4954 = vmatpush1.bf16.msra.mxu1 %v6752_v23  ;;  %4914 = vmatprep.subr.bf16.mxu0 %v6757_v24  ;;  %v6830_v23 = vld [vmem:[#allocation5 + $0xb40] ss:$16 sps:$4 sm:$0xff]   ;;  %v6835_v24 = vld [vmem:[#allocation5 + $0x924] ss:$16 sps:$4 sm:$0xff]  }
  0xb6   :  { %4955 = vmatprep.subr.bf16.mxu1 %v6760_v25  ;;  %4944 = vmatprep.mubr.bf16.mxu0 %v7870_v29  ;;  %v6838_v25 = vld [vmem:[#allocation5 + $0xb24] ss:$16 sps:$4 sm:$0xff]  }
  0xb7   :  { %4985 = vmatprep.mubr.bf16.mxu1 %v7872_v32 }
  0xb8   :  { %4915 = vmatpush1.bf16.msra.mxu0 %v6755_v27  ;;  %v6836_v27 = vld [vmem:[#allocation5 + $0xb20] ss:$16 sps:$4 sm:$0xff]  }
  0xb9   :  { %4956 = vmatpush1.bf16.msra.mxu1 %v6758_v28  ;;  %4916 = vmatprep.subr.bf16.mxu0 %v6763_v31  ;;  %v6841_v28 = vld [vmem:[#allocation5 + $0x904] ss:$16 sps:$4 sm:$0xff]   ;;  %v6839_v31 = vld [vmem:[#allocation5 + $0x900] ss:$16 sps:$4 sm:$0xff]  }
  0xba   :  { %4957 = vmatprep.subr.bf16.mxu1 %v6766_v33  ;;  %v6842_v33 = vld [vmem:[#allocation5 + $0xb00] ss:$16 sps:$4 sm:$0xff]  }
  0xbc   :  { %4917 = vmatpush1.bf16.msra.mxu0 %v6761_v34  ;;  %v78_v34 = vld [vmem:[#allocation3 + $0x40] sm:$0xff] }
  0xbd   :  { %4958 = vmatpush1.bf16.msra.mxu1 %v6764_v35  ;;  %4918 = vmatprep.subr.bf16.mxu0 %v6769_v36  ;;  %v80_v35 = vld [vmem:[#allocation3 + $0x50] sm:$0xff] }
  0xbe   :  { %4959 = vmatprep.subr.bf16.mxu1 %v6772_v38  ;;  %v6847_v36 = vld [vmem:[#allocation5 + $0xce4] ss:$16 sps:$4 sm:$0xff]  }
  0xbf   :  { %v6850_v38 = vld [vmem:[#allocation5 + $0xee4] ss:$16 sps:$4 sm:$0xff]  }
  0xc0   :  { %4919 = vmatpush1.bf16.msra.mxu0 %v6767_v39  ;;  %v6845_v39 = vld [vmem:[#allocation5 + $0xce0] ss:$16 sps:$4 sm:$0xff]  }
  0xc1   :  { %4960 = vmatpush1.bf16.msra.mxu1 %v6770_v41  ;;  %4920 = vmatprep.subr.bf16.mxu0 %v6775_v42  ;;  %v83_v41 = vld [vmem:[#allocation3 + $0x68] sm:$0xff]  ;;  %v7876_v42 = vpack.c.bf16 %v78_v34, %v78_v34  ;;  %v6911_v34 = vld [vmem:[#allocation5 + $0xd80] ss:$16 sps:$4 sm:$0xff]  }
  0xc2   :  { %4961 = vmatprep.subr.bf16.mxu1 %v6778_v43  ;;  %v7878_v43 = vpack.c.bf16 %v80_v35, %v80_v35  ;;  %v6914_v35 = vld [vmem:[#allocation5 + $0xf80] ss:$16 sps:$4 sm:$0xff]  }
  0xc4   :  { %4921 = vmatpush1.bf16.msra.mxu0 %v6773_v44  ;;  %v85_v44 = vld [vmem:[#allocation3 + $0x78] sm:$0xff] }
  0xc5   :  { %4962 = vmatpush1.bf16.msra.mxu1 %v6776_v45  ;;  %4922 = vmatprep.subr.bf16.mxu0 %v6781_v46  ;;  %v6848_v45 = vld [vmem:[#allocation5 + $0xee0] ss:$16 sps:$4 sm:$0xff]   ;;  %v6853_v46 = vld [vmem:[#allocation5 + $0xcc4] ss:$16 sps:$4 sm:$0xff]  }
  0xc6   :  { %4963 = vmatprep.subr.bf16.mxu1 %v6784_v47  ;;  %v6856_v47 = vld [vmem:[#allocation5 + $0xec4] ss:$16 sps:$4 sm:$0xff]  }
  0xc8   :  { %4923 = vmatpush1.bf16.msra.mxu0 %v6779_v48  ;;  %v7880_v48 = vpack.c.bf16 %v83_v41, %v83_v41  ;;  %v6920_v41 = vld [vmem:[#allocation5 + $0xf60] ss:$16 sps:$4 sm:$0xff]  }
  0xc9   :  { %4964 = vmatpush1.bf16.msra.mxu1 %v6782_v50  ;;  %4924 = vmatprep.subr.bf16.mxu0 %v6787_v51  ;;  %v7882_v50 = vpack.c.bf16 %v85_v44, %v85_v44  ;;  %v6851_v51 = vld [vmem:[#allocation5 + $0xcc0] ss:$16 sps:$4 sm:$0xff]   ;;  %v6925_v44 = vld [vmem:[#allocation5 + $0xd44] ss:$16 sps:$4 sm:$0xff]  }
  0xca   :  { %4965 = vmatprep.subr.bf16.mxu1 %v6790_v53  ;;  %v6854_v53 = vld [vmem:[#allocation5 + $0xec0] ss:$16 sps:$4 sm:$0xff]  }
  0xcc   :  { %4925 = vmatpush1.bf16.msra.mxu0 %v6785_v54  ;;  %v6859_v54 = vld [vmem:[#allocation5 + $0xca4] ss:$16 sps:$4 sm:$0xff]  }
  0xcd   :  { %4966 = vmatpush1.bf16.msra.mxu1 %v6788_v55  ;;  %4926 = vmatprep.subr.bf16.mxu0 %v6793_v56  ;;  %v6862_v55 = vld [vmem:[#allocation5 + $0xea4] ss:$16 sps:$4 sm:$0xff]   ;;  %v6857_v56 = vld [vmem:[#allocation5 + $0xca0] ss:$16 sps:$4 sm:$0xff]  }
  0xce   :  { %4967 = vmatprep.subr.bf16.mxu1 %v6796_v57  ;;  %v6860_v57 = vld [vmem:[#allocation5 + $0xea0] ss:$16 sps:$4 sm:$0xff]  }
  0xd0   :  { %4927 = vmatpush1.bf16.msra.mxu0 %v6791_v58  ;;  %v6865_v58 = vld [vmem:[#allocation5 + $0xc84] ss:$16 sps:$4 sm:$0xff]  }
  0xd1   :  { %4968 = vmatpush1.bf16.msra.mxu1 %v6794_v59  ;;  %4928 = vmatprep.subr.bf16.mxu0 %v6799_v60  ;;  %v6868_v59 = vld [vmem:[#allocation5 + $0xe84] ss:$16 sps:$4 sm:$0xff]   ;;  %v6863_v60 = vld [vmem:[#allocation5 + $0xc80] ss:$16 sps:$4 sm:$0xff]  }
  0xd2   :  { %4969 = vmatprep.subr.bf16.mxu1 %v6802_v61  ;;  %v6866_v61 = vld [vmem:[#allocation5 + $0xe80] ss:$16 sps:$4 sm:$0xff]  }
  0xd4   :  { %4929 = vmatpush2.bf16.msra.mxu0 %v6797_v62  ;;  %v6871_v62 = vld [vmem:[#allocation5 + $0xc64] ss:$16 sps:$4 sm:$0xff]  }
  0xd5   :  { %4970 = vmatpush2.bf16.msra.mxu1 %v6800_v63  ;;  %4930 = vmatprep.subr.bf16.mxu0 %v6805_v0  ;;  %v6874_v63 = vld [vmem:[#allocation5 + $0xe64] ss:$16 sps:$4 sm:$0xff]   ;;  %v6869_v0 = vld [vmem:[#allocation5 + $0xc60] ss:$16 sps:$4 sm:$0xff]  }
  0xd6   :  { %4971 = vmatprep.subr.bf16.mxu1 %v6808_v1  ;;  %v6872_v1 = vld [vmem:[#allocation5 + $0xe60] ss:$16 sps:$4 sm:$0xff]  }
  0xd8   :  { %4931 = vmatpush2.bf16.msra.mxu0 %v6803_v2  ;;  %v6877_v2 = vld [vmem:[#allocation5 + $0xc44] ss:$16 sps:$4 sm:$0xff]  }
  0xd9   :  { %4972 = vmatpush2.bf16.msra.mxu1 %v6806_v3  ;;  %4932 = vmatprep.subr.bf16.mxu0 %v6811_v4  ;;  %v6880_v3 = vld [vmem:[#allocation5 + $0xe44] ss:$16 sps:$4 sm:$0xff]   ;;  %v6875_v4 = vld [vmem:[#allocation5 + $0xc40] ss:$16 sps:$4 sm:$0xff]  }
  0xda   :  { %4973 = vmatprep.subr.bf16.mxu1 %v6814_v5  ;;  %v6878_v5 = vld [vmem:[#allocation5 + $0xe40] ss:$16 sps:$4 sm:$0xff]  }
  0xdc   :  { %4933 = vmatpush2.bf16.msra.mxu0 %v6809_v6  ;;  %v6883_v6 = vld [vmem:[#allocation5 + $0xc24] ss:$16 sps:$4 sm:$0xff]  }
  0xdd   :  { %4974 = vmatpush2.bf16.msra.mxu1 %v6812_v7  ;;  %4934 = vmatprep.subr.bf16.mxu0 %v6817_v10  ;;  %v6886_v7 = vld [vmem:[#allocation5 + $0xe24] ss:$16 sps:$4 sm:$0xff]   ;;  %v6881_v10 = vld [vmem:[#allocation5 + $0xc20] ss:$16 sps:$4 sm:$0xff]  }
  0xde   :  { %4975 = vmatprep.subr.bf16.mxu1 %v6820_v11  ;;  %v6884_v11 = vld [vmem:[#allocation5 + $0xe20] ss:$16 sps:$4 sm:$0xff]  }
  0xe0   :  { %4935 = vmatpush2.bf16.msra.mxu0 %v6815_v12  ;;  %v6889_v12 = vld [vmem:[#allocation5 + $0xc04] ss:$16 sps:$4 sm:$0xff]  }
  0xe1   :  { %4976 = vmatpush2.bf16.msra.mxu1 %v6818_v13  ;;  %4936 = vmatprep.subr.bf16.mxu0 %v6823_v14  ;;  %v6892_v13 = vld [vmem:[#allocation5 + $0xe04] ss:$16 sps:$4 sm:$0xff]   ;;  %v6887_v14 = vld [vmem:[#allocation5 + $0xc00] ss:$16 sps:$4 sm:$0xff]  }
  0xe2   :  { %4977 = vmatprep.subr.bf16.mxu1 %v6826_v15  ;;  %v6890_v15 = vld [vmem:[#allocation5 + $0xe00] ss:$16 sps:$4 sm:$0xff]  }
  0xe4   :  { %4937 = vmatpush2.bf16.msra.mxu0 %v6821_v16  ;;  %v6895_v16 = vld [vmem:[#allocation5 + $0xde4] ss:$16 sps:$4 sm:$0xff]  }
  0xe5   :  { %4978 = vmatpush2.bf16.msra.mxu1 %v6824_v17  ;;  %4938 = vmatprep.subr.bf16.mxu0 %v6829_v18  ;;  %v6898_v17 = vld [vmem:[#allocation5 + $0xfe4] ss:$16 sps:$4 sm:$0xff]   ;;  %v6893_v18 = vld [vmem:[#allocation5 + $0xde0] ss:$16 sps:$4 sm:$0xff]  }
  0xe6   :  { %4979 = vmatprep.subr.bf16.mxu1 %v6832_v19  ;;  %v6896_v19 = vld [vmem:[#allocation5 + $0xfe0] ss:$16 sps:$4 sm:$0xff]  }
  0xe8   :  { %4939 = vmatpush2.bf16.msra.mxu0 %v6827_v22  ;;  %v6901_v22 = vld [vmem:[#allocation5 + $0xdc4] ss:$16 sps:$4 sm:$0xff]  }
  0xe9   :  { %4980 = vmatpush2.bf16.msra.mxu1 %v6830_v23  ;;  %4940 = vmatprep.subr.bf16.mxu0 %v6835_v24  ;;  %v6904_v23 = vld [vmem:[#allocation5 + $0xfc4] ss:$16 sps:$4 sm:$0xff]   ;;  %v6899_v24 = vld [vmem:[#allocation5 + $0xdc0] ss:$16 sps:$4 sm:$0xff]  }
  0xea   :  { %4981 = vmatprep.subr.bf16.mxu1 %v6838_v25  ;;  %v6902_v25 = vld [vmem:[#allocation5 + $0xfc0] ss:$16 sps:$4 sm:$0xff]  }
  0xec   :  { %4941 = vmatpush2.bf16.msra.mxu0 %v6833_v26  ;;  %v6907_v26 = vld [vmem:[#allocation5 + $0xda4] ss:$16 sps:$4 sm:$0xff]  }
  0xed   :  { %4982 = vmatpush2.bf16.msra.mxu1 %v6836_v27  ;;  %4942 = vmatprep.subr.bf16.mxu0 %v6841_v28  ;;  %v6910_v27 = vld [vmem:[#allocation5 + $0xfa4] ss:$16 sps:$4 sm:$0xff]   ;;  %v6905_v28 = vld [vmem:[#allocation5 + $0xda0] ss:$16 sps:$4 sm:$0xff]  }
  0xee   :  { %4983 = vmatprep.subr.bf16.mxu1 %v6844_v30  ;;  %v6908_v30 = vld [vmem:[#allocation5 + $0xfa0] ss:$16 sps:$4 sm:$0xff]  }
  0xf0   :  { %4943 = vmatpush2.bf16.msra.mxu0 %v6839_v31  ;;  %v6913_v31 = vld [vmem:[#allocation5 + $0xd84] ss:$16 sps:$4 sm:$0xff]  }
  0xf1   :  { %4984 = vmatpush2.bf16.msra.mxu1 %v6842_v33  ;;  %4994 = vmatprep.subr.bf16.mxu0 %v6847_v36  ;;  %v6916_v33 = vld [vmem:[#allocation5 + $0xf84] ss:$16 sps:$4 sm:$0xff]  }
  0xf2   :  { %5035 = vmatprep.subr.bf16.mxu1 %v6850_v38  ;;  %v6919_v36 = vld [vmem:[#allocation5 + $0xd64] ss:$16 sps:$4 sm:$0xff]  }
  0xf3   :  { %4945 = vmatmul.mubr.bf16.vlgmr.msra.gmra.mxu0 %v7876_v42  ;;  %v6922_v38 = vld [vmem:[#allocation5 + $0xf64] ss:$16 sps:$4 sm:$0xff]  }
  0xf4   :  { %4986 = vmatmul.mubr.bf16.vlgmr.msra.gmra.mxu1 %v7878_v43  ;;  %4995 = vmatpush1.bf16.msra.mxu0 %v6845_v39  ;;  %v6917_v39 = vld [vmem:[#allocation5 + $0xd60] ss:$16 sps:$4 sm:$0xff]  }
  0xf5   :  { %5036 = vmatpush1.bf16.msra.mxu1 %v6848_v45  ;;  %4996 = vmatprep.subr.bf16.mxu0 %v6853_v46  ;;  %v6928_v45 = vld [vmem:[#allocation5 + $0xf44] ss:$16 sps:$4 sm:$0xff]   ;;  %v6923_v46 = vld [vmem:[#allocation5 + $0xd40] ss:$16 sps:$4 sm:$0xff]  }
  0xf6   :  { %5037 = vmatprep.subr.bf16.mxu1 %v6856_v47  ;;  %5026 = vmatprep.mubr.bf16.mxu0 %v7880_v48  ;;  %v6926_v47 = vld [vmem:[#allocation5 + $0xf40] ss:$16 sps:$4 sm:$0xff]  }
  0xf7   :  { %5067 = vmatprep.mubr.bf16.mxu1 %v7882_v50 }
  0xf8   :  { %4997 = vmatpush1.bf16.msra.mxu0 %v6851_v51  ;;  %v888_v51 = vlaneseq }
  0xf9   :  { %5038 = vmatpush1.bf16.msra.mxu1 %v6854_v53  ;;  %4998 = vmatprep.subr.bf16.mxu0 %v6859_v54  ;;  %v6931_v53 = vld [vmem:[#allocation5 + $0xd24] ss:$16 sps:$4 sm:$0xff]  }
  0xfa   :  { %5039 = vmatprep.subr.bf16.mxu1 %v6862_v55  ;;  %v6934_v54 = vld [vmem:[#allocation5 + $0xf24] ss:$16 sps:$4 sm:$0xff]   ;;  %v6929_v55 = vld [vmem:[#allocation5 + $0xd20] ss:$16 sps:$4 sm:$0xff]  }
  0xfc   :  { %4999 = vmatpush1.bf16.msra.mxu0 %v6857_v56  ;;  %v6932_v56 = vld [vmem:[#allocation5 + $0xf20] ss:$16 sps:$4 sm:$0xff]  }
  0xfd   :  { %5040 = vmatpush1.bf16.msra.mxu1 %v6860_v57  ;;  %5000 = vmatprep.subr.bf16.mxu0 %v6865_v58  ;;  %v7888_v57 = vshrl.u32 %v888_v51, 7  ;;  %v6937_v58 = vld [vmem:[#allocation5 + $0xd04] ss:$16 sps:$4 sm:$0xff]   ;;  %v6962_v51 = vld [vmem:[#allocation5 + $0x1280] ss:$16 sps:$4 sm:$0xff]  }
  0xfe   :  { %5041 = vmatprep.subr.bf16.mxu1 %v6868_v59  ;;  %v6940_v59 = vld [vmem:[#allocation5 + $0xf04] ss:$16 sps:$4 sm:$0xff]  }
 0x100   :  { %5001 = vmatpush1.bf16.msra.mxu0 %v6863_v60  ;;  %v6935_v60 = vld [vmem:[#allocation5 + $0xd00] ss:$16 sps:$4 sm:$0xff]  }
 0x101   :  { %5042 = vmatpush1.bf16.msra.mxu1 %v6866_v61  ;;  %5002 = vmatprep.subr.bf16.mxu0 %v6871_v62  ;;  %v6938_v61 = vld [vmem:[#allocation5 + $0xf00] ss:$16 sps:$4 sm:$0xff]  }
 0x102   :  { %5043 = vmatprep.subr.bf16.mxu1 %v6874_v63  ;;  %v886_v62 = vld [vmem:[#allocation7] sm:$0xf] }
 0x103   :  { %v82_v63 = vld [vmem:[#allocation3 + $0x60] sm:$0xff] }
 0x104   :  { %5003 = vmatpush1.bf16.msra.mxu0 %v6869_v0  ;;  %v890_v0 = vsub.s32 0, %v7888_v57 }
 0x105   :  { %5044 = vmatpush1.bf16.msra.mxu1 %v6872_v1  ;;  %5004 = vmatprep.subr.bf16.mxu0 %v6877_v2  ;;  %v84_v1 = vld [vmem:[#allocation3 + $0x70] sm:$0xff] }
 0x106   :  { %5045 = vmatprep.subr.bf16.mxu1 %v6880_v3  ;;  %v6943_v2 = vld [vmem:[#allocation5 + $0x10e4] ss:$16 sps:$4 sm:$0xff]  }
 0x107   :  { %v6946_v3 = vld [vmem:[#allocation5 + $0x12e4] ss:$16 sps:$4 sm:$0xff]  }
 0x108   :  { %5005 = vmatpush1.bf16.msra.mxu0 %v6875_v4  ;;  %v6941_v4 = vld [vmem:[#allocation5 + $0x10e0] ss:$16 sps:$4 sm:$0xff]  }
 0x109   :  { %5046 = vmatpush1.bf16.msra.mxu1 %v6878_v5  ;;  %5006 = vmatprep.subr.bf16.mxu0 %v6883_v6  ;;  %v894_v5 = vsub.s32 1, %v7888_v57  ;;  %v87_v6 = vld [vmem:[#allocation3 + $0x88] sm:$0xff] }
 0x10a   :  { %5047 = vmatprep.subr.bf16.mxu1 %v6886_v7  ;;  %v7892_v7 = vpack.c.bf16 %v82_v63, %v82_v63  ;;  %v6982_v63 = vld [vmem:[#allocation5 + $0x1224] ss:$16 sps:$4 sm:$0xff]  }
 0x10c   :  { %5007 = vmatpush1.bf16.msra.mxu0 %v6881_v10  ;;  %v7894_v10 = vpack.c.bf16 %v84_v1, %v84_v1  ;;  %v6977_v1 = vld [vmem:[#allocation5 + $0x1020] ss:$16 sps:$4 sm:$0xff]  }
 0x10d   :  { %5048 = vmatpush1.bf16.msra.mxu1 %v6884_v11  ;;  %5008 = vmatprep.subr.bf16.mxu0 %v6889_v12  ;;  %v89_v11 = vld [vmem:[#allocation3 + $0x98] sm:$0xff]  ;;  %v891_v12 = vrot.slane %v886_v62, %v890_v0 }
 0x10e   :  { %5049 = vmatprep.subr.bf16.mxu1 %v6892_v13  ;;  %v6944_v13 = vld [vmem:[#allocation5 + $0x12e0] ss:$16 sps:$4 sm:$0xff]  }
 0x110   :  { %5009 = vmatpush1.bf16.msra.mxu0 %v6887_v14  ;;  %v6949_v14 = vld [vmem:[#allocation5 + $0x10c4] ss:$16 sps:$4 sm:$0xff]  }
 0x111   :  { %5050 = vmatpush1.bf16.msra.mxu1 %v6890_v15  ;;  %5010 = vmatprep.subr.bf16.mxu0 %v6895_v16  ;;  %v6952_v15 = vld [vmem:[#allocation5 + $0x12c4] ss:$16 sps:$4 sm:$0xff]   ;;  %v895_v16 = vrot.slane %v886_v62, %v894_v5 }
 0x112   :  { %5051 = vmatprep.subr.bf16.mxu1 %v6898_v17  ;;  %v7900_v17 = vpack.c.bf16 %v87_v6, %v87_v6  ;;  %v6979_v62 = vld [vmem:[#allocation5 + $0x1024] ss:$16 sps:$4 sm:$0xff]   ;;  %v6983_v6 = vld [vmem:[#allocation5 + $0x1000] ss:$16 sps:$4 sm:$0xff]  }
 0x114   :  { %5011 = vmatpush2.bf16.msra.mxu0 %v6893_v18  ;;  %v7902_v18 = vpack.c.bf16 %v89_v11, %v89_v11  ;;  %v6986_v11 = vld [vmem:[#allocation5 + $0x1200] ss:$16 sps:$4 sm:$0xff]  }
 0x115   :  { %5052 = vmatpush2.bf16.msra.mxu1 %v6896_v19  ;;  %5012 = vmatprep.subr.bf16.mxu0 %v6901_v22 }
 0x116   :  { %5053 = vmatprep.subr.bf16.mxu1 %v6904_v23  ;;  %v6947_v23 = vld [vmem:[#allocation5 + $0x10c0] ss:$16 sps:$4 sm:$0xff]  }
 0x118   :  { %5013 = vmatpush2.bf16.msra.mxu0 %v6899_v24 }
 0x119   :  { %5054 = vmatpush2.bf16.msra.mxu1 %v6902_v25  ;;  %5014 = vmatprep.subr.bf16.mxu0 %v6907_v26  ;;  %v6950_v25 = vld [vmem:[#allocation5 + $0x12c0] ss:$16 sps:$4 sm:$0xff]  }
 0x11a   :  { %5055 = vmatprep.subr.bf16.mxu1 %v6910_v27 }
 0x11c   :  { %5015 = vmatpush2.bf16.msra.mxu0 %v6905_v28  ;;  %v6955_v28 = vld [vmem:[#allocation5 + $0x10a4] ss:$16 sps:$4 sm:$0xff]  }
 0x11d   :  { %5056 = vmatpush2.bf16.msra.mxu1 %v6908_v30  ;;  %5016 = vmatprep.subr.bf16.mxu0 %v6913_v31  ;;  %v6958_v30 = vld [vmem:[#allocation5 + $0x12a4] ss:$16 sps:$4 sm:$0xff]  }
 0x11e   :  { %5057 = vmatprep.subr.bf16.mxu1 %v6916_v33 }
 0x120   :  { %5017 = vmatpush2.bf16.msra.mxu0 %v6911_v34 }
 0x121   :  { %5058 = vmatpush2.bf16.msra.mxu1 %v6914_v35  ;;  %5018 = vmatprep.subr.bf16.mxu0 %v6919_v36  ;;  %v6953_v36 = vld [vmem:[#allocation5 + $0x10a0] ss:$16 sps:$4 sm:$0xff]  }
 0x122   :  { %5059 = vmatprep.subr.bf16.mxu1 %v6922_v38 }
 0x124   :  { %5019 = vmatpush2.bf16.msra.mxu0 %v6917_v39  ;;  %v6956_v39 = vld [vmem:[#allocation5 + $0x12a0] ss:$16 sps:$4 sm:$0xff]  }
 0x125   :  { %5060 = vmatpush2.bf16.msra.mxu1 %v6920_v41  ;;  %5020 = vmatprep.subr.bf16.mxu0 %v6925_v44 }
 0x126   :  { %5061 = vmatprep.subr.bf16.mxu1 %v6928_v45  ;;  %v6961_v45 = vld [vmem:[#allocation5 + $0x1084] ss:$16 sps:$4 sm:$0xff]  }
 0x128   :  { %5021 = vmatpush2.bf16.msra.mxu0 %v6923_v46  ;;  %v6964_v46 = vld [vmem:[#allocation5 + $0x1284] ss:$16 sps:$4 sm:$0xff]  }
 0x129   :  { %5062 = vmatpush2.bf16.msra.mxu1 %v6926_v47  ;;  %5022 = vmatprep.subr.bf16.mxu0 %v6931_v53  ;;  %v6959_v47 = vld [vmem:[#allocation5 + $0x1080] ss:$16 sps:$4 sm:$0xff]   ;;  %v6967_v53 = vld [vmem:[#allocation5 + $0x1064] ss:$16 sps:$4 sm:$0xff]  }
 0x12a   :  { %5063 = vmatprep.subr.bf16.mxu1 %v6934_v54  ;;  %v6970_v54 = vld [vmem:[#allocation5 + $0x1264] ss:$16 sps:$4 sm:$0xff]  }
 0x12c   :  { %5023 = vmatpush2.bf16.msra.mxu0 %v6929_v55  ;;  %v6965_v55 = vld [vmem:[#allocation5 + $0x1060] ss:$16 sps:$4 sm:$0xff]  }
 0x12d   :  { %5064 = vmatpush2.bf16.msra.mxu1 %v6932_v56  ;;  %5024 = vmatprep.subr.bf16.mxu0 %v6937_v58  ;;  %v6968_v56 = vld [vmem:[#allocation5 + $0x1260] ss:$16 sps:$4 sm:$0xff]   ;;  %v6973_v58 = vld [vmem:[#allocation5 + $0x1044] ss:$16 sps:$4 sm:$0xff]  }
 0x12e   :  { %5065 = vmatprep.subr.bf16.mxu1 %v6940_v59  ;;  %v6976_v59 = vld [vmem:[#allocation5 + $0x1244] ss:$16 sps:$4 sm:$0xff]  }
 0x130   :  { %5025 = vmatpush2.bf16.msra.mxu0 %v6935_v60  ;;  %v6971_v60 = vld [vmem:[#allocation5 + $0x1040] ss:$16 sps:$4 sm:$0xff]  }
 0x131   :  { %5066 = vmatpush2.bf16.msra.mxu1 %v6938_v61  ;;  %5076 = vmatprep.subr.bf16.mxu0 %v6943_v2  ;;  %v6974_v61 = vld [vmem:[#allocation5 + $0x1240] ss:$16 sps:$4 sm:$0xff]  }
 0x132   :  { %5117 = vmatprep.subr.bf16.mxu1 %v6946_v3  ;;  %v6980_v2 = vld [vmem:[#allocation5 + $0x1220] ss:$16 sps:$4 sm:$0xff]   ;;  %v6985_v3 = vld [vmem:[#allocation5 + $0x1004] ss:$16 sps:$4 sm:$0xff]  }
 0x133   :  { %v4782_v19 = vpop.f32.mrf.mxu0  ;;  %5027 = vmatmul.mubr.bf16.vlgmr.msra.gmra.mxu0 %v7892_v7 }
 0x134   :  { %v4823_v22 = vpop.f32.mrf.mxu1  ;;  %5068 = vmatmul.mubr.bf16.vlgmr.msra.gmra.mxu1 %v7894_v10  ;;  %v4783_v24 = vadd.f32 %v4782_v19, %v891_v12  ;;  %5077 = vmatpush1.bf16.msra.mxu0 %v6941_v4  ;;  %v6988_v4 = vld [vmem:[#allocation5 + $0x1204] ss:$16 sps:$4 sm:$0xff]  }
 0x135   :  { %5118 = vmatpush1.bf16.msra.mxu1 %v6944_v13  ;;  %v4784_v26 = vpop.f32.mrf.mxu0  ;;  %5078 = vmatprep.subr.bf16.mxu0 %v6949_v14  ;;  %v6991_v12 = vld [vmem:[#allocation5 + $0x11e4] ss:$16 sps:$4 sm:$0xff]   ;;  %v6989_v14 = vld [vmem:[#allocation5 + $0x11e0] ss:$16 sps:$4 sm:$0xff]  }
 0x136   :  { %v4825_v27 = vpop.f32.mrf.mxu1  ;;  %5119 = vmatprep.subr.bf16.mxu1 %v6952_v15  ;;  %v7906_v31 = vadd.f32 %v4823_v22, %v4783_v24  ;;  %v4785_v33 = vadd.f32 %v4784_v26, %v895_v16  ;;  %5108 = vmatprep.mubr.bf16.mxu0 %v7900_v17  ;;  %v6994_v13 = vld [vmem:[#allocation5 + $0x13e4] ss:$16 sps:$4 sm:$0xff]   ;;  %v6992_v15 = vld [vmem:[#allocation5 + $0x13e0] ss:$16 sps:$4 sm:$0xff]  }
 0x137   :  { %5149 = vmatprep.mubr.bf16.mxu1 %v7902_v18  ;;  %v4786_v34 = vpop.f32.mrf.mxu0  ;;  %v6997_v16 = vld [vmem:[#allocation5 + $0x11c4] ss:$16 sps:$4 sm:$0xff]   ;;  %v6995_v22 = vld [vmem:[#allocation5 + $0x11c0] ss:$16 sps:$4 sm:$0xff]  }
 0x138   :  { %v4827_v35 = vpop.f32.mrf.mxu1  ;;  %v7910_v38 = vadd.f32 %v4825_v27, %v4785_v33  ;;  %5079 = vmatpush1.bf16.msra.mxu0 %v6947_v23  ;;  %v7000_v19 = vld [vmem:[#allocation5 + $0x13c4] ss:$16 sps:$4 sm:$0xff]   ;;  %v6998_v23 = vld [vmem:[#allocation5 + $0x13c0] ss:$16 sps:$4 sm:$0xff]  }
 0x139   :  { %5120 = vmatpush1.bf16.msra.mxu1 %v6950_v25  ;;  %v4787_v41 = vpop.f32.mrf.mxu0  ;;  %5080 = vmatprep.subr.bf16.mxu0 %v6955_v28  ;;  %v7003_v24 = vld [vmem:[#allocation5 + $0x11a4] ss:$16 sps:$4 sm:$0xff]   ;;  %v7001_v26 = vld [vmem:[#allocation5 + $0x11a0] ss:$16 sps:$4 sm:$0xff]  }
 0x13a   :  { %v4828_v44 = vpop.f32.mrf.mxu1  ;;  %5121 = vmatprep.subr.bf16.mxu1 %v6958_v30  ;;  %v7006_v25 = vld [vmem:[#allocation5 + $0x13a4] ss:$16 sps:$4 sm:$0xff]   ;;  %v7004_v27 = vld [vmem:[#allocation5 + $0x13a0] ss:$16 sps:$4 sm:$0xff]  }
 0x13b   :  { %v7009_v28 = vld [vmem:[#allocation5 + $0x1184] ss:$16 sps:$4 sm:$0xff]   ;;  %v7007_v33 = vld [vmem:[#allocation5 + $0x1180] ss:$16 sps:$4 sm:$0xff]  }
 0x13c   :  { %5081 = vmatpush1.bf16.msra.mxu0 %v6953_v36  ;;  %v7012_v30 = vld [vmem:[#allocation5 + $0x1384] ss:$16 sps:$4 sm:$0xff]   ;;  %v7010_v34 = vld [vmem:[#allocation5 + $0x1380] ss:$16 sps:$4 sm:$0xff]  }
 0x13d   :  { %5122 = vmatpush1.bf16.msra.mxu1 %v6956_v39  ;;  %5082 = vmatprep.subr.bf16.mxu0 %v6961_v45  ;;  %v7015_v35 = vld [vmem:[#allocation5 + $0x1164] ss:$16 sps:$4 sm:$0xff]   ;;  %v7013_v39 = vld [vmem:[#allocation5 + $0x1160] ss:$16 sps:$4 sm:$0xff]  }
 0x13e   :  { %5123 = vmatprep.subr.bf16.mxu1 %v6964_v46  ;;  %v7018_v36 = vld [vmem:[#allocation5 + $0x1364] ss:$16 sps:$4 sm:$0xff]   ;;  %v7016_v41 = vld [vmem:[#allocation5 + $0x1360] ss:$16 sps:$4 sm:$0xff]  }
 0x13f   :  { %v7021_v44 = vld [vmem:[#allocation5 + $0x1144] ss:$16 sps:$4 sm:$0xff]   ;;  %v7019_v46 = vld [vmem:[#allocation5 + $0x1140] ss:$16 sps:$4 sm:$0xff]  }
 0x140   :  { %5083 = vmatpush1.bf16.msra.mxu0 %v6959_v47  ;;  %v7024_v45 = vld [vmem:[#allocation5 + $0x1344] ss:$16 sps:$4 sm:$0xff]   ;;  %v7022_v47 = vld [vmem:[#allocation5 + $0x1340] ss:$16 sps:$4 sm:$0xff]  }
 0x141   :  { %5124 = vmatpush1.bf16.msra.mxu1 %v6962_v51  ;;  %5084 = vmatprep.subr.bf16.mxu0 %v6967_v53  ;;  %v7027_v51 = vld [vmem:[#allocation5 + $0x1124] ss:$16 sps:$4 sm:$0xff]  }
 0x142   :  { %5125 = vmatprep.subr.bf16.mxu1 %v6970_v54  ;;  %v7030_v53 = vld [vmem:[#allocation5 + $0x1324] ss:$16 sps:$4 sm:$0xff]   ;;  %v7025_v54 = vld [vmem:[#allocation5 + $0x1120] ss:$16 sps:$4 sm:$0xff]  }
 0x144   :  { %5085 = vmatpush1.bf16.msra.mxu0 %v6965_v55  ;;  %v7028_v55 = vld [vmem:[#allocation5 + $0x1320] ss:$16 sps:$4 sm:$0xff]  }
 0x145   :  { %5126 = vmatpush1.bf16.msra.mxu1 %v6968_v56  ;;  %5086 = vmatprep.subr.bf16.mxu0 %v6973_v58  ;;  %v7033_v56 = vld [vmem:[#allocation5 + $0x1104] ss:$16 sps:$4 sm:$0xff]  }
 0x146   :  { %5127 = vmatprep.subr.bf16.mxu1 %v6976_v59  ;;  %v7036_v58 = vld [vmem:[#allocation5 + $0x1304] ss:$16 sps:$4 sm:$0xff]   ;;  %v7031_v59 = vld [vmem:[#allocation5 + $0x1100] ss:$16 sps:$4 sm:$0xff]  }
 0x148   :  { %5087 = vmatpush1.bf16.msra.mxu0 %v6971_v60  ;;  %v7034_v60 = vld [vmem:[#allocation5 + $0x1300] ss:$16 sps:$4 sm:$0xff]  }
 0x149   :  { %5128 = vmatpush1.bf16.msra.mxu1 %v6974_v61  ;;  %5088 = vmatprep.subr.bf16.mxu0 %v6979_v62  ;;  %v86_v61 = vld [vmem:[#allocation3 + $0x80] sm:$0xff]  ;;  %v88_v62 = vld [vmem:[#allocation3 + $0x90] sm:$0xff] }
 0x14a   :  { %5129 = vmatprep.subr.bf16.mxu1 %v6982_v63  ;;  %v7039_v63 = vld [vmem:[#allocation5 + $0x14e4] ss:$16 sps:$4 sm:$0xff]  }
 0x14c   :  { %5089 = vmatpush1.bf16.msra.mxu0 %v6977_v1  ;;  %v7042_v1 = vld [vmem:[#allocation5 + $0x16e4] ss:$16 sps:$4 sm:$0xff]  }
 0x14d   :  { %5130 = vmatpush1.bf16.msra.mxu1 %v6980_v2  ;;  %5090 = vmatprep.subr.bf16.mxu0 %v6985_v3  ;;  %v91_v2 = vld [vmem:[#allocation3 + $0xa8] sm:$0xff]  ;;  %v93_v3 = vld [vmem:[#allocation3 + $0xb8] sm:$0xff] }
 0x14e   :  { %5131 = vmatprep.subr.bf16.mxu1 %v6988_v4  ;;  %v7037_v4 = vld [vmem:[#allocation5 + $0x14e0] ss:$16 sps:$4 sm:$0xff]  }
 0x150   :  { %5091 = vmatpush1.bf16.msra.mxu0 %v6983_v6  ;;  %v7040_v6 = vld [vmem:[#allocation5 + $0x16e0] ss:$16 sps:$4 sm:$0xff]  }
 0x151   :  { %5132 = vmatpush1.bf16.msra.mxu1 %v6986_v11  ;;  %5092 = vmatprep.subr.bf16.mxu0 %v6991_v12  ;;  %v7912_v11 = vpack.c.bf16 %v86_v61, %v86_v61  ;;  %v7914_v12 = vpack.c.bf16 %v88_v62, %v88_v62  ;;  %v7070_v61 = vld [vmem:[#allocation5 + $0x1640] ss:$16 sps:$4 sm:$0xff]   ;;  %v7075_v62 = vld [vmem:[#allocation5 + $0x1424] ss:$16 sps:$4 sm:$0xff]  }
 0x152   :  { %5133 = vmatprep.subr.bf16.mxu1 %v6994_v13  ;;  %v7045_v13 = vld [vmem:[#allocation5 + $0x14c4] ss:$16 sps:$4 sm:$0xff]  }
 0x154   :  { %5093 = vmatpush2.bf16.msra.mxu0 %v6989_v14  ;;  %v7048_v14 = vld [vmem:[#allocation5 + $0x16c4] ss:$16 sps:$4 sm:$0xff]  }
 0x155   :  { %5134 = vmatpush2.bf16.msra.mxu1 %v6992_v15  ;;  %5094 = vmatprep.subr.bf16.mxu0 %v6997_v16  ;;  %v7043_v15 = vld [vmem:[#allocation5 + $0x14c0] ss:$16 sps:$4 sm:$0xff]  }
 0x156   :  { %5135 = vmatprep.subr.bf16.mxu1 %v7000_v19  ;;  %v7046_v16 = vld [vmem:[#allocation5 + $0x16c0] ss:$16 sps:$4 sm:$0xff]   ;;  %v7916_v19 = vpack.c.bf16 %v91_v2, %v91_v2 }
 0x157   :  { %v7076_v2 = vld [vmem:[#allocation5 + $0x1620] ss:$16 sps:$4 sm:$0xff]  }
 0x158   :  { %5095 = vmatpush2.bf16.msra.mxu0 %v6995_v22  ;;  %v7918_v22 = vpack.c.bf16 %v93_v3, %v93_v3  ;;  %v7081_v3 = vld [vmem:[#allocation5 + $0x1404] ss:$16 sps:$4 sm:$0xff]  }
 0x159   :  { %5136 = vmatpush2.bf16.msra.mxu1 %v6998_v23  ;;  %5096 = vmatprep.subr.bf16.mxu0 %v7003_v24 }
 0x15a   :  { %5137 = vmatprep.subr.bf16.mxu1 %v7006_v25 }
 0x15c   :  { %5097 = vmatpush2.bf16.msra.mxu0 %v7001_v26 }
 0x15d   :  { %5138 = vmatpush2.bf16.msra.mxu1 %v7004_v27  ;;  %5098 = vmatprep.subr.bf16.mxu0 %v7009_v28  ;;  %v7051_v28 = vld [vmem:[#allocation5 + $0x14a4] ss:$16 sps:$4 sm:$0xff]  }
 0x15e   :  { %5139 = vmatprep.subr.bf16.mxu1 %v7012_v30  ;;  %v7054_v30 = vld [vmem:[#allocation5 + $0x16a4] ss:$16 sps:$4 sm:$0xff]  }
 0x160   :  { %5099 = vmatpush2.bf16.msra.mxu0 %v7007_v33 }
 0x161   :  { %5140 = vmatpush2.bf16.msra.mxu1 %v7010_v34  ;;  %5100 = vmatprep.subr.bf16.mxu0 %v7015_v35  ;;  %v7049_v35 = vld [vmem:[#allocation5 + $0x14a0] ss:$16 sps:$4 sm:$0xff]  }
 0x162   :  { %5141 = vmatprep.subr.bf16.mxu1 %v7018_v36  ;;  %v7052_v36 = vld [vmem:[#allocation5 + $0x16a0] ss:$16 sps:$4 sm:$0xff]  }
 0x164   :  { %5101 = vmatpush2.bf16.msra.mxu0 %v7013_v39 }
 0x165   :  { %5142 = vmatpush2.bf16.msra.mxu1 %v7016_v41  ;;  %5102 = vmatprep.subr.bf16.mxu0 %v7021_v44 }
 0x166   :  { %5143 = vmatprep.subr.bf16.mxu1 %v7024_v45 }
 0x168   :  { %5103 = vmatpush2.bf16.msra.mxu0 %v7019_v46  ;;  %v7057_v46 = vld [vmem:[#allocation5 + $0x1484] ss:$16 sps:$4 sm:$0xff]  }
 0x169   :  { %5144 = vmatpush2.bf16.msra.mxu1 %v7022_v47  ;;  %5104 = vmatprep.subr.bf16.mxu0 %v7027_v51  ;;  %v7060_v47 = vld [vmem:[#allocation5 + $0x1684] ss:$16 sps:$4 sm:$0xff]   ;;  %v7058_v51 = vld [vmem:[#allocation5 + $0x1680] ss:$16 sps:$4 sm:$0xff]  }
 0x16a   :  { %5145 = vmatprep.subr.bf16.mxu1 %v7030_v53  ;;  %v7063_v53 = vld [vmem:[#allocation5 + $0x1464] ss:$16 sps:$4 sm:$0xff]  }
 0x16c   :  { %5105 = vmatpush2.bf16.msra.mxu0 %v7025_v54  ;;  %v7066_v54 = vld [vmem:[#allocation5 + $0x1664] ss:$16 sps:$4 sm:$0xff]  }
 0x16d   :  { %5146 = vmatpush2.bf16.msra.mxu1 %v7028_v55  ;;  %5106 = vmatprep.subr.bf16.mxu0 %v7033_v56  ;;  %v7061_v55 = vld [vmem:[#allocation5 + $0x1460] ss:$16 sps:$4 sm:$0xff]  }
 0x16e   :  { %5147 = vmatprep.subr.bf16.mxu1 %v7036_v58  ;;  %v7064_v56 = vld [vmem:[#allocation5 + $0x1660] ss:$16 sps:$4 sm:$0xff]   ;;  %v7069_v58 = vld [vmem:[#allocation5 + $0x1444] ss:$16 sps:$4 sm:$0xff]  }
 0x170   :  { %5107 = vmatpush2.bf16.msra.mxu0 %v7031_v59  ;;  %v7072_v59 = vld [vmem:[#allocation5 + $0x1644] ss:$16 sps:$4 sm:$0xff]  }
 0x171   :  { %5148 = vmatpush2.bf16.msra.mxu1 %v7034_v60  ;;  %5158 = vmatprep.subr.bf16.mxu0 %v7039_v63  ;;  %v7067_v60 = vld [vmem:[#allocation5 + $0x1440] ss:$16 sps:$4 sm:$0xff]   ;;  %v7078_v63 = vld [vmem:[#allocation5 + $0x1624] ss:$16 sps:$4 sm:$0xff]  }
 0x172   :  { %5199 = vmatprep.subr.bf16.mxu1 %v7042_v1  ;;  %v7073_v1 = vld [vmem:[#allocation5 + $0x1420] ss:$16 sps:$4 sm:$0xff]  }
 0x173   :  { %v4864_v23 = vpop.f32.mrf.mxu0  ;;  %5109 = vmatmul.mubr.bf16.vlgmr.msra.gmra.mxu0 %v7912_v11 }
 0x174   :  { %v4905_v24 = vpop.f32.mrf.mxu1  ;;  %5150 = vmatmul.mubr.bf16.vlgmr.msra.gmra.mxu1 %v7914_v12  ;;  %v4865_v25 = vadd.f32 %v4864_v23, %v7906_v31  ;;  %5159 = vmatpush1.bf16.msra.mxu0 %v7037_v4  ;;  %v7084_v4 = vld [vmem:[#allocation5 + $0x1604] ss:$16 sps:$4 sm:$0xff]   ;;  %v7088_v23 = vld [vmem:[#allocation5 + $0x17e0] ss:$16 sps:$4 sm:$0xff]  }
 0x175   :  { %5200 = vmatpush1.bf16.msra.mxu1 %v7040_v6  ;;  %v4866_v26 = vpop.f32.mrf.mxu0  ;;  %5160 = vmatprep.subr.bf16.mxu0 %v7045_v13  ;;  %v7079_v6 = vld [vmem:[#allocation5 + $0x1400] ss:$16 sps:$4 sm:$0xff]  }
 0x176   :  { %v4907_v27 = vpop.f32.mrf.mxu1  ;;  %5201 = vmatprep.subr.bf16.mxu1 %v7048_v14  ;;  %v7923_v33 = vadd.f32 %v4905_v24, %v4865_v25  ;;  %v4867_v34 = vadd.f32 %v4866_v26, %v7910_v38  ;;  %5190 = vmatprep.mubr.bf16.mxu0 %v7916_v19  ;;  %v7055_v38 = vld [vmem:[#allocation5 + $0x1480] ss:$16 sps:$4 sm:$0xff]   ;;  %v7087_v14 = vld [vmem:[#allocation5 + $0x15e4] ss:$16 sps:$4 sm:$0xff]  }
 0x177   :  { %5231 = vmatprep.mubr.bf16.mxu1 %v7918_v22  ;;  %v4868_v39 = vpop.f32.mrf.mxu0  ;;  %v7082_v13 = vld [vmem:[#allocation5 + $0x1600] ss:$16 sps:$4 sm:$0xff]   ;;  %v7093_v24 = vld [vmem:[#allocation5 + $0x15c4] ss:$16 sps:$4 sm:$0xff]  }
 0x178   :  { %v4909_v31 = vpop.f32.mrf.mxu1  ;;  %v7928_v41 = vadd.f32 %v4907_v27, %v4867_v34  ;;  %5161 = vmatpush1.bf16.msra.mxu0 %v7043_v15  ;;  %v7090_v15 = vld [vmem:[#allocation5 + $0x17e4] ss:$16 sps:$4 sm:$0xff]   ;;  %v7091_v26 = vld [vmem:[#allocation5 + $0x15c0] ss:$16 sps:$4 sm:$0xff]  }
 0x179   :  { %5202 = vmatpush1.bf16.msra.mxu1 %v7046_v16  ;;  %v4869_v44 = vpop.f32.mrf.mxu0  ;;  %5162 = vmatprep.subr.bf16.mxu0 %v7051_v28  ;;  %v7085_v16 = vld [vmem:[#allocation5 + $0x15e0] ss:$16 sps:$4 sm:$0xff]   ;;  %v7096_v25 = vld [vmem:[#allocation5 + $0x17c4] ss:$16 sps:$4 sm:$0xff]  }
 0x17a   :  { %v4910_v45 = vpop.f32.mrf.mxu1  ;;  %5203 = vmatprep.subr.bf16.mxu1 %v7054_v30  ;;  %v7094_v27 = vld [vmem:[#allocation5 + $0x17c0] ss:$16 sps:$4 sm:$0xff]   ;;  %v7099_v28 = vld [vmem:[#allocation5 + $0x15a4] ss:$16 sps:$4 sm:$0xff]  }
 0x17b   :  { %v7102_v30 = vld [vmem:[#allocation5 + $0x17a4] ss:$16 sps:$4 sm:$0xff]   ;;  %v7097_v34 = vld [vmem:[#allocation5 + $0x15a0] ss:$16 sps:$4 sm:$0xff]  }
 0x17c   :  { %5163 = vmatpush1.bf16.msra.mxu0 %v7049_v35  ;;  %v7100_v35 = vld [vmem:[#allocation5 + $0x17a0] ss:$16 sps:$4 sm:$0xff]   ;;  %v7108_v39 = vld [vmem:[#allocation5 + $0x1784] ss:$16 sps:$4 sm:$0xff]  }
 0x17d   :  { %5204 = vmatpush1.bf16.msra.mxu1 %v7052_v36  ;;  %5164 = vmatprep.subr.bf16.mxu0 %v7057_v46  ;;  %v7105_v36 = vld [vmem:[#allocation5 + $0x1584] ss:$16 sps:$4 sm:$0xff]   ;;  %v7103_v31 = vld [vmem:[#allocation5 + $0x1580] ss:$16 sps:$4 sm:$0xff]  }
 0x17e   :  { %5205 = vmatprep.subr.bf16.mxu1 %v7060_v47  ;;  %v7106_v44 = vld [vmem:[#allocation5 + $0x1780] ss:$16 sps:$4 sm:$0xff]   ;;  %v7111_v45 = vld [vmem:[#allocation5 + $0x1564] ss:$16 sps:$4 sm:$0xff]  }
 0x17f   :  { %v7114_v46 = vld [vmem:[#allocation5 + $0x1764] ss:$16 sps:$4 sm:$0xff]   ;;  %v7109_v47 = vld [vmem:[#allocation5 + $0x1560] ss:$16 sps:$4 sm:$0xff]  }
 0x180   :  { %5165 = vmatpush1.bf16.msra.mxu0 %v7055_v38  ;;  %v7112_v38 = vld [vmem:[#allocation5 + $0x1760] ss:$16 sps:$4 sm:$0xff]  }
 0x181   :  { %5206 = vmatpush1.bf16.msra.mxu1 %v7058_v51  ;;  %5166 = vmatprep.subr.bf16.mxu0 %v7063_v53  ;;  %v7117_v51 = vld [vmem:[#allocation5 + $0x1544] ss:$16 sps:$4 sm:$0xff]  }
 0x182   :  { %5207 = vmatprep.subr.bf16.mxu1 %v7066_v54  ;;  %v7120_v53 = vld [vmem:[#allocation5 + $0x1744] ss:$16 sps:$4 sm:$0xff]   ;;  %v7115_v54 = vld [vmem:[#allocation5 + $0x1540] ss:$16 sps:$4 sm:$0xff]  }
 0x184   :  { %5167 = vmatpush1.bf16.msra.mxu0 %v7061_v55  ;;  %v7118_v55 = vld [vmem:[#allocation5 + $0x1740] ss:$16 sps:$4 sm:$0xff]  }
 0x185   :  { %5208 = vmatpush1.bf16.msra.mxu1 %v7064_v56  ;;  %5168 = vmatprep.subr.bf16.mxu0 %v7069_v58  ;;  %v7123_v56 = vld [vmem:[#allocation5 + $0x1524] ss:$16 sps:$4 sm:$0xff]  }
 0x186   :  { %5209 = vmatprep.subr.bf16.mxu1 %v7072_v59  ;;  %v7126_v58 = vld [vmem:[#allocation5 + $0x1724] ss:$16 sps:$4 sm:$0xff]   ;;  %v7121_v59 = vld [vmem:[#allocation5 + $0x1520] ss:$16 sps:$4 sm:$0xff]  }
 0x188   :  { %5169 = vmatpush1.bf16.msra.mxu0 %v7067_v60  ;;  %v7124_v60 = vld [vmem:[#allocation5 + $0x1720] ss:$16 sps:$4 sm:$0xff]  }
 0x189   :  { %5210 = vmatpush1.bf16.msra.mxu1 %v7070_v61  ;;  %5170 = vmatprep.subr.bf16.mxu0 %v7075_v62  ;;  %v7129_v61 = vld [vmem:[#allocation5 + $0x1504] ss:$16 sps:$4 sm:$0xff]  }
 0x18a   :  { %5211 = vmatprep.subr.bf16.mxu1 %v7078_v63  ;;  %v7132_v62 = vld [vmem:[#allocation5 + $0x1704] ss:$16 sps:$4 sm:$0xff]   ;;  %v7127_v63 = vld [vmem:[#allocation5 + $0x1500] ss:$16 sps:$4 sm:$0xff]  }
 0x18c   :  { %5171 = vmatpush1.bf16.msra.mxu0 %v7073_v1  ;;  %v7130_v1 = vld [vmem:[#allocation5 + $0x1700] ss:$16 sps:$4 sm:$0xff]  }
 0x18d   :  { %5212 = vmatpush1.bf16.msra.mxu1 %v7076_v2  ;;  %5172 = vmatprep.subr.bf16.mxu0 %v7081_v3  ;;  %v90_v2 = vld [vmem:[#allocation3 + $0xa0] sm:$0xff]  ;;  %v92_v3 = vld [vmem:[#allocation3 + $0xb0] sm:$0xff] }
 0x18e   :  { %5213 = vmatprep.subr.bf16.mxu1 %v7084_v4  ;;  %v7135_v4 = vld [vmem:[#allocation5 + $0xec] ss:$16 sps:$4 sm:$0xff]  }
 0x190   :  { %5173 = vmatpush1.bf16.msra.mxu0 %v7079_v6  ;;  %v7138_v6 = vld [vmem:[#allocation5 + $0x2ec] ss:$16 sps:$4 sm:$0xff]  }
 0x191   :  { %5214 = vmatpush1.bf16.msra.mxu1 %v7082_v13  ;;  %5174 = vmatprep.subr.bf16.mxu0 %v7087_v14  ;;  %v7133_v13 = vld [vmem:[#allocation5 + $0xe8] ss:$16 sps:$4 sm:$0xff]  }
 0x192   :  { %5215 = vmatprep.subr.bf16.mxu1 %v7090_v15  ;;  %v7136_v14 = vld [vmem:[#allocation5 + $0x2e8] ss:$16 sps:$4 sm:$0xff]   ;;  %v7930_v15 = vpack.c.bf16 %v90_v2, %v90_v2  ;;  %v7174_v2 = vld [vmem:[#allocation5 + $0x22c] ss:$16 sps:$4 sm:$0xff]  }
 0x194   :  { %5175 = vmatpush2.bf16.msra.mxu0 %v7085_v16  ;;  %v7932_v16 = vpack.c.bf16 %v92_v3, %v92_v3  ;;  %v7169_v3 = vld [vmem:[#allocation5 + $0x28] ss:$16 sps:$4 sm:$0xff]  }
 0x195   :  { %5216 = vmatpush2.bf16.msra.mxu1 %v7088_v23  ;;  %5176 = vmatprep.subr.bf16.mxu0 %v7093_v24  ;;  %v7141_v23 = vld [vmem:[#allocation5 + $0xcc] ss:$16 sps:$4 sm:$0xff]  }
 0x196   :  { %5217 = vmatprep.subr.bf16.mxu1 %v7096_v25  ;;  %v7144_v24 = vld [vmem:[#allocation5 + $0x2cc] ss:$16 sps:$4 sm:$0xff]   ;;  %v7139_v25 = vld [vmem:[#allocation5 + $0xc8] ss:$16 sps:$4 sm:$0xff]  }
 0x198   :  { %5177 = vmatpush2.bf16.msra.mxu0 %v7091_v26  ;;  %v7142_v26 = vld [vmem:[#allocation5 + $0x2c8] ss:$16 sps:$4 sm:$0xff]  }
 0x199   :  { %5218 = vmatpush2.bf16.msra.mxu1 %v7094_v27  ;;  %5178 = vmatprep.subr.bf16.mxu0 %v7099_v28 }
 0x19a   :  { %5219 = vmatprep.subr.bf16.mxu1 %v7102_v30 }
 0x19c   :  { %5179 = vmatpush2.bf16.msra.mxu0 %v7097_v34 }
 0x19d   :  { %5220 = vmatpush2.bf16.msra.mxu1 %v7100_v35  ;;  %5180 = vmatprep.subr.bf16.mxu0 %v7105_v36  ;;  %v7147_v36 = vld [vmem:[#allocation5 + $0xac] ss:$16 sps:$4 sm:$0xff]  }
 0x19e   :  { %5221 = vmatprep.subr.bf16.mxu1 %v7108_v39  ;;  %v7150_v39 = vld [vmem:[#allocation5 + $0x2ac] ss:$16 sps:$4 sm:$0xff]  }
 0x1a0   :  { %5181 = vmatpush2.bf16.msra.mxu0 %v7103_v31 }
 0x1a1   :  { %5222 = vmatpush2.bf16.msra.mxu1 %v7106_v44  ;;  %5182 = vmatprep.subr.bf16.mxu0 %v7111_v45  ;;  %v7145_v45 = vld [vmem:[#allocation5 + $0xa8] ss:$16 sps:$4 sm:$0xff]  }
 0x1a2   :  { %5223 = vmatprep.subr.bf16.mxu1 %v7114_v46  ;;  %v7148_v46 = vld [vmem:[#allocation5 + $0x2a8] ss:$16 sps:$4 sm:$0xff]  }
 0x1a4   :  { %5183 = vmatpush2.bf16.msra.mxu0 %v7109_v47 }
 0x1a5   :  { %5224 = vmatpush2.bf16.msra.mxu1 %v7112_v38  ;;  %5184 = vmatprep.subr.bf16.mxu0 %v7117_v51 }
 0x1a6   :  { %5225 = vmatprep.subr.bf16.mxu1 %v7120_v53 }
 0x1a8   :  { %5185 = vmatpush2.bf16.msra.mxu0 %v7115_v54  ;;  %v7153_v54 = vld [vmem:[#allocation5 + $0x8c] ss:$16 sps:$4 sm:$0xff]  }
 0x1a9   :  { %5226 = vmatpush2.bf16.msra.mxu1 %v7118_v55  ;;  %5186 = vmatprep.subr.bf16.mxu0 %v7123_v56  ;;  %v7156_v55 = vld [vmem:[#allocation5 + $0x28c] ss:$16 sps:$4 sm:$0xff]   ;;  %v7154_v56 = vld [vmem:[#allocation5 + $0x288] ss:$16 sps:$4 sm:$0xff]  }
 0x1aa   :  { %5227 = vmatprep.subr.bf16.mxu1 %v7126_v58  ;;  %v7157_v58 = vld [vmem:[#allocation5 + $0x68] ss:$16 sps:$4 sm:$0xff]  }
 0x1ac   :  { %5187 = vmatpush2.bf16.msra.mxu0 %v7121_v59  ;;  %v7160_v59 = vld [vmem:[#allocation5 + $0x268] ss:$16 sps:$4 sm:$0xff]  }
 0x1ad   :  { %5228 = vmatpush2.bf16.msra.mxu1 %v7124_v60  ;;  %5188 = vmatprep.subr.bf16.mxu0 %v7129_v61  ;;  %v7165_v60 = vld [vmem:[#allocation5 + $0x4c] ss:$16 sps:$4 sm:$0xff]  }
 0x1ae   :  { %5229 = vmatprep.subr.bf16.mxu1 %v7132_v62  ;;  %v7168_v61 = vld [vmem:[#allocation5 + $0x24c] ss:$16 sps:$4 sm:$0xff]   ;;  %v7163_v62 = vld [vmem:[#allocation5 + $0x48] ss:$16 sps:$4 sm:$0xff]  }
 0x1b0   :  { %5189 = vmatpush2.bf16.msra.mxu0 %v7127_v63  ;;  %v7166_v63 = vld [vmem:[#allocation5 + $0x248] ss:$16 sps:$4 sm:$0xff]  }
 0x1b1   :  { %5230 = vmatpush2.bf16.msra.mxu1 %v7130_v1  ;;  %5240 = vmatprep.subr.bf16.mxu0 %v7135_v4  ;;  %v7171_v1 = vld [vmem:[#allocation5 + $0x2c] ss:$16 sps:$4 sm:$0xff]   ;;  %v7172_v4 = vld [vmem:[#allocation5 + $0x228] ss:$16 sps:$4 sm:$0xff]  }
 0x1b2   :  { %5281 = vmatprep.subr.bf16.mxu1 %v7138_v6  ;;  %v7177_v6 = vld [vmem:[#allocation5 + $0xc] ss:$16 sps:$4 sm:$0xff]  }
 0x1b3   :  { %v4946_v27 = vpop.f32.mrf.mxu0  ;;  %5191 = vmatmul.mubr.bf16.vlgmr.msra.gmra.mxu0 %v7930_v15 }
 0x1b4   :  { %v4987_v28 = vpop.f32.mrf.mxu1  ;;  %5232 = vmatmul.mubr.bf16.vlgmr.msra.gmra.mxu1 %v7932_v16  ;;  %v4947_v30 = vadd.f32 %v4946_v27, %v7923_v33  ;;  %5241 = vmatpush1.bf16.msra.mxu0 %v7133_v13  ;;  %v7180_v13 = vld [vmem:[#allocation5 + $0x20c] ss:$16 sps:$4 sm:$0xff]   ;;  %v7184_v27 = vld [vmem:[#allocation5 + $0x3e8] ss:$16 sps:$4 sm:$0xff]  }
 0x1b5   :  { %5282 = vmatpush1.bf16.msra.mxu1 %v7136_v14  ;;  %v4948_v34 = vpop.f32.mrf.mxu0  ;;  %5242 = vmatprep.subr.bf16.mxu0 %v7141_v23  ;;  %v7175_v14 = vld [vmem:[#allocation5 + $0x8] ss:$16 sps:$4 sm:$0xff]  }
 0x1b6   :  { %v4989_v35 = vpop.f32.mrf.mxu1  ;;  %5283 = vmatprep.subr.bf16.mxu1 %v7144_v24  ;;  %v7937_v31 = vadd.f32 %v4987_v28, %v4947_v30  ;;  %v4949_v44 = vadd.f32 %v4948_v34, %v7928_v41  ;;  %5272 = vmatprep.mubr.bf16.mxu0 %v7846_v49  ;;  %v7151_v41 = vld [vmem:[#allocation5 + $0x88] ss:$16 sps:$4 sm:$0xff]   ;;  %v7159_v49 = vld [vmem:[#allocation5 + $0x6c] ss:$16 sps:$4 sm:$0xff]  }
 0x1b7   :  { %5313 = vmatprep.mubr.bf16.mxu1 %v7848_v52  ;;  %v4950_v47 = vpop.f32.mrf.mxu0  ;;  %v7162_v52 = vld [vmem:[#allocation5 + $0x26c] ss:$16 sps:$4 sm:$0xff]   ;;  %v7178_v23 = vld [vmem:[#allocation5 + $0x208] ss:$16 sps:$4 sm:$0xff]  }
 0x1b8   :  { %v4991_v33 = vpop.f32.mrf.mxu1  ;;  %v7942_v38 = vadd.f32 %v4989_v35, %v4949_v44  ;;  %5243 = vmatpush1.bf16.msra.mxu0 %v7139_v25  ;;  %v7183_v24 = vld [vmem:[#allocation5 + $0x1ec] ss:$16 sps:$4 sm:$0xff]   ;;  %v7187_v34 = vld [vmem:[#allocation5 + $0x1c8] ss:$16 sps:$4 sm:$0xff]  }
 0x1b9   :  { %5284 = vmatpush1.bf16.msra.mxu1 %v7142_v26  ;;  %v4951_v51 = vpop.f32.mrf.mxu0  ;;  %5244 = vmatprep.subr.bf16.mxu0 %v7147_v36  ;;  %v7186_v25 = vld [vmem:[#allocation5 + $0x3ec] ss:$16 sps:$4 sm:$0xff]   ;;  %v7181_v26 = vld [vmem:[#allocation5 + $0x1e8] ss:$16 sps:$4 sm:$0xff]  }
 0x1ba   :  { %v4992_v53 = vpop.f32.mrf.mxu1  ;;  %5285 = vmatprep.subr.bf16.mxu1 %v7150_v39  ;;  %v7189_v28 = vld [vmem:[#allocation5 + $0x1cc] ss:$16 sps:$4 sm:$0xff]   ;;  %v7190_v35 = vld [vmem:[#allocation5 + $0x3c8] ss:$16 sps:$4 sm:$0xff]  }
 0x1bb   :  { %v7192_v30 = vld [vmem:[#allocation5 + $0x3cc] ss:$16 sps:$4 sm:$0xff]   ;;  %v7193_v44 = vld [vmem:[#allocation5 + $0x1a8] ss:$16 sps:$4 sm:$0xff]  }
 0x1bc   :  { %5245 = vmatpush1.bf16.msra.mxu0 %v7145_v45  ;;  %v7195_v36 = vld [vmem:[#allocation5 + $0x1ac] ss:$16 sps:$4 sm:$0xff]   ;;  %v7196_v45 = vld [vmem:[#allocation5 + $0x3a8] ss:$16 sps:$4 sm:$0xff]  }
 0x1bd   :  { %5286 = vmatpush1.bf16.msra.mxu1 %v7148_v46  ;;  %5246 = vmatprep.subr.bf16.mxu0 %v7153_v54  ;;  %v7198_v39 = vld [vmem:[#allocation5 + $0x3ac] ss:$16 sps:$4 sm:$0xff]   ;;  %v7199_v33 = vld [vmem:[#allocation5 + $0x188] ss:$16 sps:$4 sm:$0xff]  }
 0x1be   :  { %5287 = vmatprep.subr.bf16.mxu1 %v7156_v55  ;;  %v7201_v46 = vld [vmem:[#allocation5 + $0x18c] ss:$16 sps:$4 sm:$0xff]   ;;  %v7202_v51 = vld [vmem:[#allocation5 + $0x388] ss:$16 sps:$4 sm:$0xff]  }
 0x1bf   :  { %v7204_v47 = vld [vmem:[#allocation5 + $0x38c] ss:$16 sps:$4 sm:$0xff]   ;;  %v7205_v55 = vld [vmem:[#allocation5 + $0x168] ss:$16 sps:$4 sm:$0xff]  }
 0x1c0   :  { %5247 = vmatpush1.bf16.msra.mxu0 %v7151_v41  ;;  %v7207_v53 = vld [vmem:[#allocation5 + $0x16c] ss:$16 sps:$4 sm:$0xff]   ;;  %v7208_v41 = vld [vmem:[#allocation5 + $0x368] ss:$16 sps:$4 sm:$0xff]  }
 0x1c1   :  { %5288 = vmatpush1.bf16.msra.mxu1 %v7154_v56  ;;  %5248 = vmatprep.subr.bf16.mxu0 %v7159_v49  ;;  %v7210_v54 = vld [vmem:[#allocation5 + $0x36c] ss:$16 sps:$4 sm:$0xff]  }
 0x1c2   :  { %5289 = vmatprep.subr.bf16.mxu1 %v7162_v52  ;;  %v7213_v56 = vld [vmem:[#allocation5 + $0x14c] ss:$16 sps:$4 sm:$0xff]   ;;  %v7211_v52 = vld [vmem:[#allocation5 + $0x148] ss:$16 sps:$4 sm:$0xff]  }
 0x1c3   :  { %v7216_v49 = vld [vmem:[#allocation5 + $0x34c] ss:$16 sps:$4 sm:$0xff]  }
 0x1c4   :  { %5249 = vmatpush1.bf16.msra.mxu0 %v7157_v58  ;;  %v7214_v58 = vld [vmem:[#allocation5 + $0x348] ss:$16 sps:$4 sm:$0xff]  }
 0x1c5   :  { %5290 = vmatpush1.bf16.msra.mxu1 %v7160_v59  ;;  %5250 = vmatprep.subr.bf16.mxu0 %v7165_v60  ;;  %v7219_v59 = vld [vmem:[#allocation5 + $0x12c] ss:$16 sps:$4 sm:$0xff]  }
 0x1c6   :  { %5291 = vmatprep.subr.bf16.mxu1 %v7168_v61  ;;  %v7222_v60 = vld [vmem:[#allocation5 + $0x32c] ss:$16 sps:$4 sm:$0xff]   ;;  %v7217_v61 = vld [vmem:[#allocation5 + $0x128] ss:$16 sps:$4 sm:$0xff]  }
 0x1c8   :  { %5251 = vmatpush1.bf16.msra.mxu0 %v7163_v62  ;;  %v7220_v62 = vld [vmem:[#allocation5 + $0x328] ss:$16 sps:$4 sm:$0xff]  }
 0x1c9   :  { %5292 = vmatpush1.bf16.msra.mxu1 %v7166_v63  ;;  %5252 = vmatprep.subr.bf16.mxu0 %v7171_v1  ;;  %v7225_v63 = vld [vmem:[#allocation5 + $0x10c] ss:$16 sps:$4 sm:$0xff]  }
 0x1ca   :  { %5293 = vmatprep.subr.bf16.mxu1 %v7174_v2  ;;  %v7228_v1 = vld [vmem:[#allocation5 + $0x30c] ss:$16 sps:$4 sm:$0xff]   ;;  %v7223_v2 = vld [vmem:[#allocation5 + $0x108] ss:$16 sps:$4 sm:$0xff]  }
 0x1cc   :  { %5253 = vmatpush1.bf16.msra.mxu0 %v7169_v3  ;;  %v7226_v3 = vld [vmem:[#allocation5 + $0x308] ss:$16 sps:$4 sm:$0xff]  }
 0x1cd   :  { %5294 = vmatpush1.bf16.msra.mxu1 %v7172_v4  ;;  %5254 = vmatprep.subr.bf16.mxu0 %v7177_v6  ;;  %v7231_v4 = vld [vmem:[#allocation5 + $0x4ec] ss:$16 sps:$4 sm:$0xff]  }
 0x1ce   :  { %5295 = vmatprep.subr.bf16.mxu1 %v7180_v13  ;;  %v7234_v6 = vld [vmem:[#allocation5 + $0x6ec] ss:$16 sps:$4 sm:$0xff]   ;;  %v7229_v13 = vld [vmem:[#allocation5 + $0x4e8] ss:$16 sps:$4 sm:$0xff]  }
 0x1d0   :  { %5255 = vmatpush1.bf16.msra.mxu0 %v7175_v14  ;;  %v7232_v14 = vld [vmem:[#allocation5 + $0x6e8] ss:$16 sps:$4 sm:$0xff]  }
 0x1d1   :  { %5296 = vmatpush1.bf16.msra.mxu1 %v7178_v23  ;;  %5256 = vmatprep.subr.bf16.mxu0 %v7183_v24  ;;  %v7237_v23 = vld [vmem:[#allocation5 + $0x4cc] ss:$16 sps:$4 sm:$0xff]  }
 0x1d2   :  { %5297 = vmatprep.subr.bf16.mxu1 %v7186_v25  ;;  %v7240_v24 = vld [vmem:[#allocation5 + $0x6cc] ss:$16 sps:$4 sm:$0xff]   ;;  %v7235_v25 = vld [vmem:[#allocation5 + $0x4c8] ss:$16 sps:$4 sm:$0xff]  }
 0x1d4   :  { %5257 = vmatpush2.bf16.msra.mxu0 %v7181_v26  ;;  %v7238_v26 = vld [vmem:[#allocation5 + $0x6c8] ss:$16 sps:$4 sm:$0xff]  }
 0x1d5   :  { %5298 = vmatpush2.bf16.msra.mxu1 %v7184_v27  ;;  %5258 = vmatprep.subr.bf16.mxu0 %v7189_v28 }
 0x1d6   :  { %5299 = vmatprep.subr.bf16.mxu1 %v7192_v30 }
 0x1d8   :  { %5259 = vmatpush2.bf16.msra.mxu0 %v7187_v34 }
 0x1d9   :  { %5300 = vmatpush2.bf16.msra.mxu1 %v7190_v35  ;;  %5260 = vmatprep.subr.bf16.mxu0 %v7195_v36  ;;  %v7243_v36 = vld [vmem:[#allocation5 + $0x4ac] ss:$16 sps:$4 sm:$0xff]  }
 0x1da   :  { %5301 = vmatprep.subr.bf16.mxu1 %v7198_v39  ;;  %v7246_v39 = vld [vmem:[#allocation5 + $0x6ac] ss:$16 sps:$4 sm:$0xff]  }
 0x1dc   :  { %5261 = vmatpush2.bf16.msra.mxu0 %v7193_v44 }
 0x1dd   :  { %5302 = vmatpush2.bf16.msra.mxu1 %v7196_v45  ;;  %5262 = vmatprep.subr.bf16.mxu0 %v7201_v46  ;;  %v7241_v46 = vld [vmem:[#allocation5 + $0x4a8] ss:$16 sps:$4 sm:$0xff]  }
 0x1de   :  { %5303 = vmatprep.subr.bf16.mxu1 %v7204_v47 }
 0x1e0   :  { %5263 = vmatpush2.bf16.msra.mxu0 %v7199_v33 }
 0x1e1   :  { %5304 = vmatpush2.bf16.msra.mxu1 %v7202_v51  ;;  %5264 = vmatprep.subr.bf16.mxu0 %v7207_v53  ;;  %v7249_v53 = vld [vmem:[#allocation5 + $0x48c] ss:$16 sps:$4 sm:$0xff]  }
 0x1e2   :  { %5305 = vmatprep.subr.bf16.mxu1 %v7210_v54  ;;  %v7252_v54 = vld [vmem:[#allocation5 + $0x68c] ss:$16 sps:$4 sm:$0xff]  }
 0x1e4   :  { %5265 = vmatpush2.bf16.msra.mxu0 %v7205_v55  ;;  %v7250_v55 = vld [vmem:[#allocation5 + $0x688] ss:$16 sps:$4 sm:$0xff]  }
 0x1e5   :  { %5306 = vmatpush2.bf16.msra.mxu1 %v7208_v41  ;;  %5266 = vmatprep.subr.bf16.mxu0 %v7213_v56  ;;  %v7253_v41 = vld [vmem:[#allocation5 + $0x468] ss:$16 sps:$4 sm:$0xff]  }
 0x1e6   :  { %5307 = vmatprep.subr.bf16.mxu1 %v7216_v49  ;;  %v7256_v56 = vld [vmem:[#allocation5 + $0x668] ss:$16 sps:$4 sm:$0xff]   ;;  %v7261_v49 = vld [vmem:[#allocation5 + $0x44c] ss:$16 sps:$4 sm:$0xff]  }
 0x1e8   :  { %5267 = vmatpush2.bf16.msra.mxu0 %v7211_v52  ;;  %v7264_v52 = vld [vmem:[#allocation5 + $0x64c] ss:$16 sps:$4 sm:$0xff]  }
 0x1e9   :  { %5308 = vmatpush2.bf16.msra.mxu1 %v7214_v58  ;;  %5268 = vmatprep.subr.bf16.mxu0 %v7219_v59  ;;  %v7259_v58 = vld [vmem:[#allocation5 + $0x448] ss:$16 sps:$4 sm:$0xff]  }
 0x1ea   :  { %5309 = vmatprep.subr.bf16.mxu1 %v7222_v60  ;;  %v7262_v59 = vld [vmem:[#allocation5 + $0x648] ss:$16 sps:$4 sm:$0xff]   ;;  %v7267_v60 = vld [vmem:[#allocation5 + $0x42c] ss:$16 sps:$4 sm:$0xff]  }
 0x1ec   :  { %5269 = vmatpush2.bf16.msra.mxu0 %v7217_v61  ;;  %v7270_v61 = vld [vmem:[#allocation5 + $0x62c] ss:$16 sps:$4 sm:$0xff]  }
 0x1ed   :  { %5310 = vmatpush2.bf16.msra.mxu1 %v7220_v62  ;;  %5270 = vmatprep.subr.bf16.mxu0 %v7225_v63  ;;  %v7265_v62 = vld [vmem:[#allocation5 + $0x428] ss:$16 sps:$4 sm:$0xff]  }
 0x1ee   :  { %5311 = vmatprep.subr.bf16.mxu1 %v7228_v1  ;;  %v7268_v63 = vld [vmem:[#allocation5 + $0x628] ss:$16 sps:$4 sm:$0xff]   ;;  %v7273_v1 = vld [vmem:[#allocation5 + $0x40c] ss:$16 sps:$4 sm:$0xff]  }
 0x1f0   :  { %5271 = vmatpush2.bf16.msra.mxu0 %v7223_v2  ;;  %v7276_v2 = vld [vmem:[#allocation5 + $0x60c] ss:$16 sps:$4 sm:$0xff]  }
 0x1f1   :  { %5312 = vmatpush2.bf16.msra.mxu1 %v7226_v3  ;;  %5322 = vmatprep.subr.bf16.mxu0 %v7231_v4  ;;  %v7271_v3 = vld [vmem:[#allocation5 + $0x408] ss:$16 sps:$4 sm:$0xff]  }
 0x1f2   :  { %5363 = vmatprep.subr.bf16.mxu1 %v7234_v6  ;;  %v7274_v4 = vld [vmem:[#allocation5 + $0x608] ss:$16 sps:$4 sm:$0xff]   ;;  %v7279_v6 = vld [vmem:[#allocation5 + $0x5ec] ss:$16 sps:$4 sm:$0xff]  }
 0x1f3   :  { %v5028_v27 = vpop.f32.mrf.mxu0  ;;  %5273 = vmatmul.mubr.bf16.vlgmr.msra.gmra.mxu0 %v7852_v8 }
 0x1f4   :  { %v5069_v28 = vpop.f32.mrf.mxu1  ;;  %5314 = vmatmul.mubr.bf16.vlgmr.msra.gmra.mxu1 %v7854_v9  ;;  %v5029_v30 = vadd.f32 %v5028_v27, %v7937_v31  ;;  %5323 = vmatpush1.bf16.msra.mxu0 %v7229_v13  ;;  %v7244_v31 = vld [vmem:[#allocation5 + $0x6a8] ss:$16 sps:$4 sm:$0xff]   ;;  %v7282_v13 = vld [vmem:[#allocation5 + $0x7ec] ss:$16 sps:$4 sm:$0xff]  }
 0x1f5   :  { %5364 = vmatpush1.bf16.msra.mxu1 %v7232_v14  ;;  %v5030_v34 = vpop.f32.mrf.mxu0  ;;  %5324 = vmatprep.subr.bf16.mxu0 %v7237_v23  ;;  %v7277_v14 = vld [vmem:[#allocation5 + $0x5e8] ss:$16 sps:$4 sm:$0xff]  }
 0x1f6   :  { %v5071_v35 = vpop.f32.mrf.mxu1  ;;  %5365 = vmatprep.subr.bf16.mxu1 %v7240_v24  ;;  %v7947_v44 = vadd.f32 %v5069_v28, %v5029_v30  ;;  %v5031_v45 = vadd.f32 %v5030_v34, %v7942_v38  ;;  %5354 = vmatprep.mubr.bf16.mxu0 %v7858_v37  ;;  %v7247_v38 = vld [vmem:[#allocation5 + $0x488] ss:$16 sps:$4 sm:$0xff]   ;;  %v7255_v37 = vld [vmem:[#allocation5 + $0x46c] ss:$16 sps:$4 sm:$0xff]  }
 0x1f7   :  { %5395 = vmatprep.mubr.bf16.mxu1 %v7860_v40  ;;  %v5032_v8 = vpop.f32.mrf.mxu0  ;;  %v7258_v40 = vld [vmem:[#allocation5 + $0x66c] ss:$16 sps:$4 sm:$0xff]   ;;  %v7280_v23 = vld [vmem:[#allocation5 + $0x7e8] ss:$16 sps:$4 sm:$0xff]  }
 0x1f8   :  { %v5073_v9 = vpop.f32.mrf.mxu1  ;;  %v7952_v47 = vadd.f32 %v5071_v35, %v5031_v45  ;;  %5325 = vmatpush1.bf16.msra.mxu0 %v7235_v25  ;;  %v7285_v24 = vld [vmem:[#allocation5 + $0x5cc] ss:$16 sps:$4 sm:$0xff]   ;;  %v7286_v27 = vld [vmem:[#allocation5 + $0x7c8] ss:$16 sps:$4 sm:$0xff]  }
 0x1f9   :  { %5366 = vmatpush1.bf16.msra.mxu1 %v7238_v26  ;;  %v5033_v33 = vpop.f32.mrf.mxu0  ;;  %5326 = vmatprep.subr.bf16.mxu0 %v7243_v36  ;;  %v7288_v25 = vld [vmem:[#allocation5 + $0x7cc] ss:$16 sps:$4 sm:$0xff]   ;;  %v7283_v26 = vld [vmem:[#allocation5 + $0x5c8] ss:$16 sps:$4 sm:$0xff]  }
 0x1fa   :  { %v5074_v51 = vpop.f32.mrf.mxu1  ;;  %5367 = vmatprep.subr.bf16.mxu1 %v7246_v39  ;;  %v7291_v28 = vld [vmem:[#allocation5 + $0x5ac] ss:$16 sps:$4 sm:$0xff]   ;;  %v7289_v34 = vld [vmem:[#allocation5 + $0x5a8] ss:$16 sps:$4 sm:$0xff]  }
 0x1fb   :  { %v7294_v30 = vld [vmem:[#allocation5 + $0x7ac] ss:$16 sps:$4 sm:$0xff]   ;;  %v7292_v35 = vld [vmem:[#allocation5 + $0x7a8] ss:$16 sps:$4 sm:$0xff]  }
 0x1fc   :  { %5327 = vmatpush1.bf16.msra.mxu0 %v7241_v46  ;;  %v7297_v36 = vld [vmem:[#allocation5 + $0x58c] ss:$16 sps:$4 sm:$0xff]   ;;  %v7295_v45 = vld [vmem:[#allocation5 + $0x588] ss:$16 sps:$4 sm:$0xff]  }
 0x1fd   :  { %5368 = vmatpush1.bf16.msra.mxu1 %v7244_v31  ;;  %5328 = vmatprep.subr.bf16.mxu0 %v7249_v53  ;;  %v7300_v39 = vld [vmem:[#allocation5 + $0x78c] ss:$16 sps:$4 sm:$0xff]   ;;  %v7298_v46 = vld [vmem:[#allocation5 + $0x788] ss:$16 sps:$4 sm:$0xff]  }
 0x1fe   :  { %5369 = vmatprep.subr.bf16.mxu1 %v7252_v54  ;;  %v7303_v8 = vld [vmem:[#allocation5 + $0x56c] ss:$16 sps:$4 sm:$0xff]   ;;  %v7301_v31 = vld [vmem:[#allocation5 + $0x568] ss:$16 sps:$4 sm:$0xff]  }
 0x1ff   :  { %v7306_v9 = vld [vmem:[#allocation5 + $0x76c] ss:$16 sps:$4 sm:$0xff]   ;;  %v7304_v33 = vld [vmem:[#allocation5 + $0x768] ss:$16 sps:$4 sm:$0xff]  }
 0x200   :  { %5329 = vmatpush1.bf16.msra.mxu0 %v7247_v38  ;;  %v7309_v51 = vld [vmem:[#allocation5 + $0x54c] ss:$16 sps:$4 sm:$0xff]   ;;  %v7307_v54 = vld [vmem:[#allocation5 + $0x548] ss:$16 sps:$4 sm:$0xff]  }
 0x201   :  { %5370 = vmatpush1.bf16.msra.mxu1 %v7250_v55  ;;  %5330 = vmatprep.subr.bf16.mxu0 %v7255_v37  ;;  %v7312_v53 = vld [vmem:[#allocation5 + $0x74c] ss:$16 sps:$4 sm:$0xff]   ;;  %v7310_v38 = vld [vmem:[#allocation5 + $0x748] ss:$16 sps:$4 sm:$0xff]  }
 0x202   :  { %5371 = vmatprep.subr.bf16.mxu1 %v7258_v40  ;;  %v7315_v55 = vld [vmem:[#allocation5 + $0x52c] ss:$16 sps:$4 sm:$0xff]   ;;  %v7313_v40 = vld [vmem:[#allocation5 + $0x528] ss:$16 sps:$4 sm:$0xff]  }
 0x203   :  { %v7318_v37 = vld [vmem:[#allocation5 + $0x72c] ss:$16 sps:$4 sm:$0xff]  }
 0x204   :  { %5331 = vmatpush1.bf16.msra.mxu0 %v7253_v41  ;;  %v7316_v41 = vld [vmem:[#allocation5 + $0x728] ss:$16 sps:$4 sm:$0xff]  }
 0x205   :  { %5372 = vmatpush1.bf16.msra.mxu1 %v7256_v56  ;;  %5332 = vmatprep.subr.bf16.mxu0 %v7261_v49  ;;  %v7321_v56 = vld [vmem:[#allocation5 + $0x50c] ss:$16 sps:$4 sm:$0xff]  }
 0x206   :  { %5373 = vmatprep.subr.bf16.mxu1 %v7264_v52  ;;  %v7324_v49 = vld [vmem:[#allocation5 + $0x70c] ss:$16 sps:$4 sm:$0xff]   ;;  %v7319_v52 = vld [vmem:[#allocation5 + $0x508] ss:$16 sps:$4 sm:$0xff]  }
 0x208   :  { %5333 = vmatpush1.bf16.msra.mxu0 %v7259_v58  ;;  %v7322_v58 = vld [vmem:[#allocation5 + $0x708] ss:$16 sps:$4 sm:$0xff]  }
 0x209   :  { %5374 = vmatpush1.bf16.msra.mxu1 %v7262_v59  ;;  %5334 = vmatprep.subr.bf16.mxu0 %v7267_v60  ;;  %v7327_v59 = vld [vmem:[#allocation5 + $0x8ec] ss:$16 sps:$4 sm:$0xff]  }
 0x20a   :  { %5375 = vmatprep.subr.bf16.mxu1 %v7270_v61  ;;  %v7330_v60 = vld [vmem:[#allocation5 + $0xaec] ss:$16 sps:$4 sm:$0xff]   ;;  %v7325_v61 = vld [vmem:[#allocation5 + $0x8e8] ss:$16 sps:$4 sm:$0xff]  }
 0x20c   :  { %5335 = vmatpush1.bf16.msra.mxu0 %v7265_v62  ;;  %v7328_v62 = vld [vmem:[#allocation5 + $0xae8] ss:$16 sps:$4 sm:$0xff]  }
 0x20d   :  { %5376 = vmatpush1.bf16.msra.mxu1 %v7268_v63  ;;  %5336 = vmatprep.subr.bf16.mxu0 %v7273_v1  ;;  %v7333_v63 = vld [vmem:[#allocation5 + $0x8cc] ss:$16 sps:$4 sm:$0xff]  }
 0x20e   :  { %5377 = vmatprep.subr.bf16.mxu1 %v7276_v2  ;;  %v7336_v1 = vld [vmem:[#allocation5 + $0xacc] ss:$16 sps:$4 sm:$0xff]  }
 0x210   :  { %5337 = vmatpush1.bf16.msra.mxu0 %v7271_v3 }
 0x211   :  { %5378 = vmatpush1.bf16.msra.mxu1 %v7274_v4  ;;  %5338 = vmatprep.subr.bf16.mxu0 %v7279_v6  ;;  %v7331_v6 = vld [vmem:[#allocation5 + $0x8c8] ss:$16 sps:$4 sm:$0xff]  }
 0x212   :  { %5379 = vmatprep.subr.bf16.mxu1 %v7282_v13  ;;  %v7334_v13 = vld [vmem:[#allocation5 + $0xac8] ss:$16 sps:$4 sm:$0xff]  }
 0x214   :  { %5339 = vmatpush2.bf16.msra.mxu0 %v7277_v14 }
 0x215   :  { %5380 = vmatpush2.bf16.msra.mxu1 %v7280_v23  ;;  %5340 = vmatprep.subr.bf16.mxu0 %v7285_v24  ;;  %v7339_v24 = vld [vmem:[#allocation5 + $0x8ac] ss:$16 sps:$4 sm:$0xff]  }
 0x216   :  { %5381 = vmatprep.subr.bf16.mxu1 %v7288_v25  ;;  %v7342_v25 = vld [vmem:[#allocation5 + $0xaac] ss:$16 sps:$4 sm:$0xff]  }
 0x218   :  { %5341 = vmatpush2.bf16.msra.mxu0 %v7283_v26 }
 0x219   :  { %5382 = vmatpush2.bf16.msra.mxu1 %v7286_v27  ;;  %5342 = vmatprep.subr.bf16.mxu0 %v7291_v28  ;;  %v7337_v28 = vld [vmem:[#allocation5 + $0x8a8] ss:$16 sps:$4 sm:$0xff]  }
 0x21a   :  { %5383 = vmatprep.subr.bf16.mxu1 %v7294_v30  ;;  %v7340_v30 = vld [vmem:[#allocation5 + $0xaa8] ss:$16 sps:$4 sm:$0xff]  }
 0x21c   :  { %5343 = vmatpush2.bf16.msra.mxu0 %v7289_v34 }
 0x21d   :  { %5384 = vmatpush2.bf16.msra.mxu1 %v7292_v35  ;;  %5344 = vmatprep.subr.bf16.mxu0 %v7297_v36  ;;  %v7345_v36 = vld [vmem:[#allocation5 + $0x88c] ss:$16 sps:$4 sm:$0xff]  }
 0x21e   :  { %5385 = vmatprep.subr.bf16.mxu1 %v7300_v39  ;;  %v7348_v39 = vld [vmem:[#allocation5 + $0xa8c] ss:$16 sps:$4 sm:$0xff]  }
 0x220   :  { %5345 = vmatpush2.bf16.msra.mxu0 %v7295_v45  ;;  %v7354_v45 = vld [vmem:[#allocation5 + $0xa6c] ss:$16 sps:$4 sm:$0xff]  }
 0x221   :  { %5386 = vmatpush2.bf16.msra.mxu1 %v7298_v46  ;;  %5346 = vmatprep.subr.bf16.mxu0 %v7303_v8  ;;  %v7349_v46 = vld [vmem:[#allocation5 + $0x868] ss:$16 sps:$4 sm:$0xff]  }
 0x222   :  { %5387 = vmatprep.subr.bf16.mxu1 %v7306_v9  ;;  %v7352_v8 = vld [vmem:[#allocation5 + $0xa68] ss:$16 sps:$4 sm:$0xff]   ;;  %v7357_v9 = vld [vmem:[#allocation5 + $0x84c] ss:$16 sps:$4 sm:$0xff]  }
 0x224   :  { %5347 = vmatpush2.bf16.msra.mxu0 %v7301_v31  ;;  %v7360_v31 = vld [vmem:[#allocation5 + $0xa4c] ss:$16 sps:$4 sm:$0xff]  }
 0x225   :  { %5388 = vmatpush2.bf16.msra.mxu1 %v7304_v33  ;;  %5348 = vmatprep.subr.bf16.mxu0 %v7309_v51  ;;  %v7355_v33 = vld [vmem:[#allocation5 + $0x848] ss:$16 sps:$4 sm:$0xff]  }
 0x226   :  { %5389 = vmatprep.subr.bf16.mxu1 %v7312_v53  ;;  %v7358_v51 = vld [vmem:[#allocation5 + $0xa48] ss:$16 sps:$4 sm:$0xff]   ;;  %v7363_v53 = vld [vmem:[#allocation5 + $0x82c] ss:$16 sps:$4 sm:$0xff]  }
 0x228   :  { %5349 = vmatpush2.bf16.msra.mxu0 %v7307_v54  ;;  %v7366_v54 = vld [vmem:[#allocation5 + $0xa2c] ss:$16 sps:$4 sm:$0xff]  }
 0x229   :  { %5390 = vmatpush2.bf16.msra.mxu1 %v7310_v38  ;;  %5350 = vmatprep.subr.bf16.mxu0 %v7315_v55  ;;  %v7361_v38 = vld [vmem:[#allocation5 + $0x828] ss:$16 sps:$4 sm:$0xff]  }
 0x22a   :  { %5391 = vmatprep.subr.bf16.mxu1 %v7318_v37  ;;  %v7364_v55 = vld [vmem:[#allocation5 + $0xa28] ss:$16 sps:$4 sm:$0xff]   ;;  %v7369_v37 = vld [vmem:[#allocation5 + $0x80c] ss:$16 sps:$4 sm:$0xff]  }
 0x22c   :  { %5351 = vmatpush2.bf16.msra.mxu0 %v7313_v40  ;;  %v7372_v40 = vld [vmem:[#allocation5 + $0xa0c] ss:$16 sps:$4 sm:$0xff]  }
 0x22d   :  { %5392 = vmatpush2.bf16.msra.mxu1 %v7316_v41  ;;  %5352 = vmatprep.subr.bf16.mxu0 %v7321_v56  ;;  %v7367_v41 = vld [vmem:[#allocation5 + $0x808] ss:$16 sps:$4 sm:$0xff]  }
 0x22e   :  { %5393 = vmatprep.subr.bf16.mxu1 %v7324_v49  ;;  %v7370_v56 = vld [vmem:[#allocation5 + $0xa08] ss:$16 sps:$4 sm:$0xff]   ;;  %v7375_v49 = vld [vmem:[#allocation5 + $0x9ec] ss:$16 sps:$4 sm:$0xff]  }
 0x230   :  { %5353 = vmatpush2.bf16.msra.mxu0 %v7319_v52  ;;  %v7378_v52 = vld [vmem:[#allocation5 + $0xbec] ss:$16 sps:$4 sm:$0xff]  }
 0x231   :  { %5394 = vmatpush2.bf16.msra.mxu1 %v7322_v58  ;;  %5404 = vmatprep.subr.bf16.mxu0 %v7327_v59  ;;  %v7373_v58 = vld [vmem:[#allocation5 + $0x9e8] ss:$16 sps:$4 sm:$0xff]  }
 0x232   :  { %5445 = vmatprep.subr.bf16.mxu1 %v7330_v60  ;;  %v7376_v59 = vld [vmem:[#allocation5 + $0xbe8] ss:$16 sps:$4 sm:$0xff]   ;;  %v7381_v60 = vld [vmem:[#allocation5 + $0x9cc] ss:$16 sps:$4 sm:$0xff]  }
 0x233   :  { %v5110_v2 = vpop.f32.mrf.mxu0  ;;  %5355 = vmatmul.mubr.bf16.vlgmr.msra.gmra.mxu0 %v7864_v20 }
 0x234   :  { %v5151_v3 = vpop.f32.mrf.mxu1  ;;  %5396 = vmatmul.mubr.bf16.vlgmr.msra.gmra.mxu1 %v7866_v21  ;;  %v5111_v4 = vadd.f32 %v5110_v2, %v7947_v44  ;;  %5405 = vmatpush1.bf16.msra.mxu0 %v7325_v61  ;;  %v7384_v61 = vld [vmem:[#allocation5 + $0xbcc] ss:$16 sps:$4 sm:$0xff]  }
 0x235   :  { %5446 = vmatpush1.bf16.msra.mxu1 %v7328_v62  ;;  %v5112_v14 = vpop.f32.mrf.mxu0  ;;  %5406 = vmatprep.subr.bf16.mxu0 %v7333_v63  ;;  %v7379_v62 = vld [vmem:[#allocation5 + $0x9c8] ss:$16 sps:$4 sm:$0xff]   ;;  %v7390_v2 = vld [vmem:[#allocation5 + $0xbac] ss:$16 sps:$4 sm:$0xff]  }
 0x236   :  { %v5153_v23 = vpop.f32.mrf.mxu1  ;;  %5447 = vmatprep.subr.bf16.mxu1 %v7336_v1  ;;  %v7957_v26 = vadd.f32 %v5151_v3, %v5111_v4  ;;  %v5113_v27 = vadd.f32 %v5112_v14, %v7952_v47  ;;  %5436 = vmatprep.mubr.bf16.mxu0 %v7870_v29  ;;  %v7343_v47 = vld [vmem:[#allocation5 + $0x888] ss:$16 sps:$4 sm:$0xff]   ;;  %v7387_v1 = vld [vmem:[#allocation5 + $0x9ac] ss:$16 sps:$4 sm:$0xff]  }
 0x237   :  { %5477 = vmatprep.mubr.bf16.mxu1 %v7872_v32  ;;  %v5114_v20 = vpop.f32.mrf.mxu0  ;;  %v7346_v29 = vld [vmem:[#allocation5 + $0xa88] ss:$16 sps:$4 sm:$0xff]   ;;  %v7351_v32 = vld [vmem:[#allocation5 + $0x86c] ss:$16 sps:$4 sm:$0xff]  }
 0x238   :  { %v5155_v21 = vpop.f32.mrf.mxu1  ;;  %v7962_v44 = vadd.f32 %v5153_v23, %v5113_v27  ;;  %5407 = vmatpush1.bf16.msra.mxu0 %v7331_v6  ;;  %v7382_v63 = vld [vmem:[#allocation5 + $0xbc8] ss:$16 sps:$4 sm:$0xff]   ;;  %v7393_v6 = vld [vmem:[#allocation5 + $0x98c] ss:$16 sps:$4 sm:$0xff]  }
 0x239   :  { %5448 = vmatpush1.bf16.msra.mxu1 %v7334_v13  ;;  %v5115_v34 = vpop.f32.mrf.mxu0  ;;  %5408 = vmatprep.subr.bf16.mxu0 %v7339_v24  ;;  %v7385_v3 = vld [vmem:[#allocation5 + $0x9a8] ss:$16 sps:$4 sm:$0xff]   ;;  %v7396_v13 = vld [vmem:[#allocation5 + $0xb8c] ss:$16 sps:$4 sm:$0xff]  }
 0x23a   :  { %v5156_v35 = vpop.f32.mrf.mxu1  ;;  %5449 = vmatprep.subr.bf16.mxu1 %v7342_v25  ;;  %v7388_v4 = vld [vmem:[#allocation5 + $0xba8] ss:$16 sps:$4 sm:$0xff]   ;;  %v7399_v24 = vld [vmem:[#allocation5 + $0x96c] ss:$16 sps:$4 sm:$0xff]  }
 0x23b   :  { %v7391_v14 = vld [vmem:[#allocation5 + $0x988] ss:$16 sps:$4 sm:$0xff]   ;;  %v7402_v25 = vld [vmem:[#allocation5 + $0xb6c] ss:$16 sps:$4 sm:$0xff]  }
 0x23c   :  { %5409 = vmatpush1.bf16.msra.mxu0 %v7337_v28  ;;  %v7394_v23 = vld [vmem:[#allocation5 + $0xb88] ss:$16 sps:$4 sm:$0xff]   ;;  %v7405_v21 = vld [vmem:[#allocation5 + $0x94c] ss:$16 sps:$4 sm:$0xff]  }
 0x23d   :  { %5450 = vmatpush1.bf16.msra.mxu1 %v7340_v30  ;;  %5410 = vmatprep.subr.bf16.mxu0 %v7345_v36  ;;  %v7397_v27 = vld [vmem:[#allocation5 + $0x968] ss:$16 sps:$4 sm:$0xff]   ;;  %v7408_v28 = vld [vmem:[#allocation5 + $0xb4c] ss:$16 sps:$4 sm:$0xff]  }
 0x23e   :  { %5451 = vmatprep.subr.bf16.mxu1 %v7348_v39  ;;  %v7400_v20 = vld [vmem:[#allocation5 + $0xb68] ss:$16 sps:$4 sm:$0xff]   ;;  %v7411_v35 = vld [vmem:[#allocation5 + $0x92c] ss:$16 sps:$4 sm:$0xff]  }
 0x23f   :  { %v7403_v30 = vld [vmem:[#allocation5 + $0x948] ss:$16 sps:$4 sm:$0xff]   ;;  %v7414_v36 = vld [vmem:[#allocation5 + $0xb2c] ss:$16 sps:$4 sm:$0xff]  }
 0x240   :  { %5411 = vmatpush1.bf16.msra.mxu0 %v7343_v47  ;;  %v7406_v34 = vld [vmem:[#allocation5 + $0xb48] ss:$16 sps:$4 sm:$0xff]  }
 0x241   :  { %5452 = vmatpush1.bf16.msra.mxu1 %v7346_v29  ;;  %5412 = vmatprep.subr.bf16.mxu0 %v7351_v32  ;;  %v7409_v39 = vld [vmem:[#allocation5 + $0x928] ss:$16 sps:$4 sm:$0xff]   ;;  %v7417_v29 = vld [vmem:[#allocation5 + $0x90c] ss:$16 sps:$4 sm:$0xff]  }
 0x242   :  { %5453 = vmatprep.subr.bf16.mxu1 %v7354_v45  ;;  %v7412_v47 = vld [vmem:[#allocation5 + $0xb28] ss:$16 sps:$4 sm:$0xff]   ;;  %v7420_v32 = vld [vmem:[#allocation5 + $0xb0c] ss:$16 sps:$4 sm:$0xff]  }
 0x243   :  { %v7415_v45 = vld [vmem:[#allocation5 + $0x908] ss:$16 sps:$4 sm:$0xff]  }
 0x244   :  { %5413 = vmatpush1.bf16.msra.mxu0 %v7349_v46  ;;  %v7418_v46 = vld [vmem:[#allocation5 + $0xb08] ss:$16 sps:$4 sm:$0xff]  }
 0x245   :  { %5454 = vmatpush1.bf16.msra.mxu1 %v7352_v8  ;;  %5414 = vmatprep.subr.bf16.mxu0 %v7357_v9  ;;  %v7423_v8 = vld [vmem:[#allocation5 + $0xcec] ss:$16 sps:$4 sm:$0xff]  }
 0x246   :  { %5455 = vmatprep.subr.bf16.mxu1 %v7360_v31  ;;  %v7426_v9 = vld [vmem:[#allocation5 + $0xeec] ss:$16 sps:$4 sm:$0xff]   ;;  %v7421_v31 = vld [vmem:[#allocation5 + $0xce8] ss:$16 sps:$4 sm:$0xff]  }
 0x248   :  { %5415 = vmatpush1.bf16.msra.mxu0 %v7355_v33  ;;  %v7424_v33 = vld [vmem:[#allocation5 + $0xee8] ss:$16 sps:$4 sm:$0xff]  }
 0x249   :  { %5456 = vmatpush1.bf16.msra.mxu1 %v7358_v51  ;;  %5416 = vmatprep.subr.bf16.mxu0 %v7363_v53  ;;  %v7429_v51 = vld [vmem:[#allocation5 + $0xccc] ss:$16 sps:$4 sm:$0xff]  }
 0x24a   :  { %5457 = vmatprep.subr.bf16.mxu1 %v7366_v54  ;;  %v7432_v53 = vld [vmem:[#allocation5 + $0xecc] ss:$16 sps:$4 sm:$0xff]  }
 0x24c   :  { %5417 = vmatpush1.bf16.msra.mxu0 %v7361_v38 }
 0x24d   :  { %5458 = vmatpush1.bf16.msra.mxu1 %v7364_v55  ;;  %5418 = vmatprep.subr.bf16.mxu0 %v7369_v37  ;;  %v7427_v37 = vld [vmem:[#allocation5 + $0xcc8] ss:$16 sps:$4 sm:$0xff]  }
 0x24e   :  { %5459 = vmatprep.subr.bf16.mxu1 %v7372_v40  ;;  %v7430_v40 = vld [vmem:[#allocation5 + $0xec8] ss:$16 sps:$4 sm:$0xff]  }
 0x250   :  { %5419 = vmatpush1.bf16.msra.mxu0 %v7367_v41  ;;  %v7967_v41 = vld [vmem:[#allocation8] sm:$0xf] }
 0x251   :  { %5460 = vmatpush1.bf16.msra.mxu1 %v7370_v56  ;;  %5420 = vmatprep.subr.bf16.mxu0 %v7375_v49 }
 0x252   :  { %5461 = vmatprep.subr.bf16.mxu1 %v7378_v52  ;;  %v7435_v52 = vld [vmem:[#allocation5 + $0xcac] ss:$16 sps:$4 sm:$0xff]  }
 0x254   :  { %5421 = vmatpush2.bf16.msra.mxu0 %v7373_v58  ;;  %v7438_v58 = vld [vmem:[#allocation5 + $0xeac] ss:$16 sps:$4 sm:$0xff]  }
 0x255   :  { %5462 = vmatpush2.bf16.msra.mxu1 %v7376_v59  ;;  %5422 = vmatprep.subr.bf16.mxu0 %v7381_v60 }
 0x256   :  { %5463 = vmatprep.subr.bf16.mxu1 %v7384_v61  ;;  %v5741_v61 = vrot.slane %v7967_v41, %v890_v0  ;;  %v7439_v0 = vld [vmem:[#allocation5 + $0xc88] ss:$16 sps:$4 sm:$0xff]  }
 0x258   :  { %5423 = vmatpush2.bf16.msra.mxu0 %v7379_v62 }
 0x259   :  { %5464 = vmatpush2.bf16.msra.mxu1 %v7382_v63  ;;  %5424 = vmatprep.subr.bf16.mxu0 %v7387_v1  ;;  %v5745_v63 = vrot.slane %v7967_v41, %v894_v5  ;;  %v7433_v1 = vld [vmem:[#allocation5 + $0xca8] ss:$16 sps:$4 sm:$0xff]   ;;  %v7447_v5 = vld [vmem:[#allocation5 + $0xc6c] ss:$16 sps:$4 sm:$0xff]  }
 0x25a   :  { %5465 = vmatprep.subr.bf16.mxu1 %v7390_v2 }
 0x25c   :  { %5425 = vmatpush2.bf16.msra.mxu0 %v7385_v3  ;;  %v7444_v3 = vld [vmem:[#allocation5 + $0xe8c] ss:$16 sps:$4 sm:$0xff]  }
 0x25d   :  { %5466 = vmatpush2.bf16.msra.mxu1 %v7388_v4  ;;  %5426 = vmatprep.subr.bf16.mxu0 %v7393_v6 }
 0x25e   :  { %5467 = vmatprep.subr.bf16.mxu1 %v7396_v13 }
 0x260   :  { %5427 = vmatpush2.bf16.msra.mxu0 %v7391_v14  ;;  %v7442_v14 = vld [vmem:[#allocation5 + $0xe88] ss:$16 sps:$4 sm:$0xff]  }
 0x261   :  { %5468 = vmatpush2.bf16.msra.mxu1 %v7394_v23  ;;  %5428 = vmatprep.subr.bf16.mxu0 %v7399_v24  ;;  %v7450_v23 = vld [vmem:[#allocation5 + $0xe6c] ss:$16 sps:$4 sm:$0xff]  }
 0x262   :  { %5469 = vmatprep.subr.bf16.mxu1 %v7402_v25  ;;  %v7445_v25 = vld [vmem:[#allocation5 + $0xc68] ss:$16 sps:$4 sm:$0xff]  }
 0x264   :  { %5429 = vmatpush2.bf16.msra.mxu0 %v7397_v27  ;;  %v7448_v27 = vld [vmem:[#allocation5 + $0xe68] ss:$16 sps:$4 sm:$0xff]  }
 0x265   :  { %5470 = vmatpush2.bf16.msra.mxu1 %v7400_v20  ;;  %5430 = vmatprep.subr.bf16.mxu0 %v7405_v21  ;;  %v7453_v20 = vld [vmem:[#allocation5 + $0xc4c] ss:$16 sps:$4 sm:$0xff]  }
 0x266   :  { %5471 = vmatprep.subr.bf16.mxu1 %v7408_v28  ;;  %v7456_v21 = vld [vmem:[#allocation5 + $0xe4c] ss:$16 sps:$4 sm:$0xff]   ;;  %v7451_v28 = vld [vmem:[#allocation5 + $0xc48] ss:$16 sps:$4 sm:$0xff]  }
 0x268   :  { %5431 = vmatpush2.bf16.msra.mxu0 %v7403_v30  ;;  %v7454_v30 = vld [vmem:[#allocation5 + $0xe48] ss:$16 sps:$4 sm:$0xff]  }
 0x269   :  { %5472 = vmatpush2.bf16.msra.mxu1 %v7406_v34  ;;  %5432 = vmatprep.subr.bf16.mxu0 %v7411_v35  ;;  %v7459_v34 = vld [vmem:[#allocation5 + $0xc2c] ss:$16 sps:$4 sm:$0xff]  }
 0x26a   :  { %5473 = vmatprep.subr.bf16.mxu1 %v7414_v36  ;;  %v7462_v35 = vld [vmem:[#allocation5 + $0xe2c] ss:$16 sps:$4 sm:$0xff]   ;;  %v7457_v36 = vld [vmem:[#allocation5 + $0xc28] ss:$16 sps:$4 sm:$0xff]  }
 0x26c   :  { %5433 = vmatpush2.bf16.msra.mxu0 %v7409_v39  ;;  %v7460_v39 = vld [vmem:[#allocation5 + $0xe28] ss:$16 sps:$4 sm:$0xff]  }
 0x26d   :  { %5474 = vmatpush2.bf16.msra.mxu1 %v7412_v47  ;;  %5434 = vmatprep.subr.bf16.mxu0 %v7417_v29  ;;  %v7465_v47 = vld [vmem:[#allocation5 + $0xc0c] ss:$16 sps:$4 sm:$0xff]  }
 0x26e   :  { %5475 = vmatprep.subr.bf16.mxu1 %v7420_v32  ;;  %v7468_v29 = vld [vmem:[#allocation5 + $0xe0c] ss:$16 sps:$4 sm:$0xff]   ;;  %v7463_v32 = vld [vmem:[#allocation5 + $0xc08] ss:$16 sps:$4 sm:$0xff]  }
 0x270   :  { %5435 = vmatpush2.bf16.msra.mxu0 %v7415_v45  ;;  %v7466_v45 = vld [vmem:[#allocation5 + $0xe08] ss:$16 sps:$4 sm:$0xff]  }
 0x271   :  { %5476 = vmatpush2.bf16.msra.mxu1 %v7418_v46  ;;  %5486 = vmatprep.subr.bf16.mxu0 %v7423_v8  ;;  %v7471_v46 = vld [vmem:[#allocation5 + $0xdec] ss:$16 sps:$4 sm:$0xff]  }
 0x272   :  { %5527 = vmatprep.subr.bf16.mxu1 %v7426_v9  ;;  %v7474_v8 = vld [vmem:[#allocation5 + $0xfec] ss:$16 sps:$4 sm:$0xff]   ;;  %v7469_v9 = vld [vmem:[#allocation5 + $0xde8] ss:$16 sps:$4 sm:$0xff]  }
 0x273   :  { %v5192_v54 = vpop.f32.mrf.mxu0  ;;  %5437 = vmatmul.mubr.bf16.vlgmr.msra.gmra.mxu0 %v7876_v42 }
 0x274   :  { %v5233_v38 = vpop.f32.mrf.mxu1  ;;  %5478 = vmatmul.mubr.bf16.vlgmr.msra.gmra.mxu1 %v7878_v43  ;;  %v5193_v55 = vadd.f32 %v5192_v54, %v7957_v26  ;;  %5487 = vmatpush1.bf16.msra.mxu0 %v7421_v31  ;;  %v7472_v31 = vld [vmem:[#allocation5 + $0xfe8] ss:$16 sps:$4 sm:$0xff]  }
 0x275   :  { %5528 = vmatpush1.bf16.msra.mxu1 %v7424_v33  ;;  %v5194_v56 = vpop.f32.mrf.mxu0  ;;  %5488 = vmatprep.subr.bf16.mxu0 %v7429_v51  ;;  %v7477_v33 = vld [vmem:[#allocation5 + $0xdcc] ss:$16 sps:$4 sm:$0xff]   ;;  %v7478_v54 = vld [vmem:[#allocation5 + $0xfc8] ss:$16 sps:$4 sm:$0xff]  }
 0x276   :  { %v5235_v49 = vpop.f32.mrf.mxu1  ;;  %5529 = vmatprep.subr.bf16.mxu1 %v7432_v53  ;;  %v5234_v59 = vadd.f32 %v5233_v38, %v5193_v55  ;;  %v5195_v60 = vadd.f32 %v5194_v56, %v7962_v44  ;;  %5518 = vmatprep.mubr.bf16.mxu0 %v7880_v48  ;;  %v7436_v44 = vld [vmem:[#allocation5 + $0xea8] ss:$16 sps:$4 sm:$0xff]   ;;  %v7480_v51 = vld [vmem:[#allocation5 + $0xfcc] ss:$16 sps:$4 sm:$0xff]  }
 0x277   :  { %5559 = vmatprep.mubr.bf16.mxu1 %v7882_v50  ;;  %v5196_v42 = vpop.f32.mrf.mxu0  ;;  %v7441_v50 = vld [vmem:[#allocation5 + $0xc8c] ss:$16 sps:$4 sm:$0xff]   ;;  %v7475_v53 = vld [vmem:[#allocation5 + $0xdc8] ss:$16 sps:$4 sm:$0xff]  }
 0x278   :  { %v5237_v43 = vpop.f32.mrf.mxu1  ;;  %v5732_v26 = vmax.f32 %v5234_v59, 0.0  ;;  %v5236_v62 = vadd.f32 %v5235_v49, %v5195_v60  ;;  %5489 = vmatpush1.bf16.msra.mxu0 %v7427_v37  ;;  %v7483_v38 = vld [vmem:[#allocation5 + $0xdac] ss:$16 sps:$4 sm:$0xff]   ;;  %v7481_v37 = vld [vmem:[#allocation5 + $0xda8] ss:$16 sps:$4 sm:$0xff]  }
 0x279   :  { %5530 = vmatpush1.bf16.msra.mxu1 %v7430_v40  ;;  %v5197_v2 = vpop.f32.mrf.mxu0  ;;  %5490 = vmatprep.subr.bf16.mxu0 %v7435_v52  ;;  %v7486_v55 = vld [vmem:[#allocation5 + $0xfac] ss:$16 sps:$4 sm:$0xff]   ;;  %v7484_v40 = vld [vmem:[#allocation5 + $0xfa8] ss:$16 sps:$4 sm:$0xff]  }
 0x27a   :  { %v5238_v48 = vpop.f32.mrf.mxu1  ;;  %5531 = vmatprep.subr.bf16.mxu1 %v7438_v58  ;;  %v5733_v4 = vmax.f32 %v5236_v62, 0.0  ;;  %v5758_v6 = vmul.f32 %v5741_v61, %v5732_v26  ;;  %v7489_v56 = vld [vmem:[#allocation5 + $0xd8c] ss:$16 sps:$4 sm:$0xff]   ;;  %v7487_v52 = vld [vmem:[#allocation5 + $0xd88] ss:$16 sps:$4 sm:$0xff]  }
 0x27b   :  { %v7492_v49 = vld [vmem:[#allocation5 + $0xf8c] ss:$16 sps:$4 sm:$0xff]   ;;  %v7490_v58 = vld [vmem:[#allocation5 + $0xf88] ss:$16 sps:$4 sm:$0xff]  }
 0x27c   :  { %v5759_v13 = vmul.f32 %v5745_v63, %v5733_v4  ;;  %5491 = vmatpush1.bf16.msra.mxu0 %v7433_v1  ;;  %v7495_v59 = vld [vmem:[#allocation5 + $0xd6c] ss:$16 sps:$4 sm:$0xff]   ;;  %v7493_v42 = vld [vmem:[#allocation5 + $0xd68] ss:$16 sps:$4 sm:$0xff]  }
 0x27d   :  { %5532 = vmatpush1.bf16.msra.mxu1 %v7436_v44  ;;  %5492 = vmatprep.subr.bf16.mxu0 %v7441_v50  ;;  %v7498_v60 = vld [vmem:[#allocation5 + $0xf6c] ss:$16 sps:$4 sm:$0xff]   ;;  %v7496_v43 = vld [vmem:[#allocation5 + $0xf68] ss:$16 sps:$4 sm:$0xff]  }
 0x27e   :  { %5533 = vmatprep.subr.bf16.mxu1 %v7444_v3  ;;  %v7978_v24 = vadd.f32 %v5759_v13, %v5758_v6  ;;  %v7501_v26 = vld [vmem:[#allocation5 + $0xd4c] ss:$16 sps:$4 sm:$0xff]   ;;  %v7499_v62 = vld [vmem:[#allocation5 + $0xd48] ss:$16 sps:$4 sm:$0xff]   ;;  %v898_v13 = vsub.s32 2, %v7888_v57 }
 0x27f   :  { %v7504_v61 = vld [vmem:[#allocation5 + $0xf4c] ss:$16 sps:$4 sm:$0xff]   ;;  %v7502_v63 = vld [vmem:[#allocation5 + $0xf48] ss:$16 sps:$4 sm:$0xff]  }
 0x280   :  { %5493 = vmatpush1.bf16.msra.mxu0 %v7439_v0  ;;  %v7507_v1 = vld [vmem:[#allocation5 + $0xd2c] ss:$16 sps:$4 sm:$0xff]   ;;  %v7505_v2 = vld [vmem:[#allocation5 + $0xd28] ss:$16 sps:$4 sm:$0xff]  }
 0x281   :  { %5534 = vmatpush1.bf16.msra.mxu1 %v7442_v14  ;;  %5494 = vmatprep.subr.bf16.mxu0 %v7447_v5  ;;  %v7510_v44 = vld [vmem:[#allocation5 + $0xf2c] ss:$16 sps:$4 sm:$0xff]   ;;  %v7508_v48 = vld [vmem:[#allocation5 + $0xf28] ss:$16 sps:$4 sm:$0xff]   ;;  %v902_v5 = vsub.s32 3, %v7888_v57 }
 0x282   :  { %5535 = vmatprep.subr.bf16.mxu1 %v7450_v23  ;;  %v7513_v50 = vld [vmem:[#allocation5 + $0xd0c] ss:$16 sps:$4 sm:$0xff]   ;;  %v7511_v4 = vld [vmem:[#allocation5 + $0xd08] ss:$16 sps:$4 sm:$0xff]   ;;  %v7711_v23 = vld [vmem:[#allocation7] sm:$0xf] }
 0x283   :  { %v7516_v3 = vld [vmem:[#allocation5 + $0xf0c] ss:$16 sps:$4 sm:$0xff]   ;;  %v7514_v6 = vld [vmem:[#allocation5 + $0xf08] ss:$16 sps:$4 sm:$0xff]  }
 0x284   :  { %5495 = vmatpush1.bf16.msra.mxu0 %v7445_v25  ;;  %v7519_v0 = vld [vmem:[#allocation5 + $0x10ec] ss:$16 sps:$4 sm:$0xff]   ;;  %v899_v25 = vrot.slane %v7711_v23, %v898_v13 }
 0x285   :  { %5536 = vmatpush1.bf16.msra.mxu1 %v7448_v27  ;;  %5496 = vmatprep.subr.bf16.mxu0 %v7453_v20  ;;  %v7522_v14 = vld [vmem:[#allocation5 + $0x12ec] ss:$16 sps:$4 sm:$0xff]   ;;  %v7517_v27 = vld [vmem:[#allocation5 + $0x10e8] ss:$16 sps:$4 sm:$0xff]  }
 0x286   :  { %5537 = vmatprep.subr.bf16.mxu1 %v7456_v21  ;;  %v7520_v20 = vld [vmem:[#allocation5 + $0x12e8] ss:$16 sps:$4 sm:$0xff]   ;;  %v7525_v21 = vld [vmem:[#allocation5 + $0x10cc] ss:$16 sps:$4 sm:$0xff]  }
 0x288   :  { %5497 = vmatpush1.bf16.msra.mxu0 %v7451_v28  ;;  %v7528_v28 = vld [vmem:[#allocation5 + $0x12cc] ss:$16 sps:$4 sm:$0xff]  }
 0x289   :  { %5538 = vmatpush1.bf16.msra.mxu1 %v7454_v30  ;;  %5498 = vmatprep.subr.bf16.mxu0 %v7459_v34  ;;  %v903_v30 = vrot.slane %v7711_v23, %v902_v5  ;;  %v7579_v23 = vld [vmem:[#allocation5 + $0x11ac] ss:$16 sps:$4 sm:$0xff]  }
 0x28a   :  { %5539 = vmatprep.subr.bf16.mxu1 %v7462_v35 }
 0x28c   :  { %5499 = vmatpush1.bf16.msra.mxu0 %v7457_v36 }
 0x28d   :  { %5540 = vmatpush1.bf16.msra.mxu1 %v7460_v39  ;;  %5500 = vmatprep.subr.bf16.mxu0 %v7465_v47  ;;  %v7523_v39 = vld [vmem:[#allocation5 + $0x10c8] ss:$16 sps:$4 sm:$0xff]  }
 0x28e   :  { %5541 = vmatprep.subr.bf16.mxu1 %v7468_v29  ;;  %v7526_v47 = vld [vmem:[#allocation5 + $0x12c8] ss:$16 sps:$4 sm:$0xff]  }
 0x290   :  { %5501 = vmatpush1.bf16.msra.mxu0 %v7463_v32 }
 0x291   :  { %5542 = vmatpush1.bf16.msra.mxu1 %v7466_v45  ;;  %5502 = vmatprep.subr.bf16.mxu0 %v7471_v46  ;;  %v7531_v45 = vld [vmem:[#allocation5 + $0x10ac] ss:$16 sps:$4 sm:$0xff]  }
 0x292   :  { %5543 = vmatprep.subr.bf16.mxu1 %v7474_v8  ;;  %v7534_v46 = vld [vmem:[#allocation5 + $0x12ac] ss:$16 sps:$4 sm:$0xff]  }
 0x294   :  { %5503 = vmatpush2.bf16.msra.mxu0 %v7469_v9 }
 0x295   :  { %5544 = vmatpush2.bf16.msra.mxu1 %v7472_v31  ;;  %5504 = vmatprep.subr.bf16.mxu0 %v7477_v33  ;;  %v7529_v33 = vld [vmem:[#allocation5 + $0x10a8] ss:$16 sps:$4 sm:$0xff]  }
 0x296   :  { %5545 = vmatprep.subr.bf16.mxu1 %v7480_v51  ;;  %v7532_v51 = vld [vmem:[#allocation5 + $0x12a8] ss:$16 sps:$4 sm:$0xff]  }
 0x298   :  { %5505 = vmatpush2.bf16.msra.mxu0 %v7475_v53 }
 0x299   :  { %5546 = vmatpush2.bf16.msra.mxu1 %v7478_v54  ;;  %5506 = vmatprep.subr.bf16.mxu0 %v7483_v38  ;;  %v7537_v38 = vld [vmem:[#allocation5 + $0x108c] ss:$16 sps:$4 sm:$0xff]  }
 0x29a   :  { %5547 = vmatprep.subr.bf16.mxu1 %v7486_v55  ;;  %v7540_v55 = vld [vmem:[#allocation5 + $0x128c] ss:$16 sps:$4 sm:$0xff]  }
 0x29c   :  { %5507 = vmatpush2.bf16.msra.mxu0 %v7481_v37  ;;  %v7535_v37 = vld [vmem:[#allocation5 + $0x1088] ss:$16 sps:$4 sm:$0xff]  }
 0x29d   :  { %5548 = vmatpush2.bf16.msra.mxu1 %v7484_v40  ;;  %5508 = vmatprep.subr.bf16.mxu0 %v7489_v56  ;;  %v7546_v40 = vld [vmem:[#allocation5 + $0x126c] ss:$16 sps:$4 sm:$0xff]   ;;  %v7541_v56 = vld [vmem:[#allocation5 + $0x1068] ss:$16 sps:$4 sm:$0xff]  }
 0x29e   :  { %5549 = vmatprep.subr.bf16.mxu1 %v7492_v49  ;;  %v7544_v49 = vld [vmem:[#allocation5 + $0x1268] ss:$16 sps:$4 sm:$0xff]  }
 0x2a0   :  { %5509 = vmatpush2.bf16.msra.mxu0 %v7487_v52  ;;  %v7549_v52 = vld [vmem:[#allocation5 + $0x104c] ss:$16 sps:$4 sm:$0xff]  }
 0x2a1   :  { %5550 = vmatpush2.bf16.msra.mxu1 %v7490_v58  ;;  %5510 = vmatprep.subr.bf16.mxu0 %v7495_v59  ;;  %v7552_v58 = vld [vmem:[#allocation5 + $0x124c] ss:$16 sps:$4 sm:$0xff]   ;;  %v7547_v59 = vld [vmem:[#allocation5 + $0x1048] ss:$16 sps:$4 sm:$0xff]  }
 0x2a2   :  { %5551 = vmatprep.subr.bf16.mxu1 %v7498_v60  ;;  %v7550_v60 = vld [vmem:[#allocation5 + $0x1248] ss:$16 sps:$4 sm:$0xff]  }
 0x2a4   :  { %5511 = vmatpush2.bf16.msra.mxu0 %v7493_v42  ;;  %v7555_v42 = vld [vmem:[#allocation5 + $0x102c] ss:$16 sps:$4 sm:$0xff]  }
 0x2a5   :  { %5552 = vmatpush2.bf16.msra.mxu1 %v7496_v43  ;;  %5512 = vmatprep.subr.bf16.mxu0 %v7501_v26  ;;  %v7558_v43 = vld [vmem:[#allocation5 + $0x122c] ss:$16 sps:$4 sm:$0xff]   ;;  %v7553_v26 = vld [vmem:[#allocation5 + $0x1028] ss:$16 sps:$4 sm:$0xff]  }
 0x2a6   :  { %5553 = vmatprep.subr.bf16.mxu1 %v7504_v61  ;;  %v7556_v61 = vld [vmem:[#allocation5 + $0x1228] ss:$16 sps:$4 sm:$0xff]  }
 0x2a8   :  { %5513 = vmatpush2.bf16.msra.mxu0 %v7499_v62  ;;  %v7561_v62 = vld [vmem:[#allocation5 + $0x100c] ss:$16 sps:$4 sm:$0xff]  }
 0x2a9   :  { %5554 = vmatpush2.bf16.msra.mxu1 %v7502_v63  ;;  %5514 = vmatprep.subr.bf16.mxu0 %v7507_v1  ;;  %v7564_v63 = vld [vmem:[#allocation5 + $0x120c] ss:$16 sps:$4 sm:$0xff]   ;;  %v7559_v1 = vld [vmem:[#allocation5 + $0x1008] ss:$16 sps:$4 sm:$0xff]  }
 0x2aa   :  { %5555 = vmatprep.subr.bf16.mxu1 %v7510_v44  ;;  %v7562_v44 = vld [vmem:[#allocation5 + $0x1208] ss:$16 sps:$4 sm:$0xff]  }
 0x2ac   :  { %5515 = vmatpush2.bf16.msra.mxu0 %v7505_v2  ;;  %v7567_v2 = vld [vmem:[#allocation5 + $0x11ec] ss:$16 sps:$4 sm:$0xff]  }
 0x2ad   :  { %5556 = vmatpush2.bf16.msra.mxu1 %v7508_v48  ;;  %5516 = vmatprep.subr.bf16.mxu0 %v7513_v50  ;;  %v7570_v48 = vld [vmem:[#allocation5 + $0x13ec] ss:$16 sps:$4 sm:$0xff]   ;;  %v7565_v50 = vld [vmem:[#allocation5 + $0x11e8] ss:$16 sps:$4 sm:$0xff]  }
 0x2ae   :  { %5557 = vmatprep.subr.bf16.mxu1 %v7516_v3  ;;  %v7568_v3 = vld [vmem:[#allocation5 + $0x13e8] ss:$16 sps:$4 sm:$0xff]  }
 0x2b0   :  { %5517 = vmatpush2.bf16.msra.mxu0 %v7511_v4  ;;  %v7573_v4 = vld [vmem:[#allocation5 + $0x11cc] ss:$16 sps:$4 sm:$0xff]  }
 0x2b1   :  { %5558 = vmatpush2.bf16.msra.mxu1 %v7514_v6  ;;  %5568 = vmatprep.subr.bf16.mxu0 %v7519_v0  ;;  %v7576_v6 = vld [vmem:[#allocation5 + $0x13cc] ss:$16 sps:$4 sm:$0xff]   ;;  %v7571_v0 = vld [vmem:[#allocation5 + $0x11c8] ss:$16 sps:$4 sm:$0xff]  }
 0x2b2   :  { %5609 = vmatprep.subr.bf16.mxu1 %v7522_v14  ;;  %v7574_v14 = vld [vmem:[#allocation5 + $0x13c8] ss:$16 sps:$4 sm:$0xff]  }
 0x2b3   :  { %v5274_v34 = vpop.f32.mrf.mxu0  ;;  %5519 = vmatmul.mubr.bf16.vlgmr.msra.gmra.mxu0 %v7892_v7 }
 0x2b4   :  { %v5315_v35 = vpop.f32.mrf.mxu1  ;;  %5560 = vmatmul.mubr.bf16.vlgmr.msra.gmra.mxu1 %v7894_v10  ;;  %v5275_v36 = vadd.f32 %v5274_v34, %v899_v25  ;;  %5569 = vmatpush1.bf16.msra.mxu0 %v7517_v27  ;;  %v7582_v25 = vld [vmem:[#allocation5 + $0x13ac] ss:$16 sps:$4 sm:$0xff]   ;;  %v7577_v27 = vld [vmem:[#allocation5 + $0x11a8] ss:$16 sps:$4 sm:$0xff]  }
 0x2b5   :  { %5610 = vmatpush1.bf16.msra.mxu1 %v7520_v20  ;;  %v5276_v29 = vpop.f32.mrf.mxu0  ;;  %5570 = vmatprep.subr.bf16.mxu0 %v7525_v21  ;;  %v7580_v20 = vld [vmem:[#allocation5 + $0x13a8] ss:$16 sps:$4 sm:$0xff]   ;;  %v7585_v21 = vld [vmem:[#allocation5 + $0x118c] ss:$16 sps:$4 sm:$0xff]  }
 0x2b6   :  { %v5317_v32 = vpop.f32.mrf.mxu1  ;;  %5611 = vmatprep.subr.bf16.mxu1 %v7528_v28  ;;  %v7988_v8 = vadd.f32 %v5315_v35, %v5275_v36  ;;  %v5277_v9 = vadd.f32 %v5276_v29, %v903_v30  ;;  %5600 = vmatprep.mubr.bf16.mxu0 %v7900_v17  ;;  %v7538_v17 = vld [vmem:[#allocation5 + $0x1288] ss:$16 sps:$4 sm:$0xff]   ;;  %v7588_v28 = vld [vmem:[#allocation5 + $0x138c] ss:$16 sps:$4 sm:$0xff]  }
 0x2b7   :  { %5641 = vmatprep.mubr.bf16.mxu1 %v7902_v18  ;;  %v5278_v7 = vpop.f32.mrf.mxu0  ;;  %v7543_v18 = vld [vmem:[#allocation5 + $0x106c] ss:$16 sps:$4 sm:$0xff]   ;;  %v7583_v30 = vld [vmem:[#allocation5 + $0x1188] ss:$16 sps:$4 sm:$0xff]  }
 0x2b8   :  { %v5319_v10 = vpop.f32.mrf.mxu1  ;;  %v7992_v31 = vadd.f32 %v5317_v32, %v5277_v9  ;;  %5571 = vmatpush1.bf16.msra.mxu0 %v7523_v39  ;;  %v7586_v34 = vld [vmem:[#allocation5 + $0x1388] ss:$16 sps:$4 sm:$0xff]   ;;  %v7591_v35 = vld [vmem:[#allocation5 + $0x116c] ss:$16 sps:$4 sm:$0xff]  }
 0x2b9   :  { %5612 = vmatpush1.bf16.msra.mxu1 %v7526_v47  ;;  %v5279_v53 = vpop.f32.mrf.mxu0  ;;  %5572 = vmatprep.subr.bf16.mxu0 %v7531_v45  ;;  %v7594_v36 = vld [vmem:[#allocation5 + $0x136c] ss:$16 sps:$4 sm:$0xff]   ;;  %v7589_v39 = vld [vmem:[#allocation5 + $0x1168] ss:$16 sps:$4 sm:$0xff]  }
 0x2ba   :  { %v5320_v54 = vpop.f32.mrf.mxu1  ;;  %5613 = vmatprep.subr.bf16.mxu1 %v7534_v46  ;;  %v7592_v47 = vld [vmem:[#allocation5 + $0x1368] ss:$16 sps:$4 sm:$0xff]   ;;  %v7597_v29 = vld [vmem:[#allocation5 + $0x114c] ss:$16 sps:$4 sm:$0xff]  }
 0x2bb   :  { %v7600_v32 = vld [vmem:[#allocation5 + $0x134c] ss:$16 sps:$4 sm:$0xff]   ;;  %v7595_v45 = vld [vmem:[#allocation5 + $0x1148] ss:$16 sps:$4 sm:$0xff]  }
 0x2bc   :  { %5573 = vmatpush1.bf16.msra.mxu0 %v7529_v33  ;;  %v7598_v46 = vld [vmem:[#allocation5 + $0x1348] ss:$16 sps:$4 sm:$0xff]   ;;  %v7603_v9 = vld [vmem:[#allocation5 + $0x112c] ss:$16 sps:$4 sm:$0xff]  }
 0x2bd   :  { %5614 = vmatpush1.bf16.msra.mxu1 %v7532_v51  ;;  %5574 = vmatprep.subr.bf16.mxu0 %v7537_v38  ;;  %v7606_v7 = vld [vmem:[#allocation5 + $0x132c] ss:$16 sps:$4 sm:$0xff]   ;;  %v7601_v10 = vld [vmem:[#allocation5 + $0x1128] ss:$16 sps:$4 sm:$0xff]  }
 0x2be   :  { %5615 = vmatprep.subr.bf16.mxu1 %v7540_v55  ;;  %v7604_v33 = vld [vmem:[#allocation5 + $0x1328] ss:$16 sps:$4 sm:$0xff]   ;;  %v7609_v51 = vld [vmem:[#allocation5 + $0x110c] ss:$16 sps:$4 sm:$0xff]  }
 0x2bf   :  { %v7612_v53 = vld [vmem:[#allocation5 + $0x130c] ss:$16 sps:$4 sm:$0xff]   ;;  %v7607_v54 = vld [vmem:[#allocation5 + $0x1108] ss:$16 sps:$4 sm:$0xff]  }
 0x2c0   :  { %5575 = vmatpush1.bf16.msra.mxu0 %v7535_v37  ;;  %v7610_v38 = vld [vmem:[#allocation5 + $0x1308] ss:$16 sps:$4 sm:$0xff]   ;;  %v7615_v55 = vld [vmem:[#allocation5 + $0x14ec] ss:$16 sps:$4 sm:$0xff]  }
 0x2c1   :  { %5616 = vmatpush1.bf16.msra.mxu1 %v7538_v17  ;;  %5576 = vmatprep.subr.bf16.mxu0 %v7543_v18  ;;  %v7618_v37 = vld [vmem:[#allocation5 + $0x16ec] ss:$16 sps:$4 sm:$0xff]   ;;  %v7613_v17 = vld [vmem:[#allocation5 + $0x14e8] ss:$16 sps:$4 sm:$0xff]  }
 0x2c2   :  { %5617 = vmatprep.subr.bf16.mxu1 %v7546_v40  ;;  %v7616_v18 = vld [vmem:[#allocation5 + $0x16e8] ss:$16 sps:$4 sm:$0xff]   ;;  %v7621_v40 = vld [vmem:[#allocation5 + $0x14cc] ss:$16 sps:$4 sm:$0xff]  }
 0x2c4   :  { %5577 = vmatpush1.bf16.msra.mxu0 %v7541_v56  ;;  %v7624_v56 = vld [vmem:[#allocation5 + $0x16cc] ss:$16 sps:$4 sm:$0xff]  }
 0x2c5   :  { %5618 = vmatpush1.bf16.msra.mxu1 %v7544_v49  ;;  %5578 = vmatprep.subr.bf16.mxu0 %v7549_v52 }
 0x2c6   :  { %5619 = vmatprep.subr.bf16.mxu1 %v7552_v58 }
 0x2c8   :  { %5579 = vmatpush1.bf16.msra.mxu0 %v7547_v59  ;;  %v7619_v59 = vld [vmem:[#allocation5 + $0x14c8] ss:$16 sps:$4 sm:$0xff]  }
 0x2c9   :  { %5620 = vmatpush1.bf16.msra.mxu1 %v7550_v60  ;;  %5580 = vmatprep.subr.bf16.mxu0 %v7555_v42  ;;  %v7622_v60 = vld [vmem:[#allocation5 + $0x16c8] ss:$16 sps:$4 sm:$0xff]  }
 0x2ca   :  { %5621 = vmatprep.subr.bf16.mxu1 %v7558_v43 }
 0x2cc   :  { %5581 = vmatpush1.bf16.msra.mxu0 %v7553_v26  ;;  %v7627_v26 = vld [vmem:[#allocation5 + $0x14ac] ss:$16 sps:$4 sm:$0xff]  }
 0x2cd   :  { %5622 = vmatpush1.bf16.msra.mxu1 %v7556_v61  ;;  %5582 = vmatprep.subr.bf16.mxu0 %v7561_v62  ;;  %v7630_v61 = vld [vmem:[#allocation5 + $0x16ac] ss:$16 sps:$4 sm:$0xff]  }
 0x2ce   :  { %5623 = vmatprep.subr.bf16.mxu1 %v7564_v63 }
 0x2d0   :  { %5583 = vmatpush1.bf16.msra.mxu0 %v7559_v1  ;;  %v7625_v1 = vld [vmem:[#allocation5 + $0x14a8] ss:$16 sps:$4 sm:$0xff]  }
 0x2d1   :  { %5624 = vmatpush1.bf16.msra.mxu1 %v7562_v44  ;;  %5584 = vmatprep.subr.bf16.mxu0 %v7567_v2  ;;  %v7628_v44 = vld [vmem:[#allocation5 + $0x16a8] ss:$16 sps:$4 sm:$0xff]  }
 0x2d2   :  { %5625 = vmatprep.subr.bf16.mxu1 %v7570_v48 }
 0x2d4   :  { %5585 = vmatpush2.bf16.msra.mxu0 %v7565_v50  ;;  %v7633_v50 = vld [vmem:[#allocation5 + $0x148c] ss:$16 sps:$4 sm:$0xff]  }
 0x2d5   :  { %5626 = vmatpush2.bf16.msra.mxu1 %v7568_v3  ;;  %5586 = vmatprep.subr.bf16.mxu0 %v7573_v4  ;;  %v7636_v3 = vld [vmem:[#allocation5 + $0x168c] ss:$16 sps:$4 sm:$0xff]  }
 0x2d6   :  { %5627 = vmatprep.subr.bf16.mxu1 %v7576_v6  ;;  %v7642_v4 = vld [vmem:[#allocation5 + $0x166c] ss:$16 sps:$4 sm:$0xff]   ;;  %v7637_v6 = vld [vmem:[#allocation5 + $0x1468] ss:$16 sps:$4 sm:$0xff]  }
 0x2d8   :  { %5587 = vmatpush2.bf16.msra.mxu0 %v7571_v0  ;;  %v7640_v0 = vld [vmem:[#allocation5 + $0x1668] ss:$16 sps:$4 sm:$0xff]  }
 0x2d9   :  { %5628 = vmatpush2.bf16.msra.mxu1 %v7574_v14  ;;  %5588 = vmatprep.subr.bf16.mxu0 %v7579_v23  ;;  %v7645_v14 = vld [vmem:[#allocation5 + $0x144c] ss:$16 sps:$4 sm:$0xff]  }
 0x2da   :  { %5629 = vmatprep.subr.bf16.mxu1 %v7582_v25  ;;  %v7648_v23 = vld [vmem:[#allocation5 + $0x164c] ss:$16 sps:$4 sm:$0xff]   ;;  %v7643_v25 = vld [vmem:[#allocation5 + $0x1448] ss:$16 sps:$4 sm:$0xff]  }
 0x2dc   :  { %5589 = vmatpush2.bf16.msra.mxu0 %v7577_v27  ;;  %v7646_v27 = vld [vmem:[#allocation5 + $0x1648] ss:$16 sps:$4 sm:$0xff]  }
 0x2dd   :  { %5630 = vmatpush2.bf16.msra.mxu1 %v7580_v20  ;;  %5590 = vmatprep.subr.bf16.mxu0 %v7585_v21  ;;  %v7651_v20 = vld [vmem:[#allocation5 + $0x142c] ss:$16 sps:$4 sm:$0xff]  }
 0x2de   :  { %5631 = vmatprep.subr.bf16.mxu1 %v7588_v28  ;;  %v7654_v21 = vld [vmem:[#allocation5 + $0x162c] ss:$16 sps:$4 sm:$0xff]   ;;  %v7649_v28 = vld [vmem:[#allocation5 + $0x1428] ss:$16 sps:$4 sm:$0xff]  }
 0x2e0   :  { %5591 = vmatpush2.bf16.msra.mxu0 %v7583_v30  ;;  %v7652_v30 = vld [vmem:[#allocation5 + $0x1628] ss:$16 sps:$4 sm:$0xff]  }
 0x2e1   :  { %5632 = vmatpush2.bf16.msra.mxu1 %v7586_v34  ;;  %5592 = vmatprep.subr.bf16.mxu0 %v7591_v35  ;;  %v7657_v34 = vld [vmem:[#allocation5 + $0x140c] ss:$16 sps:$4 sm:$0xff]  }
 0x2e2   :  { %5633 = vmatprep.subr.bf16.mxu1 %v7594_v36  ;;  %v7660_v35 = vld [vmem:[#allocation5 + $0x160c] ss:$16 sps:$4 sm:$0xff]   ;;  %v7655_v36 = vld [vmem:[#allocation5 + $0x1408] ss:$16 sps:$4 sm:$0xff]  }
 0x2e4   :  { %5593 = vmatpush2.bf16.msra.mxu0 %v7589_v39  ;;  %v7658_v39 = vld [vmem:[#allocation5 + $0x1608] ss:$16 sps:$4 sm:$0xff]  }
 0x2e5   :  { %5634 = vmatpush2.bf16.msra.mxu1 %v7592_v47  ;;  %5594 = vmatprep.subr.bf16.mxu0 %v7597_v29  ;;  %v7663_v47 = vld [vmem:[#allocation5 + $0x15ec] ss:$16 sps:$4 sm:$0xff]  }
 0x2e6   :  { %5635 = vmatprep.subr.bf16.mxu1 %v7600_v32  ;;  %v7666_v29 = vld [vmem:[#allocation5 + $0x17ec] ss:$16 sps:$4 sm:$0xff]   ;;  %v7661_v32 = vld [vmem:[#allocation5 + $0x15e8] ss:$16 sps:$4 sm:$0xff]  }
 0x2e8   :  { %5595 = vmatpush2.bf16.msra.mxu0 %v7595_v45  ;;  %v7664_v45 = vld [vmem:[#allocation5 + $0x17e8] ss:$16 sps:$4 sm:$0xff]  }
 0x2e9   :  { %5636 = vmatpush2.bf16.msra.mxu1 %v7598_v46  ;;  %5596 = vmatprep.subr.bf16.mxu0 %v7603_v9  ;;  %v7669_v46 = vld [vmem:[#allocation5 + $0x15cc] ss:$16 sps:$4 sm:$0xff]  }
 0x2ea   :  { %5637 = vmatprep.subr.bf16.mxu1 %v7606_v7  ;;  %v7672_v9 = vld [vmem:[#allocation5 + $0x17cc] ss:$16 sps:$4 sm:$0xff]   ;;  %v7667_v7 = vld [vmem:[#allocation5 + $0x15c8] ss:$16 sps:$4 sm:$0xff]  }
 0x2ec   :  { %5597 = vmatpush2.bf16.msra.mxu0 %v7601_v10  ;;  %v7670_v10 = vld [vmem:[#allocation5 + $0x17c8] ss:$16 sps:$4 sm:$0xff]  }
 0x2ed   :  { %5638 = vmatpush2.bf16.msra.mxu1 %v7604_v33  ;;  %5598 = vmatprep.subr.bf16.mxu0 %v7609_v51  ;;  %v7675_v33 = vld [vmem:[#allocation5 + $0x15ac] ss:$16 sps:$4 sm:$0xff]  }
 0x2ee   :  { %5639 = vmatprep.subr.bf16.mxu1 %v7612_v53  ;;  %v7678_v51 = vld [vmem:[#allocation5 + $0x17ac] ss:$16 sps:$4 sm:$0xff]   ;;  %v7673_v53 = vld [vmem:[#allocation5 + $0x15a8] ss:$16 sps:$4 sm:$0xff]  }
 0x2f0   :  { %5599 = vmatpush2.bf16.msra.mxu0 %v7607_v54  ;;  %v7676_v54 = vld [vmem:[#allocation5 + $0x17a8] ss:$16 sps:$4 sm:$0xff]  }
 0x2f1   :  { %5640 = vmatpush2.bf16.msra.mxu1 %v7610_v38  ;;  %5650 = vmatprep.subr.bf16.mxu0 %v7615_v55  ;;  %v7681_v38 = vld [vmem:[#allocation5 + $0x158c] ss:$16 sps:$4 sm:$0xff]  }
 0x2f2   :  { %5691 = vmatprep.subr.bf16.mxu1 %v7618_v37  ;;  %v7684_v55 = vld [vmem:[#allocation5 + $0x178c] ss:$16 sps:$4 sm:$0xff]   ;;  %v7679_v37 = vld [vmem:[#allocation5 + $0x1588] ss:$16 sps:$4 sm:$0xff]  }
 0x2f3   :  { %v5356_v49 = vpop.f32.mrf.mxu0  ;;  %5601 = vmatmul.mubr.bf16.vlgmr.msra.gmra.mxu0 %v7912_v11 }
 0x2f4   :  { %v5397_v52 = vpop.f32.mrf.mxu1  ;;  %5642 = vmatmul.mubr.bf16.vlgmr.msra.gmra.mxu1 %v7914_v12  ;;  %v5357_v58 = vadd.f32 %v5356_v49, %v7988_v8  ;;  %5651 = vmatpush1.bf16.msra.mxu0 %v7613_v17  ;;  %v7682_v17 = vld [vmem:[#allocation5 + $0x1788] ss:$16 sps:$4 sm:$0xff]  }
 0x2f5   :  { %5692 = vmatpush1.bf16.msra.mxu1 %v7616_v18  ;;  %v5358_v42 = vpop.f32.mrf.mxu0  ;;  %5652 = vmatprep.subr.bf16.mxu0 %v7621_v40  ;;  %v7687_v18 = vld [vmem:[#allocation5 + $0x156c] ss:$16 sps:$4 sm:$0xff]   ;;  %v7688_v49 = vld [vmem:[#allocation5 + $0x1768] ss:$16 sps:$4 sm:$0xff]  }
 0x2f6   :  { %v5399_v43 = vpop.f32.mrf.mxu1  ;;  %5693 = vmatprep.subr.bf16.mxu1 %v7624_v56  ;;  %v7997_v62 = vadd.f32 %v5397_v52, %v5357_v58  ;;  %v5359_v63 = vadd.f32 %v5358_v42, %v7992_v31  ;;  %5682 = vmatprep.mubr.bf16.mxu0 %v7916_v19  ;;  %v7631_v31 = vld [vmem:[#allocation5 + $0x1488] ss:$16 sps:$4 sm:$0xff]   ;;  %v7690_v40 = vld [vmem:[#allocation5 + $0x176c] ss:$16 sps:$4 sm:$0xff]  }
 0x2f7   :  { %5723 = vmatprep.mubr.bf16.mxu1 %v7918_v22  ;;  %v5360_v11 = vpop.f32.mrf.mxu0  ;;  %v7634_v19 = vld [vmem:[#allocation5 + $0x1688] ss:$16 sps:$4 sm:$0xff]   ;;  %v7639_v22 = vld [vmem:[#allocation5 + $0x146c] ss:$16 sps:$4 sm:$0xff]  }
 0x2f8   :  { %v5401_v12 = vpop.f32.mrf.mxu1  ;;  %v8002_v8 = vadd.f32 %v5399_v43, %v5359_v63  ;;  %5653 = vmatpush1.bf16.msra.mxu0 %v7619_v59  ;;  %v7685_v56 = vld [vmem:[#allocation5 + $0x1568] ss:$16 sps:$4 sm:$0xff]   ;;  %v7693_v52 = vld [vmem:[#allocation5 + $0x154c] ss:$16 sps:$4 sm:$0xff]  }
 0x2f9   :  { %5694 = vmatpush1.bf16.msra.mxu1 %v7622_v60  ;;  %v5361_v2 = vpop.f32.mrf.mxu0  ;;  %5654 = vmatprep.subr.bf16.mxu0 %v7627_v26  ;;  %v7696_v58 = vld [vmem:[#allocation5 + $0x174c] ss:$16 sps:$4 sm:$0xff]   ;;  %v7691_v59 = vld [vmem:[#allocation5 + $0x1548] ss:$16 sps:$4 sm:$0xff]  }
 0x2fa   :  { %v5402_v48 = vpop.f32.mrf.mxu1  ;;  %5695 = vmatprep.subr.bf16.mxu1 %v7630_v61  ;;  %v7694_v60 = vld [vmem:[#allocation5 + $0x1748] ss:$16 sps:$4 sm:$0xff]   ;;  %v7699_v42 = vld [vmem:[#allocation5 + $0x152c] ss:$16 sps:$4 sm:$0xff]  }
 0x2fb   :  { %v7702_v43 = vld [vmem:[#allocation5 + $0x172c] ss:$16 sps:$4 sm:$0xff]   ;;  %v7697_v26 = vld [vmem:[#allocation5 + $0x1528] ss:$16 sps:$4 sm:$0xff]  }
 0x2fc   :  { %5655 = vmatpush1.bf16.msra.mxu0 %v7625_v1  ;;  %v7700_v61 = vld [vmem:[#allocation5 + $0x1728] ss:$16 sps:$4 sm:$0xff]   ;;  %v7705_v63 = vld [vmem:[#allocation5 + $0x150c] ss:$16 sps:$4 sm:$0xff]  }
 0x2fd   :  { %5696 = vmatpush1.bf16.msra.mxu1 %v7628_v44  ;;  %5656 = vmatprep.subr.bf16.mxu0 %v7633_v50  ;;  %v7708_v11 = vld [vmem:[#allocation5 + $0x170c] ss:$16 sps:$4 sm:$0xff]   ;;  %v7703_v12 = vld [vmem:[#allocation5 + $0x1508] ss:$16 sps:$4 sm:$0xff]  }
 0x2fe   :  { %5697 = vmatprep.subr.bf16.mxu1 %v7636_v3  ;;  %v7706_v1 = vld [vmem:[#allocation5 + $0x1708] ss:$16 sps:$4 sm:$0xff]  }
 0x300   :  { %5657 = vmatpush1.bf16.msra.mxu0 %v7631_v31 }
 0x301   :  { %5698 = vmatpush1.bf16.msra.mxu1 %v7634_v19  ;;  %5658 = vmatprep.subr.bf16.mxu0 %v7639_v22 }
 0x302   :  { %5699 = vmatprep.subr.bf16.mxu1 %v7642_v4 }
 0x304   :  { %5659 = vmatpush1.bf16.msra.mxu0 %v7637_v6 }
 0x305   :  { %5700 = vmatpush1.bf16.msra.mxu1 %v7640_v0  ;;  %5660 = vmatprep.subr.bf16.mxu0 %v7645_v14 }
 0x306   :  { %5701 = vmatprep.subr.bf16.mxu1 %v7648_v23 }
 0x308   :  { %5661 = vmatpush1.bf16.msra.mxu0 %v7643_v25 }
 0x309   :  { %5702 = vmatpush1.bf16.msra.mxu1 %v7646_v27  ;;  %5662 = vmatprep.subr.bf16.mxu0 %v7651_v20 }
 0x30a   :  { %5703 = vmatprep.subr.bf16.mxu1 %v7654_v21 }
 0x30c   :  { %5663 = vmatpush1.bf16.msra.mxu0 %v7649_v28 }
 0x30d   :  { %5704 = vmatpush1.bf16.msra.mxu1 %v7652_v30  ;;  %5664 = vmatprep.subr.bf16.mxu0 %v7657_v34 }
 0x30e   :  { %5705 = vmatprep.subr.bf16.mxu1 %v7660_v35 }
 0x310   :  { %5665 = vmatpush1.bf16.msra.mxu0 %v7655_v36 }
 0x311   :  { %5706 = vmatpush1.bf16.msra.mxu1 %v7658_v39  ;;  %5666 = vmatprep.subr.bf16.mxu0 %v7663_v47 }
 0x312   :  { %5707 = vmatprep.subr.bf16.mxu1 %v7666_v29 }
 0x314   :  { %5667 = vmatpush2.bf16.msra.mxu0 %v7661_v32 }
 0x315   :  { %5708 = vmatpush2.bf16.msra.mxu1 %v7664_v45  ;;  %5668 = vmatprep.subr.bf16.mxu0 %v7669_v46 }
 0x316   :  { %5709 = vmatprep.subr.bf16.mxu1 %v7672_v9 }
 0x318   :  { %5669 = vmatpush2.bf16.msra.mxu0 %v7667_v7 }
 0x319   :  { %5710 = vmatpush2.bf16.msra.mxu1 %v7670_v10  ;;  %5670 = vmatprep.subr.bf16.mxu0 %v7675_v33 }
 0x31a   :  { %5711 = vmatprep.subr.bf16.mxu1 %v7678_v51 }
 0x31c   :  { %5671 = vmatpush2.bf16.msra.mxu0 %v7673_v53 }
 0x31d   :  { %5712 = vmatpush2.bf16.msra.mxu1 %v7676_v54  ;;  %5672 = vmatprep.subr.bf16.mxu0 %v7681_v38 }
 0x31e   :  { %5713 = vmatprep.subr.bf16.mxu1 %v7684_v55 }
 0x320   :  { %5673 = vmatpush2.bf16.msra.mxu0 %v7679_v37 }
 0x321   :  { %5714 = vmatpush2.bf16.msra.mxu1 %v7682_v17  ;;  %5674 = vmatprep.subr.bf16.mxu0 %v7687_v18  ;;  %v5749_v17 = vrot.slane %v7967_v41, %v898_v13  ;;  %v5768_v13 = vstv %s8025_s4 }
 0x322   :  { %5715 = vmatprep.subr.bf16.mxu1 %v7690_v40 }
 0x324   :  { %5675 = vmatpush2.bf16.msra.mxu0 %v7685_v56 }
 0x325   :  { %5716 = vmatpush2.bf16.msra.mxu1 %v7688_v49  ;;  %5676 = vmatprep.subr.bf16.mxu0 %v7693_v52 }
 0x326   :  { %5717 = vmatprep.subr.bf16.mxu1 %v7696_v58  ;;  %v5753_v58 = vrot.slane %v7967_v41, %v902_v5 }
 0x328   :  { %5677 = vmatpush2.bf16.msra.mxu0 %v7691_v59 }
 0x329   :  { %5718 = vmatpush2.bf16.msra.mxu1 %v7694_v60  ;;  %5678 = vmatprep.subr.bf16.mxu0 %v7699_v42 }
 0x32a   :  { %5719 = vmatprep.subr.bf16.mxu1 %v7702_v43 }
 0x32c   :  { %5679 = vmatpush2.bf16.msra.mxu0 %v7697_v26 }
 0x32d   :  { %5720 = vmatpush2.bf16.msra.mxu1 %v7700_v61  ;;  %5680 = vmatprep.subr.bf16.mxu0 %v7705_v63 }
 0x32e   :  { %5721 = vmatprep.subr.bf16.mxu1 %v7708_v11 }
 0x330   :  { %5681 = vmatpush2.bf16.msra.mxu0 %v7703_v12 }
 0x331   :  { %5722 = vmatpush2.bf16.msra.mxu1 %v7706_v1 }
 0x333   :  { %v5438_v44 = vpop.f32.mrf.mxu0  ;;  %5683 = vmatmul.mubr.bf16.vlgmr.msra.gmra.mxu0 %v7930_v15 }
 0x334   :  { %v5479_v2 = vpop.f32.mrf.mxu1  ;;  %5724 = vmatmul.mubr.bf16.vlgmr.msra.gmra.mxu1 %v7932_v16  ;;  %v5439_v48 = vadd.f32 %v5438_v44, %v7997_v62 }
 0x335   :  { %v5440_v50 = vpop.f32.mrf.mxu0 }
 0x336   :  { %v5481_v3 = vpop.f32.mrf.mxu1  ;;  %v5480_v31 = vadd.f32 %v5479_v2, %v5439_v48  ;;  %v5441_v19 = vadd.f32 %v5440_v50, %v8002_v8 }
 0x337   :  { %v5442_v22 = vpop.f32.mrf.mxu0 }
 0x338   :  { %v5483_v4 = vpop.f32.mrf.mxu1  ;;  %v5482_v6 = vadd.f32 %v5481_v3, %v5441_v19 }
 0x339   :  { %v5443_v0 = vpop.f32.mrf.mxu0 }
 0x33a   :  { %v5484_v14 = vpop.f32.mrf.mxu1 }
 0x373   :  { %v5520_v23 = vpop.f32.mrf.mxu0 }
 0x374   :  { %v5561_v25 = vpop.f32.mrf.mxu1  ;;  %v5521_v27 = vadd.f32 %v5520_v23, %v5480_v31 }
 0x375   :  { %v5522_v20 = vpop.f32.mrf.mxu0 }
 0x376   :  { %v5563_v21 = vpop.f32.mrf.mxu1  ;;  %v5562_v15 = vadd.f32 %v5561_v25, %v5521_v27  ;;  %v5523_v28 = vadd.f32 %v5522_v20, %v5482_v6 }
 0x377   :  { %v5524_v16 = vpop.f32.mrf.mxu0 }
 0x378   :  { %v5565_v30 = vpop.f32.mrf.mxu1  ;;  %v5564_v62 = vadd.f32 %v5563_v21, %v5523_v28 }
 0x379   :  { %v5525_v34 = vpop.f32.mrf.mxu0 }
 0x37a   :  { %v5566_v35 = vpop.f32.mrf.mxu1 }
 0x3b3   :  { %v5602_v36 = vpop.f32.mrf.mxu0 }
 0x3b4   :  { %v5643_v39 = vpop.f32.mrf.mxu1  ;;  %v5603_v9 = vadd.f32 %v5602_v36, %v5562_v15 }
 0x3b5   :  { %v5604_v8 = vpop.f32.mrf.mxu0 }
 0x3b6   :  { %v5645_v47 = vpop.f32.mrf.mxu1  ;;  %v5605_v7 = vadd.f32 %v5604_v8, %v5564_v62  ;;  %v5644_v10 = vadd.f32 %v5643_v39, %v5603_v9 }
 0x3b7   :  { %v5606_v29 = vpop.f32.mrf.mxu0 }
 0x3b8   :  { %v5647_v32 = vpop.f32.mrf.mxu1  ;;  %v5646_v53 = vadd.f32 %v5645_v47, %v5605_v7 }
 0x3b9   :  { %v5607_v45 = vpop.f32.mrf.mxu0 }
 0x3ba   :  { %v5648_v46 = vpop.f32.mrf.mxu1 }
 0x3f3   :  { %v5684_v33 = vpop.f32.mrf.mxu0 }
 0x3f4   :  { %v5725_v51 = vpop.f32.mrf.mxu1  ;;  %v5685_v54 = vadd.f32 %v5684_v33, %v5644_v10 }
 0x3f5   :  { %v5686_v38 = vpop.f32.mrf.mxu0 }
 0x3f6   :  { %v5727_v55 = vpop.f32.mrf.mxu1  ;;  %v5726_v37 = vadd.f32 %v5725_v51, %v5685_v54  ;;  %v5687_v18 = vadd.f32 %v5686_v38, %v5646_v53 }
 0x3f7   :  { %v5688_v40 = vpop.f32.mrf.mxu0 }
 0x3f8   :  { %v5729_v56 = vpop.f32.mrf.mxu1  ;;  %v5734_v49 = vmax.f32 %v5726_v37, 0.0  ;;  %v5728_v52 = vadd.f32 %v5727_v55, %v5687_v18 }
 0x3f9   :  { %v5689_v59 = vpop.f32.mrf.mxu0 }
 0x3fa   :  { %v5730_v60 = vpop.f32.mrf.mxu1  ;;  %v5760_v42 = vmul.f32 %v5749_v17, %v5734_v49  ;;  %v5735_v43 = vmax.f32 %v5728_v52, 0.0 }
 0x3fc   :  { %v5761_v26 = vmul.f32 %v5753_v58, %v5735_v43  ;;  %v5763_v61 = vadd.f32 %v7978_v24, %v5760_v42 }
 0x3fe   :  { %v5764_v63 = vadd.f32 %v5763_v61, %v5761_v26 }
 0x400   :  { %5765 = vadd.xlane.f32.xlu0 %v5764_v63 }
 0x489   :  { %v5766_v11 = vpop.xlane.xlu0 %5765 }
 0x48a   :  { %v5769_v12 = vadd.f32 %v5768_v13, %v5766_v11 }
 0x48c   :  { %v5770_v1 = vmul.f32 0.5, %v5769_v12 }
 0x48e   :  { %7709 = vtanh.f32 %v5770_v1 }
 0x49b   :  { %v7710_v57 = vpop.eup %7709 }
 0x49c   :  { %v5772_v44 = vadd.f32 1.0, %v7710_v57 }
 0x49e   :  { %v5773_v41 = vmul.f32 0.5, %v5772_v44 }
 0x4a0   :  { %5775 = vst.msk [vmem:[%s8026_s5] sm:$0xff] %vm5774_vm0, %v5773_v41 }
 0x4a1   :  { %5780 = vsyncpa [#allocation4], 1 }
 0x4a2   :  { %5781 = vsyncpa [#allocation6], 1 }
 0x4a3   :  { %5782 = vsyncpa [#allocation9], 1 }

</bundles_post_ra>
